<compile_context>
chip_gen: v5e
topology: v5e:2x2
jax: 0.10.0
libtpu: 0.0.40
codegen_flags: <defaults>
</compile_context>

<pallas_src>
import functools
import math

import jax
import jax.numpy as jnp
from jax.experimental import pallas as pl
from jax.experimental.pallas import tpu as pltpu

EPS = 1e-5


def _pick_vmem_limit_bytes():
    """Scoped-VMEM limit: ~75% of physical, capped at 100 MiB.

    v5e/v6e have 128 MiB physical (-> 96 MiB), v7x has 64 MiB (-> 48 MiB).  Blocks
    below are tiny, but the headroom keeps double-buffering alive if they grow.
    """
    cap = 64 * 1024 * 1024
    try:
        cap = int(pltpu.get_tpu_info().vmem_capacity_bytes)
    except Exception:
        pass
    return int(min(100 * 1024 * 1024, (cap * 3) // 4))


def _row_chunk(ho, wo):
    """Output rows per matmul: make the RHS/output lane dim (r*wo) >= ~256 and, when
    the image is chunked, a multiple of 128 so the output BlockSpec stays aligned."""
    if ho * wo <= 512:
        return ho                                    # whole image in one chunk
    r_base = 128 // math.gcd(wo, 128)                # smallest r with r*wo % 128 == 0
    mult = max(1, -(-256 // (r_base * wo)))          # reach >= 256 output lanes
    while mult > 1 and r_base * mult > 32:           # cap the static unroll
        mult -= 1
    r = r_base * mult
    return ho if r >= ho else r


def _build_patch(x_ref, base, *, kh, kw, stride, dilation, r_chunk, wo):
    """Build the (kh*kw*C_in, r_chunk*wo) patch block for one row-chunk.

    x_ref block: (1, Hp_pad, C_in, Wp) in N,H,C,W layout -- H is a leading (untiled)
    dim so each row slab is a plain (possibly dynamic-index) load with C_in/Wp on
    sublanes/lanes.  `base` is the first input row of the chunk (Python int when the
    image fits in one chunk, traced scalar otherwise).  K ordering is (i, j, ci),
    matching the (C_out, kh, kw, C_in) -> (C_out, K) weight reshape.
    """
    span = (wo - 1) * stride + 1
    cols = []
    for r in range(r_chunk):
        pieces = []
        for i in range(kh):
            slab = x_ref[0, base + r * stride + i * dilation]       # (C_in, Wp)
            for j in range(kw):
                lo = j * dilation
                if stride == 1:
                    pieces.append(slab[:, lo:lo + wo])
                else:
                    # TODO(synk): for stride > 1 gather once per chunk into scratch
                    # instead of a strided lane slice per tap per row.
                    pieces.append(slab[:, lo:lo + span:stride])
        cols.append(jnp.concatenate(pieces, axis=0))                # (K, wo)
    return jnp.concatenate(cols, axis=1)                            # (K, r_chunk*wo)


def _stats_kernel(x_ref, w_ref, stats_ref, *, kh, kw, stride, dilation, r_chunk, wo,
                  ho, num_chunks, needs_mask):
    """Pass 1: conv on one row-chunk + per-channel sum / sum-of-squares accumulation.

    stats_ref is a (1, C_out, 2) f32 block resident across the trailing ("arbitrary")
    grid axes; each leading ("parallel") index owns its own block so the two
    TensorCores on v7x accumulate independent partials.
    """
    b = pl.program_id(1)
    c = pl.program_id(2)

    @pl.when(jnp.logical_and(b == 0, c == 0))
    def _():
        stats_ref[...] = jnp.zeros_like(stats_ref)

    if num_chunks == 1:
        base = 0
    else:
        base = pl.multiple_of(c * (r_chunk * stride), r_chunk * stride)
    patch = _build_patch(x_ref, base, kh=kh, kw=kw, stride=stride,
                         dilation=dilation, r_chunk=r_chunk, wo=wo)
    y = jnp.dot(w_ref[...], patch,
                preferred_element_type=jnp.float32)                 # (C_out, R*Wo)

    if needs_mask:
        # Last chunk can cover padded rows; exclude them from the statistics.
        lane = jax.lax.broadcasted_iota(jnp.int32, (1, r_chunk * wo), 1)
        m = (lane < (ho - c * r_chunk) * wo).astype(jnp.float32)
        s = jnp.sum(y * m, axis=1, keepdims=True)
        q = jnp.sum(y * y * m, axis=1, keepdims=True)
    else:
        s = jnp.sum(y, axis=1, keepdims=True)
        q = jnp.sum(y * y, axis=1, keepdims=True)
    # TODO(synk): E[y^2]-E[y]^2 can cancel badly when |mean| >> std; subtract a
    # per-channel reference offset before accumulating if that regime matters.
    stats_ref[0, :, :] = stats_ref[0, :, :] + jnp.concatenate([s, q], axis=1)


def _norm_kernel(x_ref, w_ref, shift_ref, o_ref, *, kh, kw, stride, dilation,
                 r_chunk, wo, num_chunks):
    """Pass 2: conv(one row-chunk) with BN-scale-folded weight, + shift, ReLU, and a
    single lane-dense (C_out, r_chunk*wo) store."""
    c = pl.program_id(1)
    if num_chunks == 1:
        base = 0
    else:
        base = pl.multiple_of(c * (r_chunk * stride), r_chunk * stride)
    patch = _build_patch(x_ref, base, kh=kh, kw=kw, stride=stride,
                         dilation=dilation, r_chunk=r_chunk, wo=wo)
    y = jnp.dot(w_ref[...], patch, preferred_element_type=jnp.float32)
    y = jnp.maximum(y + shift_ref[...], 0.0)
    o_ref[0, :, :] = y.astype(o_ref.dtype)


@functools.partial(jax.jit,
                   static_argnames=("stride", "padding", "dilation", "compute_dtype"))
def conv_bn_relu(x_nchw, weight, bias, gamma, beta, *, stride=1, padding=0,
                 dilation=1, compute_dtype=jnp.float32):
    """Fused Conv2d + BatchNorm2d(training-mode stats) + ReLU.

    x_nchw: (N, C_in, H, W)   weight: (C_out, C_in, kh, kw)
    bias/gamma/beta: (C_out,)   Returns: (N, C_out, H_out, W_out) NCHW.

    `bias` is accepted for interface parity but cancels exactly under training-mode
    BatchNorm ((Wx+b) - mean(Wx+b) == Wx - mean(Wx)), so it is unused.
    compute_dtype=jnp.bfloat16 halves MXU-input DMA bytes on all TPU generations
    (v5e included); accumulation and BN math stay f32.
    """
    # TODO(synk): groups != 1 and eval-mode (running-stats) BatchNorm not implemented.
    del bias
    n, c_in, h, w = x_nchw.shape
    c_out, _, kh, kw = weight.shape
    hp = h + 2 * padding
    wp = w + 2 * padding
    ho = (hp - dilation * (kh - 1) - 1) // stride + 1
    wo = (wp - dilation * (kw - 1) - 1) // stride + 1
    k = kh * kw * c_in

    # Row-chunking: one lane-dense matmul / store per chunk.
    r_chunk = _row_chunk(ho, wo)
    num_chunks = -(-ho // r_chunk)
    ho_pad = num_chunks * r_chunk
    needs_mask = ho_pad != ho
    hp_pad = max(hp, (ho_pad - 1) * stride + (kh - 1) * dilation + 1)

    # Pad spatially (any extra bottom rows only feed padded output rows that are
    # masked from the stats and sliced off at the end) and lay out as
    # (N, Hp_pad, C_in, Wp).  pad + transpose + cast fuse into one copy under jit.
    # TODO(synk): for very large images, zero-pad in-kernel instead of materializing
    # the padded activation in HBM.
    xpad = jnp.pad(
        x_nchw,
        ((0, 0), (0, 0), (padding, padding + (hp_pad - hp)), (padding, padding)))
    x_nhcw = jnp.transpose(xpad, (0, 2, 1, 3)).astype(compute_dtype)
    # Weight: (C_out, C_in, kh, kw) -> (C_out, kh, kw, C_in) -> (C_out, K), matching
    # the (i, j, ci) patch-row ordering built in-kernel.
    w_mat32 = jnp.transpose(weight, (0, 2, 3, 1)).reshape(c_out, k).astype(jnp.float32)

    itemsize = jnp.dtype(compute_dtype).itemsize
    x_bytes = n * hp_pad * c_in * wp * itemsize
    w_bytes = c_out * k * itemsize
    out_bytes = n * c_out * ho_pad * wo * jnp.dtype(x_nchw.dtype).itemsize
    conv_flops = 2 * n * ho * wo * k * c_out
    vmem_limit = _pick_vmem_limit_bytes()

    # ---- Pass 1: per-channel sum / sum-of-squares of the conv output ----
    # Leading "parallel" axis splits the batch across TensorCores (2 TCs on v7x);
    # each slice owns one (1, C_out, 2) partial-stats block, combined below.
    p_split = 2 if (n >= 2 and n % 2 == 0) else 1   # TODO(synk): odd N -> single slice
    n_per = n // p_split
    w_stats = w_mat32.astype(compute_dtype)

    partial_stats = pl.pallas_call(
        functools.partial(_stats_kernel, kh=kh, kw=kw, stride=stride,
                          dilation=dilation, r_chunk=r_chunk, wo=wo, ho=ho,
                          num_chunks=num_chunks, needs_mask=needs_mask),
        out_shape=jax.ShapeDtypeStruct((p_split, c_out, 2), jnp.float32),
        grid_spec=pltpu.PrefetchScalarGridSpec(
            num_scalar_prefetch=0,
            grid=(p_split, n_per, num_chunks),
            in_specs=[pl.BlockSpec((1, hp_pad, c_in, wp),
                                   lambda p, b, c: (p * n_per + b, 0, 0, 0)),
                      pl.BlockSpec((c_out, k), lambda p, b, c: (0, 0))],
            out_specs=pl.BlockSpec((1, c_out, 2), lambda p, b, c: (p, 0, 0)),
        ),
        compiler_params=pltpu.CompilerParams(
            dimension_semantics=("parallel", "arbitrary", "arbitrary"),
            vmem_limit_bytes=vmem_limit),
        cost_estimate=pl.CostEstimate(flops=conv_flops, transcendentals=0,
                                      bytes_accessed=x_bytes + w_bytes
                                      + p_split * c_out * 8),
    )(x_nhcw, w_stats)
    stats = jnp.sum(partial_stats, axis=0)                     # (C_out, 2)

    # Fold BN (batch statistics) + affine into per-channel scale/shift (f32), then
    # fold the scale into the pass-2 weight (O(C_out*K) wrapper-side work).
    cnt = float(n * ho * wo)
    mean = stats[:, 0] / cnt
    var = jnp.maximum(stats[:, 1] / cnt - mean * mean, 0.0)    # biased variance
    inv_std = jax.lax.rsqrt(var + EPS)
    g32 = gamma.astype(jnp.float32)
    b32 = beta.astype(jnp.float32)
    scale = (g32 * inv_std).reshape(c_out, 1)
    shift = (b32 - mean * g32 * inv_std).reshape(c_out, 1)
    w_scaled = (w_mat32 * scale).astype(compute_dtype)

    # ---- Pass 2: conv + folded BN + ReLU, one lane-dense slab per row-chunk ----
    out_flat = pl.pallas_call(
        functools.partial(_norm_kernel, kh=kh, kw=kw, stride=stride,
                          dilation=dilation, r_chunk=r_chunk, wo=wo,
                          num_chunks=num_chunks),
        out_shape=jax.ShapeDtypeStruct((n, c_out, ho_pad * wo), x_nchw.dtype),
        grid_spec=pltpu.PrefetchScalarGridSpec(
            num_scalar_prefetch=0,
            grid=(n, num_chunks),
            in_specs=[pl.BlockSpec((1, hp_pad, c_in, wp),
                                   lambda i, c: (i, 0, 0, 0)),
                      pl.BlockSpec((c_out, k), lambda i, c: (0, 0)),
                      pl.BlockSpec((c_out, 1), lambda i, c: (0, 0))],
            out_specs=pl.BlockSpec((1, c_out, r_chunk * wo), lambda i, c: (i, 0, c)),
        ),
        compiler_params=pltpu.CompilerParams(
            dimension_semantics=("parallel", "arbitrary"),
            vmem_limit_bytes=vmem_limit),
        cost_estimate=pl.CostEstimate(
            flops=conv_flops, transcendentals=0,
            bytes_accessed=x_bytes + w_bytes + 2 * c_out * 4 + out_bytes),
    )(x_nhcw, w_scaled, shift)

    return out_flat.reshape(n, c_out, ho_pad, wo)[:, :, :ho, :]


def _reference(x_nchw, weight, bias, gamma, beta, stride, padding, dilation):
    y = jax.lax.conv_general_dilated(
        x_nchw.astype(jnp.float32), weight.astype(jnp.float32),
        window_strides=(stride, stride),
        padding=[(padding, padding), (padding, padding)],
        rhs_dilation=(dilation, dilation),
        dimension_numbers=("NCHW", "OIHW", "NCHW"))
    y = y + bias.reshape(1, -1, 1, 1)
    mean = jnp.mean(y, axis=(0, 2, 3), keepdims=True)
    var = jnp.mean((y - mean) ** 2, axis=(0, 2, 3), keepdims=True)
    y = (y - mean) * jax.lax.rsqrt(var + EPS)
    y = y * gamma.reshape(1, -1, 1, 1) + beta.reshape(1, -1, 1, 1)
    return jnp.maximum(y, 0.0)


if __name__ == "__main__":
    # Module config: Conv_BN_ReLU(in_channels=4, out_channels=8, kernel_size=3,
    #                             stride=1, padding=1)
    in_channels, out_channels, kernel_size = 4, 8, 3
    stride, padding, dilation = 1, 1, 1
    batch, spatial = 2, 16

    key = jax.random.PRNGKey(0)
    kx, kw_, kb = jax.random.split(key, 3)

    x = jax.random.normal(kx, (batch, in_channels, spatial, spatial),
                          dtype=jnp.float32)
    weight = 0.1 * jax.random.normal(
        kw_, (out_channels, in_channels, kernel_size, kernel_size),
        dtype=jnp.float32)
    bias = 0.1 * jax.random.normal(kb, (out_channels,), dtype=jnp.float32)
    gamma = jnp.ones((out_channels,), dtype=jnp.float32)   # BN affine init
    beta = jnp.zeros((out_channels,), dtype=jnp.float32)

    ref = _reference(x, weight, bias, gamma, beta, stride, padding, dilation)

    # f32 MXU path (tight check).
    out = conv_bn_relu(x, weight, bias, gamma, beta,
                       stride=stride, padding=padding, dilation=dilation)
    out = jax.block_until_ready(out)
    assert out.shape == ref.shape
    assert jnp.allclose(out, ref, atol=1e-4, rtol=1e-4), (
        float(jnp.max(jnp.abs(out - ref))))

    # bf16 MXU path (now recommended on v5e/v6e/v7x) with f32 accumulation.
    out_bf16 = conv_bn_relu(x, weight, bias, gamma, beta,
                            stride=stride, padding=padding, dilation=dilation,
                            compute_dtype=jnp.bfloat16)
    out_bf16 = jax.block_until_ready(out_bf16)
    assert jnp.allclose(out_bf16, ref, atol=5e-2, rtol=5e-2), (
        float(jnp.max(jnp.abs(out_bf16 - ref))))

    print("KERNEL_OK")
</pallas_src>

<mosaic_0001>
module attributes {stable_mosaic.version = 11 : i64} {
  func.func @_stats_kernel(%arg0: i32, %arg1: i32, %arg2: i32, %arg3: memref<1x18x4x18xf32, #tpu.memory_space<vmem>>, %arg4: memref<8x36xf32, #tpu.memory_space<vmem>>, %arg5: memref<1x8x2xf32, #tpu.memory_space<vmem>>) attributes {dimension_semantics = [#tpu.dimension_semantics<parallel>, #tpu.dimension_semantics<arbitrary>, #tpu.dimension_semantics<arbitrary>], iteration_bounds = array<i64: 2, 1, 1>, scalar_prefetch = 0 : i64, scratch_operands = 0 : i64, tpu.core_type = #tpu.core_type<tc>, window_params = [{transform_indices = @transform_0, window_bounds = array<i64: 1, 18, 4, 18>}, {pipeline_mode = #tpu.pipeline_mode<synchronous>, transform_indices = @transform_1, window_bounds = array<i64: 8, 36>}, {transform_indices = @transform_2, window_bounds = array<i64: 1, 8, 2>}]} {
    %c0_i32 = arith.constant 0 : i32
    %0 = arith.cmpi eq, %arg1, %c0_i32 : i32
    %c0_i32_0 = arith.constant 0 : i32
    %1 = arith.cmpi eq, %arg2, %c0_i32_0 : i32
    %2 = arith.andi %0, %1 : i1
    %3 = arith.extui %2 : i1 to i32
    %c0_i32_1 = arith.constant 0 : i32
    %4 = arith.cmpi ne, %3, %c0_i32_1 : i32
    scf.if %4 {
      %cst_186 = arith.constant 0.000000e+00 : f32
      %276 = vector.broadcast %cst_186 : f32 to vector<1x8x2xf32>
      %c0_187 = arith.constant 0 : index
      %c0_188 = arith.constant 0 : index
      %c0_189 = arith.constant 0 : index
      %277 = vector.load %arg5[%c0_187, %c0_188, %c0_189] : memref<1x8x2xf32, #tpu.memory_space<vmem>>, vector<1x8x2xf32>
      tpu.vector_store %arg5[%c0_187, %c0_188, %c0_189], %276 {strides = array<i32>} : memref<1x8x2xf32, #tpu.memory_space<vmem>>, vector<1x8x2xf32>,
    } else {
    }
    %c0 = arith.constant 0 : index
    %c0_2 = arith.constant 0 : index
    %c0_3 = arith.constant 0 : index
    %c0_4 = arith.constant 0 : index
    %5 = vector.load %arg3[%c0, %c0_2, %c0_3, %c0_4] : memref<1x18x4x18xf32, #tpu.memory_space<vmem>>, vector<1x1x4x18xf32>
    %6 = vector.shape_cast %5 : vector<1x1x4x18xf32> to vector<4x18xf32>
    %7 = vector.extract_strided_slice %6 {offsets = [0, 0], sizes = [4, 16], strides = [1, 1]} : vector<4x18xf32> to vector<4x16xf32>
    %8 = vector.extract_strided_slice %6 {offsets = [0, 1], sizes = [4, 16], strides = [1, 1]} : vector<4x18xf32> to vector<4x16xf32>
    %9 = vector.extract_strided_slice %6 {offsets = [0, 2], sizes = [4, 16], strides = [1, 1]} : vector<4x18xf32> to vector<4x16xf32>
    %c0_5 = arith.constant 0 : index
    %c1 = arith.constant 1 : index
    %c0_6 = arith.constant 0 : index
    %c0_7 = arith.constant 0 : index
    %10 = vector.load %arg3[%c0_5, %c1, %c0_6, %c0_7] : memref<1x18x4x18xf32, #tpu.memory_space<vmem>>, vector<1x1x4x18xf32>
    %11 = vector.shape_cast %10 : vector<1x1x4x18xf32> to vector<4x18xf32>
    %12 = vector.extract_strided_slice %11 {offsets = [0, 0], sizes = [4, 16], strides = [1, 1]} : vector<4x18xf32> to vector<4x16xf32>
    %13 = vector.extract_strided_slice %11 {offsets = [0, 1], sizes = [4, 16], strides = [1, 1]} : vector<4x18xf32> to vector<4x16xf32>
    %14 = vector.extract_strided_slice %11 {offsets = [0, 2], sizes = [4, 16], strides = [1, 1]} : vector<4x18xf32> to vector<4x16xf32>
    %c0_8 = arith.constant 0 : index
    %c2 = arith.constant 2 : index
    %c0_9 = arith.constant 0 : index
    %c0_10 = arith.constant 0 : index
    %15 = vector.load %arg3[%c0_8, %c2, %c0_9, %c0_10] : memref<1x18x4x18xf32, #tpu.memory_space<vmem>>, vector<1x1x4x18xf32>
    %16 = vector.shape_cast %15 : vector<1x1x4x18xf32> to vector<4x18xf32>
    %17 = vector.extract_strided_slice %16 {offsets = [0, 0], sizes = [4, 16], strides = [1, 1]} : vector<4x18xf32> to vector<4x16xf32>
    %18 = vector.extract_strided_slice %16 {offsets = [0, 1], sizes = [4, 16], strides = [1, 1]} : vector<4x18xf32> to vector<4x16xf32>
    %19 = vector.extract_strided_slice %16 {offsets = [0, 2], sizes = [4, 16], strides = [1, 1]} : vector<4x18xf32> to vector<4x16xf32>
    %20 = tpu.concatenate %7, %8, %9, %12, %13, %14, %17, %18, %19 in 0 : vector<4x16xf32>, vector<4x16xf32>, vector<4x16xf32>, vector<4x16xf32>, vector<4x16xf32>, vector<4x16xf32>, vector<4x16xf32>, vector<4x16xf32>, vector<4x16xf32> -> vector<36x16xf32>
    %c0_11 = arith.constant 0 : index
    %c1_12 = arith.constant 1 : index
    %c0_13 = arith.constant 0 : index
    %c0_14 = arith.constant 0 : index
    %21 = vector.load %arg3[%c0_11, %c1_12, %c0_13, %c0_14] : memref<1x18x4x18xf32, #tpu.memory_space<vmem>>, vector<1x1x4x18xf32>
    %22 = vector.shape_cast %21 : vector<1x1x4x18xf32> to vector<4x18xf32>
    %23 = vector.extract_strided_slice %22 {offsets = [0, 0], sizes = [4, 16], strides = [1, 1]} : vector<4x18xf32> to vector<4x16xf32>
    %24 = vector.extract_strided_slice %22 {offsets = [0, 1], sizes = [4, 16], strides = [1, 1]} : vector<4x18xf32> to vector<4x16xf32>
    %25 = vector.extract_strided_slice %22 {offsets = [0, 2], sizes = [4, 16], strides = [1, 1]} : vector<4x18xf32> to vector<4x16xf32>
    %c0_15 = arith.constant 0 : index
    %c2_16 = arith.constant 2 : index
    %c0_17 = arith.constant 0 : index
    %c0_18 = arith.constant 0 : index
    %26 = vector.load %arg3[%c0_15, %c2_16, %c0_17, %c0_18] : memref<1x18x4x18xf32, #tpu.memory_space<vmem>>, vector<1x1x4x18xf32>
    %27 = vector.shape_cast %26 : vector<1x1x4x18xf32> to vector<4x18xf32>
    %28 = vector.extract_strided_slice %27 {offsets = [0, 0], sizes = [4, 16], strides = [1, 1]} : vector<4x18xf32> to vector<4x16xf32>
    %29 = vector.extract_strided_slice %27 {offsets = [0, 1], sizes = [4, 16], strides = [1, 1]} : vector<4x18xf32> to vector<4x16xf32>
    %30 = vector.extract_strided_slice %27 {offsets = [0, 2], sizes = [4, 16], strides = [1, 1]} : vector<4x18xf32> to vector<4x16xf32>
    %c0_19 = arith.constant 0 : index
    %c3 = arith.constant 3 : index
    %c0_20 = arith.constant 0 : index
    %c0_21 = arith.constant 0 : index
    %31 = vector.load %arg3[%c0_19, %c3, %c0_20, %c0_21] : memref<1x18x4x18xf32, #tpu.memory_space<vmem>>, vector<1x1x4x18xf32>
    %32 = vector.shape_cast %31 : vector<1x1x4x18xf32> to vector<4x18xf32>
    %33 = vector.extract_strided_slice %32 {offsets = [0, 0], sizes = [4, 16], strides = [1, 1]} : vector<4x18xf32> to vector<4x16xf32>
    %34 = vector.extract_strided_slice %32 {offsets = [0, 1], sizes = [4, 16], strides = [1, 1]} : vector<4x18xf32> to vector<4x16xf32>
    %35 = vector.extract_strided_slice %32 {offsets = [0, 2], sizes = [4, 16], strides = [1, 1]} : vector<4x18xf32> to vector<4x16xf32>
    %36 = tpu.concatenate %23, %24, %25, %28, %29, %30, %33, %34, %35 in 0 : vector<4x16xf32>, vector<4x16xf32>, vector<4x16xf32>, vector<4x16xf32>, vector<4x16xf32>, vector<4x16xf32>, vector<4x16xf32>, vector<4x16xf32>, vector<4x16xf32> -> vector<36x16xf32>
    %c0_22 = arith.constant 0 : index
    %c2_23 = arith.constant 2 : index
    %c0_24 = arith.constant 0 : index
    %c0_25 = arith.constant 0 : index
    %37 = vector.load %arg3[%c0_22, %c2_23, %c0_24, %c0_25] : memref<1x18x4x18xf32, #tpu.memory_space<vmem>>, vector<1x1x4x18xf32>
    %38 = vector.shape_cast %37 : vector<1x1x4x18xf32> to vector<4x18xf32>
    %39 = vector.extract_strided_slice %38 {offsets = [0, 0], sizes = [4, 16], strides = [1, 1]} : vector<4x18xf32> to vector<4x16xf32>
    %40 = vector.extract_strided_slice %38 {offsets = [0, 1], sizes = [4, 16], strides = [1, 1]} : vector<4x18xf32> to vector<4x16xf32>
    %41 = vector.extract_strided_slice %38 {offsets = [0, 2], sizes = [4, 16], strides = [1, 1]} : vector<4x18xf32> to vector<4x16xf32>
    %c0_26 = arith.constant 0 : index
    %c3_27 = arith.constant 3 : index
    %c0_28 = arith.constant 0 : index
    %c0_29 = arith.constant 0 : index
    %42 = vector.load %arg3[%c0_26, %c3_27, %c0_28, %c0_29] : memref<1x18x4x18xf32, #tpu.memory_space<vmem>>, vector<1x1x4x18xf32>
    %43 = vector.shape_cast %42 : vector<1x1x4x18xf32> to vector<4x18xf32>
    %44 = vector.extract_strided_slice %43 {offsets = [0, 0], sizes = [4, 16], strides = [1, 1]} : vector<4x18xf32> to vector<4x16xf32>
    %45 = vector.extract_strided_slice %43 {offsets = [0, 1], sizes = [4, 16], strides = [1, 1]} : vector<4x18xf32> to vector<4x16xf32>
    %46 = vector.extract_strided_slice %43 {offsets = [0, 2], sizes = [4, 16], strides = [1, 1]} : vector<4x18xf32> to vector<4x16xf32>
    %c0_30 = arith.constant 0 : index
    %c4 = arith.constant 4 : index
    %c0_31 = arith.constant 0 : index
    %c0_32 = arith.constant 0 : index
    %47 = vector.load %arg3[%c0_30, %c4, %c0_31, %c0_32] : memref<1x18x4x18xf32, #tpu.memory_space<vmem>>, vector<1x1x4x18xf32>
    %48 = vector.shape_cast %47 : vector<1x1x4x18xf32> to vector<4x18xf32>
    %49 = vector.extract_strided_slice %48 {offsets = [0, 0], sizes = [4, 16], strides = [1, 1]} : vector<4x18xf32> to vector<4x16xf32>
    %50 = vector.extract_strided_slice %48 {offsets = [0, 1], sizes = [4, 16], strides = [1, 1]} : vector<4x18xf32> to vector<4x16xf32>
    %51 = vector.extract_strided_slice %48 {offsets = [0, 2], sizes = [4, 16], strides = [1, 1]} : vector<4x18xf32> to vector<4x16xf32>
    %52 = tpu.concatenate %39, %40, %41, %44, %45, %46, %49, %50, %51 in 0 : vector<4x16xf32>, vector<4x16xf32>, vector<4x16xf32>, vector<4x16xf32>, vector<4x16xf32>, vector<4x16xf32>, vector<4x16xf32>, vector<4x16xf32>, vector<4x16xf32> -> vector<36x16xf32>
    %c0_33 = arith.constant 0 : index
    %c3_34 = arith.constant 3 : index
    %c0_35 = arith.constant 0 : index
    %c0_36 = arith.constant 0 : index
    %53 = vector.load %arg3[%c0_33, %c3_34, %c0_35, %c0_36] : memref<1x18x4x18xf32, #tpu.memory_space<vmem>>, vector<1x1x4x18xf32>
    %54 = vector.shape_cast %53 : vector<1x1x4x18xf32> to vector<4x18xf32>
    %55 = vector.extract_strided_slice %54 {offsets = [0, 0], sizes = [4, 16], strides = [1, 1]} : vector<4x18xf32> to vector<4x16xf32>
    %56 = vector.extract_strided_slice %54 {offsets = [0, 1], sizes = [4, 16], strides = [1, 1]} : vector<4x18xf32> to vector<4x16xf32>
    %57 = vector.extract_strided_slice %54 {offsets = [0, 2], sizes = [4, 16], strides = [1, 1]} : vector<4x18xf32> to vector<4x16xf32>
    %c0_37 = arith.constant 0 : index
    %c4_38 = arith.constant 4 : index
    %c0_39 = arith.constant 0 : index
    %c0_40 = arith.constant 0 : index
    %58 = vector.load %arg3[%c0_37, %c4_38, %c0_39, %c0_40] : memref<1x18x4x18xf32, #tpu.memory_space<vmem>>, vector<1x1x4x18xf32>
    %59 = vector.shape_cast %58 : vector<1x1x4x18xf32> to vector<4x18xf32>
    %60 = vector.extract_strided_slice %59 {offsets = [0, 0], sizes = [4, 16], strides = [1, 1]} : vector<4x18xf32> to vector<4x16xf32>
    %61 = vector.extract_strided_slice %59 {offsets = [0, 1], sizes = [4, 16], strides = [1, 1]} : vector<4x18xf32> to vector<4x16xf32>
    %62 = vector.extract_strided_slice %59 {offsets = [0, 2], sizes = [4, 16], strides = [1, 1]} : vector<4x18xf32> to vector<4x16xf32>
    %c0_41 = arith.constant 0 : index
    %c5 = arith.constant 5 : index
    %c0_42 = arith.constant 0 : index
    %c0_43 = arith.constant 0 : index
    %63 = vector.load %arg3[%c0_41, %c5, %c0_42, %c0_43] : memref<1x18x4x18xf32, #tpu.memory_space<vmem>>, vector<1x1x4x18xf32>
    %64 = vector.shape_cast %63 : vector<1x1x4x18xf32> to vector<4x18xf32>
    %65 = vector.extract_strided_slice %64 {offsets = [0, 0], sizes = [4, 16], strides = [1, 1]} : vector<4x18xf32> to vector<4x16xf32>
    %66 = vector.extract_strided_slice %64 {offsets = [0, 1], sizes = [4, 16], strides = [1, 1]} : vector<4x18xf32> to vector<4x16xf32>
    %67 = vector.extract_strided_slice %64 {offsets = [0, 2], sizes = [4, 16], strides = [1, 1]} : vector<4x18xf32> to vector<4x16xf32>
    %68 = tpu.concatenate %55, %56, %57, %60, %61, %62, %65, %66, %67 in 0 : vector<4x16xf32>, vector<4x16xf32>, vector<4x16xf32>, vector<4x16xf32>, vector<4x16xf32>, vector<4x16xf32>, vector<4x16xf32>, vector<4x16xf32>, vector<4x16xf32> -> vector<36x16xf32>
    %c0_44 = arith.constant 0 : index
    %c4_45 = arith.constant 4 : index
    %c0_46 = arith.constant 0 : index
    %c0_47 = arith.constant 0 : index
    %69 = vector.load %arg3[%c0_44, %c4_45, %c0_46, %c0_47] : memref<1x18x4x18xf32, #tpu.memory_space<vmem>>, vector<1x1x4x18xf32>
    %70 = vector.shape_cast %69 : vector<1x1x4x18xf32> to vector<4x18xf32>
    %71 = vector.extract_strided_slice %70 {offsets = [0, 0], sizes = [4, 16], strides = [1, 1]} : vector<4x18xf32> to vector<4x16xf32>
    %72 = vector.extract_strided_slice %70 {offsets = [0, 1], sizes = [4, 16], strides = [1, 1]} : vector<4x18xf32> to vector<4x16xf32>
    %73 = vector.extract_strided_slice %70 {offsets = [0, 2], sizes = [4, 16], strides = [1, 1]} : vector<4x18xf32> to vector<4x16xf32>
    %c0_48 = arith.constant 0 : index
    %c5_49 = arith.constant 5 : index
    %c0_50 = arith.constant 0 : index
    %c0_51 = arith.constant 0 : index
    %74 = vector.load %arg3[%c0_48, %c5_49, %c0_50, %c0_51] : memref<1x18x4x18xf32, #tpu.memory_space<vmem>>, vector<1x1x4x18xf32>
    %75 = vector.shape_cast %74 : vector<1x1x4x18xf32> to vector<4x18xf32>
    %76 = vector.extract_strided_slice %75 {offsets = [0, 0], sizes = [4, 16], strides = [1, 1]} : vector<4x18xf32> to vector<4x16xf32>
    %77 = vector.extract_strided_slice %75 {offsets = [0, 1], sizes = [4, 16], strides = [1, 1]} : vector<4x18xf32> to vector<4x16xf32>
    %78 = vector.extract_strided_slice %75 {offsets = [0, 2], sizes = [4, 16], strides = [1, 1]} : vector<4x18xf32> to vector<4x16xf32>
    %c0_52 = arith.constant 0 : index
    %c6 = arith.constant 6 : index
    %c0_53 = arith.constant 0 : index
    %c0_54 = arith.constant 0 : index
    %79 = vector.load %arg3[%c0_52, %c6, %c0_53, %c0_54] : memref<1x18x4x18xf32, #tpu.memory_space<vmem>>, vector<1x1x4x18xf32>
    %80 = vector.shape_cast %79 : vector<1x1x4x18xf32> to vector<4x18xf32>
    %81 = vector.extract_strided_slice %80 {offsets = [0, 0], sizes = [4, 16], strides = [1, 1]} : vector<4x18xf32> to vector<4x16xf32>
    %82 = vector.extract_strided_slice %80 {offsets = [0, 1], sizes = [4, 16], strides = [1, 1]} : vector<4x18xf32> to vector<4x16xf32>
    %83 = vector.extract_strided_slice %80 {offsets = [0, 2], sizes = [4, 16], strides = [1, 1]} : vector<4x18xf32> to vector<4x16xf32>
    %84 = tpu.concatenate %71, %72, %73, %76, %77, %78, %81, %82, %83 in 0 : vector<4x16xf32>, vector<4x16xf32>, vector<4x16xf32>, vector<4x16xf32>, vector<4x16xf32>, vector<4x16xf32>, vector<4x16xf32>, vector<4x16xf32>, vector<4x16xf32> -> vector<36x16xf32>
    %c0_55 = arith.constant 0 : index
    %c5_56 = arith.constant 5 : index
    %c0_57 = arith.constant 0 : index
    %c0_58 = arith.constant 0 : index
    %85 = vector.load %arg3[%c0_55, %c5_56, %c0_57, %c0_58] : memref<1x18x4x18xf32, #tpu.memory_space<vmem>>, vector<1x1x4x18xf32>
    %86 = vector.shape_cast %85 : vector<1x1x4x18xf32> to vector<4x18xf32>
    %87 = vector.extract_strided_slice %86 {offsets = [0, 0], sizes = [4, 16], strides = [1, 1]} : vector<4x18xf32> to vector<4x16xf32>
    %88 = vector.extract_strided_slice %86 {offsets = [0, 1], sizes = [4, 16], strides = [1, 1]} : vector<4x18xf32> to vector<4x16xf32>
    %89 = vector.extract_strided_slice %86 {offsets = [0, 2], sizes = [4, 16], strides = [1, 1]} : vector<4x18xf32> to vector<4x16xf32>
    %c0_59 = arith.constant 0 : index
    %c6_60 = arith.constant 6 : index
    %c0_61 = arith.constant 0 : index
    %c0_62 = arith.constant 0 : index
    %90 = vector.load %arg3[%c0_59, %c6_60, %c0_61, %c0_62] : memref<1x18x4x18xf32, #tpu.memory_space<vmem>>, vector<1x1x4x18xf32>
    %91 = vector.shape_cast %90 : vector<1x1x4x18xf32> to vector<4x18xf32>
    %92 = vector.extract_strided_slice %91 {offsets = [0, 0], sizes = [4, 16], strides = [1, 1]} : vector<4x18xf32> to vector<4x16xf32>
    %93 = vector.extract_strided_slice %91 {offsets = [0, 1], sizes = [4, 16], strides = [1, 1]} : vector<4x18xf32> to vector<4x16xf32>
    %94 = vector.extract_strided_slice %91 {offsets = [0, 2], sizes = [4, 16], strides = [1, 1]} : vector<4x18xf32> to vector<4x16xf32>
    %c0_63 = arith.constant 0 : index
    %c7 = arith.constant 7 : index
    %c0_64 = arith.constant 0 : index
    %c0_65 = arith.constant 0 : index
    %95 = vector.load %arg3[%c0_63, %c7, %c0_64, %c0_65] : memref<1x18x4x18xf32, #tpu.memory_space<vmem>>, vector<1x1x4x18xf32>
    %96 = vector.shape_cast %95 : vector<1x1x4x18xf32> to vector<4x18xf32>
    %97 = vector.extract_strided_slice %96 {offsets = [0, 0], sizes = [4, 16], strides = [1, 1]} : vector<4x18xf32> to vector<4x16xf32>
    %98 = vector.extract_strided_slice %96 {offsets = [0, 1], sizes = [4, 16], strides = [1, 1]} : vector<4x18xf32> to vector<4x16xf32>
    %99 = vector.extract_strided_slice %96 {offsets = [0, 2], sizes = [4, 16], strides = [1, 1]} : vector<4x18xf32> to vector<4x16xf32>
    %100 = tpu.concatenate %87, %88, %89, %92, %93, %94, %97, %98, %99 in 0 : vector<4x16xf32>, vector<4x16xf32>, vector<4x16xf32>, vector<4x16xf32>, vector<4x16xf32>, vector<4x16xf32>, vector<4x16xf32>, vector<4x16xf32>, vector<4x16xf32> -> vector<36x16xf32>
    %c0_66 = arith.constant 0 : index
    %c6_67 = arith.constant 6 : index
    %c0_68 = arith.constant 0 : index
    %c0_69 = arith.constant 0 : index
    %101 = vector.load %arg3[%c0_66, %c6_67, %c0_68, %c0_69] : memref<1x18x4x18xf32, #tpu.memory_space<vmem>>, vector<1x1x4x18xf32>
    %102 = vector.shape_cast %101 : vector<1x1x4x18xf32> to vector<4x18xf32>
    %103 = vector.extract_strided_slice %102 {offsets = [0, 0], sizes = [4, 16], strides = [1, 1]} : vector<4x18xf32> to vector<4x16xf32>
    %104 = vector.extract_strided_slice %102 {offsets = [0, 1], sizes = [4, 16], strides = [1, 1]} : vector<4x18xf32> to vector<4x16xf32>
    %105 = vector.extract_strided_slice %102 {offsets = [0, 2], sizes = [4, 16], strides = [1, 1]} : vector<4x18xf32> to vector<4x16xf32>
    %c0_70 = arith.constant 0 : index
    %c7_71 = arith.constant 7 : index
    %c0_72 = arith.constant 0 : index
    %c0_73 = arith.constant 0 : index
    %106 = vector.load %arg3[%c0_70, %c7_71, %c0_72, %c0_73] : memref<1x18x4x18xf32, #tpu.memory_space<vmem>>, vector<1x1x4x18xf32>
    %107 = vector.shape_cast %106 : vector<1x1x4x18xf32> to vector<4x18xf32>
    %108 = vector.extract_strided_slice %107 {offsets = [0, 0], sizes = [4, 16], strides = [1, 1]} : vector<4x18xf32> to vector<4x16xf32>
    %109 = vector.extract_strided_slice %107 {offsets = [0, 1], sizes = [4, 16], strides = [1, 1]} : vector<4x18xf32> to vector<4x16xf32>
    %110 = vector.extract_strided_slice %107 {offsets = [0, 2], sizes = [4, 16], strides = [1, 1]} : vector<4x18xf32> to vector<4x16xf32>
    %c0_74 = arith.constant 0 : index
    %c8 = arith.constant 8 : index
    %c0_75 = arith.constant 0 : index
    %c0_76 = arith.constant 0 : index
    %111 = vector.load %arg3[%c0_74, %c8, %c0_75, %c0_76] : memref<1x18x4x18xf32, #tpu.memory_space<vmem>>, vector<1x1x4x18xf32>
    %112 = vector.shape_cast %111 : vector<1x1x4x18xf32> to vector<4x18xf32>
    %113 = vector.extract_strided_slice %112 {offsets = [0, 0], sizes = [4, 16], strides = [1, 1]} : vector<4x18xf32> to vector<4x16xf32>
    %114 = vector.extract_strided_slice %112 {offsets = [0, 1], sizes = [4, 16], strides = [1, 1]} : vector<4x18xf32> to vector<4x16xf32>
    %115 = vector.extract_strided_slice %112 {offsets = [0, 2], sizes = [4, 16], strides = [1, 1]} : vector<4x18xf32> to vector<4x16xf32>
    %116 = tpu.concatenate %103, %104, %105, %108, %109, %110, %113, %114, %115 in 0 : vector<4x16xf32>, vector<4x16xf32>, vector<4x16xf32>, vector<4x16xf32>, vector<4x16xf32>, vector<4x16xf32>, vector<4x16xf32>, vector<4x16xf32>, vector<4x16xf32> -> vector<36x16xf32>
    %c0_77 = arith.constant 0 : index
    %c7_78 = arith.constant 7 : index
    %c0_79 = arith.constant 0 : index
    %c0_80 = arith.constant 0 : index
    %117 = vector.load %arg3[%c0_77, %c7_78, %c0_79, %c0_80] : memref<1x18x4x18xf32, #tpu.memory_space<vmem>>, vector<1x1x4x18xf32>
    %118 = vector.shape_cast %117 : vector<1x1x4x18xf32> to vector<4x18xf32>
    %119 = vector.extract_strided_slice %118 {offsets = [0, 0], sizes = [4, 16], strides = [1, 1]} : vector<4x18xf32> to vector<4x16xf32>
    %120 = vector.extract_strided_slice %118 {offsets = [0, 1], sizes = [4, 16], strides = [1, 1]} : vector<4x18xf32> to vector<4x16xf32>
    %121 = vector.extract_strided_slice %118 {offsets = [0, 2], sizes = [4, 16], strides = [1, 1]} : vector<4x18xf32> to vector<4x16xf32>
    %c0_81 = arith.constant 0 : index
    %c8_82 = arith.constant 8 : index
    %c0_83 = arith.constant 0 : index
    %c0_84 = arith.constant 0 : index
    %122 = vector.load %arg3[%c0_81, %c8_82, %c0_83, %c0_84] : memref<1x18x4x18xf32, #tpu.memory_space<vmem>>, vector<1x1x4x18xf32>
    %123 = vector.shape_cast %122 : vector<1x1x4x18xf32> to vector<4x18xf32>
    %124 = vector.extract_strided_slice %123 {offsets = [0, 0], sizes = [4, 16], strides = [1, 1]} : vector<4x18xf32> to vector<4x16xf32>
    %125 = vector.extract_strided_slice %123 {offsets = [0, 1], sizes = [4, 16], strides = [1, 1]} : vector<4x18xf32> to vector<4x16xf32>
    %126 = vector.extract_strided_slice %123 {offsets = [0, 2], sizes = [4, 16], strides = [1, 1]} : vector<4x18xf32> to vector<4x16xf32>
    %c0_85 = arith.constant 0 : index
    %c9 = arith.constant 9 : index
    %c0_86 = arith.constant 0 : index
    %c0_87 = arith.constant 0 : index
    %127 = vector.load %arg3[%c0_85, %c9, %c0_86, %c0_87] : memref<1x18x4x18xf32, #tpu.memory_space<vmem>>, vector<1x1x4x18xf32>
    %128 = vector.shape_cast %127 : vector<1x1x4x18xf32> to vector<4x18xf32>
    %129 = vector.extract_strided_slice %128 {offsets = [0, 0], sizes = [4, 16], strides = [1, 1]} : vector<4x18xf32> to vector<4x16xf32>
    %130 = vector.extract_strided_slice %128 {offsets = [0, 1], sizes = [4, 16], strides = [1, 1]} : vector<4x18xf32> to vector<4x16xf32>
    %131 = vector.extract_strided_slice %128 {offsets = [0, 2], sizes = [4, 16], strides = [1, 1]} : vector<4x18xf32> to vector<4x16xf32>
    %132 = tpu.concatenate %119, %120, %121, %124, %125, %126, %129, %130, %131 in 0 : vector<4x16xf32>, vector<4x16xf32>, vector<4x16xf32>, vector<4x16xf32>, vector<4x16xf32>, vector<4x16xf32>, vector<4x16xf32>, vector<4x16xf32>, vector<4x16xf32> -> vector<36x16xf32>
    %c0_88 = arith.constant 0 : index
    %c8_89 = arith.constant 8 : index
    %c0_90 = arith.constant 0 : index
    %c0_91 = arith.constant 0 : index
    %133 = vector.load %arg3[%c0_88, %c8_89, %c0_90, %c0_91] : memref<1x18x4x18xf32, #tpu.memory_space<vmem>>, vector<1x1x4x18xf32>
    %134 = vector.shape_cast %133 : vector<1x1x4x18xf32> to vector<4x18xf32>
    %135 = vector.extract_strided_slice %134 {offsets = [0, 0], sizes = [4, 16], strides = [1, 1]} : vector<4x18xf32> to vector<4x16xf32>
    %136 = vector.extract_strided_slice %134 {offsets = [0, 1], sizes = [4, 16], strides = [1, 1]} : vector<4x18xf32> to vector<4x16xf32>
    %137 = vector.extract_strided_slice %134 {offsets = [0, 2], sizes = [4, 16], strides = [1, 1]} : vector<4x18xf32> to vector<4x16xf32>
    %c0_92 = arith.constant 0 : index
    %c9_93 = arith.constant 9 : index
    %c0_94 = arith.constant 0 : index
    %c0_95 = arith.constant 0 : index
    %138 = vector.load %arg3[%c0_92, %c9_93, %c0_94, %c0_95] : memref<1x18x4x18xf32, #tpu.memory_space<vmem>>, vector<1x1x4x18xf32>
    %139 = vector.shape_cast %138 : vector<1x1x4x18xf32> to vector<4x18xf32>
    %140 = vector.extract_strided_slice %139 {offsets = [0, 0], sizes = [4, 16], strides = [1, 1]} : vector<4x18xf32> to vector<4x16xf32>
    %141 = vector.extract_strided_slice %139 {offsets = [0, 1], sizes = [4, 16], strides = [1, 1]} : vector<4x18xf32> to vector<4x16xf32>
    %142 = vector.extract_strided_slice %139 {offsets = [0, 2], sizes = [4, 16], strides = [1, 1]} : vector<4x18xf32> to vector<4x16xf32>
    %c0_96 = arith.constant 0 : index
    %c10 = arith.constant 10 : index
    %c0_97 = arith.constant 0 : index
    %c0_98 = arith.constant 0 : index
    %143 = vector.load %arg3[%c0_96, %c10, %c0_97, %c0_98] : memref<1x18x4x18xf32, #tpu.memory_space<vmem>>, vector<1x1x4x18xf32>
    %144 = vector.shape_cast %143 : vector<1x1x4x18xf32> to vector<4x18xf32>
    %145 = vector.extract_strided_slice %144 {offsets = [0, 0], sizes = [4, 16], strides = [1, 1]} : vector<4x18xf32> to vector<4x16xf32>
    %146 = vector.extract_strided_slice %144 {offsets = [0, 1], sizes = [4, 16], strides = [1, 1]} : vector<4x18xf32> to vector<4x16xf32>
    %147 = vector.extract_strided_slice %144 {offsets = [0, 2], sizes = [4, 16], strides = [1, 1]} : vector<4x18xf32> to vector<4x16xf32>
    %148 = tpu.concatenate %135, %136, %137, %140, %141, %142, %145, %146, %147 in 0 : vector<4x16xf32>, vector<4x16xf32>, vector<4x16xf32>, vector<4x16xf32>, vector<4x16xf32>, vector<4x16xf32>, vector<4x16xf32>, vector<4x16xf32>, vector<4x16xf32> -> vector<36x16xf32>
    %c0_99 = arith.constant 0 : index
    %c9_100 = arith.constant 9 : index
    %c0_101 = arith.constant 0 : index
    %c0_102 = arith.constant 0 : index
    %149 = vector.load %arg3[%c0_99, %c9_100, %c0_101, %c0_102] : memref<1x18x4x18xf32, #tpu.memory_space<vmem>>, vector<1x1x4x18xf32>
    %150 = vector.shape_cast %149 : vector<1x1x4x18xf32> to vector<4x18xf32>
    %151 = vector.extract_strided_slice %150 {offsets = [0, 0], sizes = [4, 16], strides = [1, 1]} : vector<4x18xf32> to vector<4x16xf32>
    %152 = vector.extract_strided_slice %150 {offsets = [0, 1], sizes = [4, 16], strides = [1, 1]} : vector<4x18xf32> to vector<4x16xf32>
    %153 = vector.extract_strided_slice %150 {offsets = [0, 2], sizes = [4, 16], strides = [1, 1]} : vector<4x18xf32> to vector<4x16xf32>
    %c0_103 = arith.constant 0 : index
    %c10_104 = arith.constant 10 : index
    %c0_105 = arith.constant 0 : index
    %c0_106 = arith.constant 0 : index
    %154 = vector.load %arg3[%c0_103, %c10_104, %c0_105, %c0_106] : memref<1x18x4x18xf32, #tpu.memory_space<vmem>>, vector<1x1x4x18xf32>
    %155 = vector.shape_cast %154 : vector<1x1x4x18xf32> to vector<4x18xf32>
    %156 = vector.extract_strided_slice %155 {offsets = [0, 0], sizes = [4, 16], strides = [1, 1]} : vector<4x18xf32> to vector<4x16xf32>
    %157 = vector.extract_strided_slice %155 {offsets = [0, 1], sizes = [4, 16], strides = [1, 1]} : vector<4x18xf32> to vector<4x16xf32>
    %158 = vector.extract_strided_slice %155 {offsets = [0, 2], sizes = [4, 16], strides = [1, 1]} : vector<4x18xf32> to vector<4x16xf32>
    %c0_107 = arith.constant 0 : index
    %c11 = arith.constant 11 : index
    %c0_108 = arith.constant 0 : index
    %c0_109 = arith.constant 0 : index
    %159 = vector.load %arg3[%c0_107, %c11, %c0_108, %c0_109] : memref<1x18x4x18xf32, #tpu.memory_space<vmem>>, vector<1x1x4x18xf32>
    %160 = vector.shape_cast %159 : vector<1x1x4x18xf32> to vector<4x18xf32>
    %161 = vector.extract_strided_slice %160 {offsets = [0, 0], sizes = [4, 16], strides = [1, 1]} : vector<4x18xf32> to vector<4x16xf32>
    %162 = vector.extract_strided_slice %160 {offsets = [0, 1], sizes = [4, 16], strides = [1, 1]} : vector<4x18xf32> to vector<4x16xf32>
    %163 = vector.extract_strided_slice %160 {offsets = [0, 2], sizes = [4, 16], strides = [1, 1]} : vector<4x18xf32> to vector<4x16xf32>
    %164 = tpu.concatenate %151, %152, %153, %156, %157, %158, %161, %162, %163 in 0 : vector<4x16xf32>, vector<4x16xf32>, vector<4x16xf32>, vector<4x16xf32>, vector<4x16xf32>, vector<4x16xf32>, vector<4x16xf32>, vector<4x16xf32>, vector<4x16xf32> -> vector<36x16xf32>
    %c0_110 = arith.constant 0 : index
    %c10_111 = arith.constant 10 : index
    %c0_112 = arith.constant 0 : index
    %c0_113 = arith.constant 0 : index
    %165 = vector.load %arg3[%c0_110, %c10_111, %c0_112, %c0_113] : memref<1x18x4x18xf32, #tpu.memory_space<vmem>>, vector<1x1x4x18xf32>
    %166 = vector.shape_cast %165 : vector<1x1x4x18xf32> to vector<4x18xf32>
    %167 = vector.extract_strided_slice %166 {offsets = [0, 0], sizes = [4, 16], strides = [1, 1]} : vector<4x18xf32> to vector<4x16xf32>
    %168 = vector.extract_strided_slice %166 {offsets = [0, 1], sizes = [4, 16], strides = [1, 1]} : vector<4x18xf32> to vector<4x16xf32>
    %169 = vector.extract_strided_slice %166 {offsets = [0, 2], sizes = [4, 16], strides = [1, 1]} : vector<4x18xf32> to vector<4x16xf32>
    %c0_114 = arith.constant 0 : index
    %c11_115 = arith.constant 11 : index
    %c0_116 = arith.constant 0 : index
    %c0_117 = arith.constant 0 : index
    %170 = vector.load %arg3[%c0_114, %c11_115, %c0_116, %c0_117] : memref<1x18x4x18xf32, #tpu.memory_space<vmem>>, vector<1x1x4x18xf32>
    %171 = vector.shape_cast %170 : vector<1x1x4x18xf32> to vector<4x18xf32>
    %172 = vector.extract_strided_slice %171 {offsets = [0, 0], sizes = [4, 16], strides = [1, 1]} : vector<4x18xf32> to vector<4x16xf32>
    %173 = vector.extract_strided_slice %171 {offsets = [0, 1], sizes = [4, 16], strides = [1, 1]} : vector<4x18xf32> to vector<4x16xf32>
    %174 = vector.extract_strided_slice %171 {offsets = [0, 2], sizes = [4, 16], strides = [1, 1]} : vector<4x18xf32> to vector<4x16xf32>
    %c0_118 = arith.constant 0 : index
    %c12 = arith.constant 12 : index
    %c0_119 = arith.constant 0 : index
    %c0_120 = arith.constant 0 : index
    %175 = vector.load %arg3[%c0_118, %c12, %c0_119, %c0_120] : memref<1x18x4x18xf32, #tpu.memory_space<vmem>>, vector<1x1x4x18xf32>
    %176 = vector.shape_cast %175 : vector<1x1x4x18xf32> to vector<4x18xf32>
    %177 = vector.extract_strided_slice %176 {offsets = [0, 0], sizes = [4, 16], strides = [1, 1]} : vector<4x18xf32> to vector<4x16xf32>
    %178 = vector.extract_strided_slice %176 {offsets = [0, 1], sizes = [4, 16], strides = [1, 1]} : vector<4x18xf32> to vector<4x16xf32>
    %179 = vector.extract_strided_slice %176 {offsets = [0, 2], sizes = [4, 16], strides = [1, 1]} : vector<4x18xf32> to vector<4x16xf32>
    %180 = tpu.concatenate %167, %168, %169, %172, %173, %174, %177, %178, %179 in 0 : vector<4x16xf32>, vector<4x16xf32>, vector<4x16xf32>, vector<4x16xf32>, vector<4x16xf32>, vector<4x16xf32>, vector<4x16xf32>, vector<4x16xf32>, vector<4x16xf32> -> vector<36x16xf32>
    %c0_121 = arith.constant 0 : index
    %c11_122 = arith.constant 11 : index
    %c0_123 = arith.constant 0 : index
    %c0_124 = arith.constant 0 : index
    %181 = vector.load %arg3[%c0_121, %c11_122, %c0_123, %c0_124] : memref<1x18x4x18xf32, #tpu.memory_space<vmem>>, vector<1x1x4x18xf32>
    %182 = vector.shape_cast %181 : vector<1x1x4x18xf32> to vector<4x18xf32>
    %183 = vector.extract_strided_slice %182 {offsets = [0, 0], sizes = [4, 16], strides = [1, 1]} : vector<4x18xf32> to vector<4x16xf32>
    %184 = vector.extract_strided_slice %182 {offsets = [0, 1], sizes = [4, 16], strides = [1, 1]} : vector<4x18xf32> to vector<4x16xf32>
    %185 = vector.extract_strided_slice %182 {offsets = [0, 2], sizes = [4, 16], strides = [1, 1]} : vector<4x18xf32> to vector<4x16xf32>
    %c0_125 = arith.constant 0 : index
    %c12_126 = arith.constant 12 : index
    %c0_127 = arith.constant 0 : index
    %c0_128 = arith.constant 0 : index
    %186 = vector.load %arg3[%c0_125, %c12_126, %c0_127, %c0_128] : memref<1x18x4x18xf32, #tpu.memory_space<vmem>>, vector<1x1x4x18xf32>
    %187 = vector.shape_cast %186 : vector<1x1x4x18xf32> to vector<4x18xf32>
    %188 = vector.extract_strided_slice %187 {offsets = [0, 0], sizes = [4, 16], strides = [1, 1]} : vector<4x18xf32> to vector<4x16xf32>
    %189 = vector.extract_strided_slice %187 {offsets = [0, 1], sizes = [4, 16], strides = [1, 1]} : vector<4x18xf32> to vector<4x16xf32>
    %190 = vector.extract_strided_slice %187 {offsets = [0, 2], sizes = [4, 16], strides = [1, 1]} : vector<4x18xf32> to vector<4x16xf32>
    %c0_129 = arith.constant 0 : index
    %c13 = arith.constant 13 : index
    %c0_130 = arith.constant 0 : index
    %c0_131 = arith.constant 0 : index
    %191 = vector.load %arg3[%c0_129, %c13, %c0_130, %c0_131] : memref<1x18x4x18xf32, #tpu.memory_space<vmem>>, vector<1x1x4x18xf32>
    %192 = vector.shape_cast %191 : vector<1x1x4x18xf32> to vector<4x18xf32>
    %193 = vector.extract_strided_slice %192 {offsets = [0, 0], sizes = [4, 16], strides = [1, 1]} : vector<4x18xf32> to vector<4x16xf32>
    %194 = vector.extract_strided_slice %192 {offsets = [0, 1], sizes = [4, 16], strides = [1, 1]} : vector<4x18xf32> to vector<4x16xf32>
    %195 = vector.extract_strided_slice %192 {offsets = [0, 2], sizes = [4, 16], strides = [1, 1]} : vector<4x18xf32> to vector<4x16xf32>
    %196 = tpu.concatenate %183, %184, %185, %188, %189, %190, %193, %194, %195 in 0 : vector<4x16xf32>, vector<4x16xf32>, vector<4x16xf32>, vector<4x16xf32>, vector<4x16xf32>, vector<4x16xf32>, vector<4x16xf32>, vector<4x16xf32>, vector<4x16xf32> -> vector<36x16xf32>
    %c0_132 = arith.constant 0 : index
    %c12_133 = arith.constant 12 : index
    %c0_134 = arith.constant 0 : index
    %c0_135 = arith.constant 0 : index
    %197 = vector.load %arg3[%c0_132, %c12_133, %c0_134, %c0_135] : memref<1x18x4x18xf32, #tpu.memory_space<vmem>>, vector<1x1x4x18xf32>
    %198 = vector.shape_cast %197 : vector<1x1x4x18xf32> to vector<4x18xf32>
    %199 = vector.extract_strided_slice %198 {offsets = [0, 0], sizes = [4, 16], strides = [1, 1]} : vector<4x18xf32> to vector<4x16xf32>
    %200 = vector.extract_strided_slice %198 {offsets = [0, 1], sizes = [4, 16], strides = [1, 1]} : vector<4x18xf32> to vector<4x16xf32>
    %201 = vector.extract_strided_slice %198 {offsets = [0, 2], sizes = [4, 16], strides = [1, 1]} : vector<4x18xf32> to vector<4x16xf32>
    %c0_136 = arith.constant 0 : index
    %c13_137 = arith.constant 13 : index
    %c0_138 = arith.constant 0 : index
    %c0_139 = arith.constant 0 : index
    %202 = vector.load %arg3[%c0_136, %c13_137, %c0_138, %c0_139] : memref<1x18x4x18xf32, #tpu.memory_space<vmem>>, vector<1x1x4x18xf32>
    %203 = vector.shape_cast %202 : vector<1x1x4x18xf32> to vector<4x18xf32>
    %204 = vector.extract_strided_slice %203 {offsets = [0, 0], sizes = [4, 16], strides = [1, 1]} : vector<4x18xf32> to vector<4x16xf32>
    %205 = vector.extract_strided_slice %203 {offsets = [0, 1], sizes = [4, 16], strides = [1, 1]} : vector<4x18xf32> to vector<4x16xf32>
    %206 = vector.extract_strided_slice %203 {offsets = [0, 2], sizes = [4, 16], strides = [1, 1]} : vector<4x18xf32> to vector<4x16xf32>
    %c0_140 = arith.constant 0 : index
    %c14 = arith.constant 14 : index
    %c0_141 = arith.constant 0 : index
    %c0_142 = arith.constant 0 : index
    %207 = vector.load %arg3[%c0_140, %c14, %c0_141, %c0_142] : memref<1x18x4x18xf32, #tpu.memory_space<vmem>>, vector<1x1x4x18xf32>
    %208 = vector.shape_cast %207 : vector<1x1x4x18xf32> to vector<4x18xf32>
    %209 = vector.extract_strided_slice %208 {offsets = [0, 0], sizes = [4, 16], strides = [1, 1]} : vector<4x18xf32> to vector<4x16xf32>
    %210 = vector.extract_strided_slice %208 {offsets = [0, 1], sizes = [4, 16], strides = [1, 1]} : vector<4x18xf32> to vector<4x16xf32>
    %211 = vector.extract_strided_slice %208 {offsets = [0, 2], sizes = [4, 16], strides = [1, 1]} : vector<4x18xf32> to vector<4x16xf32>
    %212 = tpu.concatenate %199, %200, %201, %204, %205, %206, %209, %210, %211 in 0 : vector<4x16xf32>, vector<4x16xf32>, vector<4x16xf32>, vector<4x16xf32>, vector<4x16xf32>, vector<4x16xf32>, vector<4x16xf32>, vector<4x16xf32>, vector<4x16xf32> -> vector<36x16xf32>
    %c0_143 = arith.constant 0 : index
    %c13_144 = arith.constant 13 : index
    %c0_145 = arith.constant 0 : index
    %c0_146 = arith.constant 0 : index
    %213 = vector.load %arg3[%c0_143, %c13_144, %c0_145, %c0_146] : memref<1x18x4x18xf32, #tpu.memory_space<vmem>>, vector<1x1x4x18xf32>
    %214 = vector.shape_cast %213 : vector<1x1x4x18xf32> to vector<4x18xf32>
    %215 = vector.extract_strided_slice %214 {offsets = [0, 0], sizes = [4, 16], strides = [1, 1]} : vector<4x18xf32> to vector<4x16xf32>
    %216 = vector.extract_strided_slice %214 {offsets = [0, 1], sizes = [4, 16], strides = [1, 1]} : vector<4x18xf32> to vector<4x16xf32>
    %217 = vector.extract_strided_slice %214 {offsets = [0, 2], sizes = [4, 16], strides = [1, 1]} : vector<4x18xf32> to vector<4x16xf32>
    %c0_147 = arith.constant 0 : index
    %c14_148 = arith.constant 14 : index
    %c0_149 = arith.constant 0 : index
    %c0_150 = arith.constant 0 : index
    %218 = vector.load %arg3[%c0_147, %c14_148, %c0_149, %c0_150] : memref<1x18x4x18xf32, #tpu.memory_space<vmem>>, vector<1x1x4x18xf32>
    %219 = vector.shape_cast %218 : vector<1x1x4x18xf32> to vector<4x18xf32>
    %220 = vector.extract_strided_slice %219 {offsets = [0, 0], sizes = [4, 16], strides = [1, 1]} : vector<4x18xf32> to vector<4x16xf32>
    %221 = vector.extract_strided_slice %219 {offsets = [0, 1], sizes = [4, 16], strides = [1, 1]} : vector<4x18xf32> to vector<4x16xf32>
    %222 = vector.extract_strided_slice %219 {offsets = [0, 2], sizes = [4, 16], strides = [1, 1]} : vector<4x18xf32> to vector<4x16xf32>
    %c0_151 = arith.constant 0 : index
    %c15 = arith.constant 15 : index
    %c0_152 = arith.constant 0 : index
    %c0_153 = arith.constant 0 : index
    %223 = vector.load %arg3[%c0_151, %c15, %c0_152, %c0_153] : memref<1x18x4x18xf32, #tpu.memory_space<vmem>>, vector<1x1x4x18xf32>
    %224 = vector.shape_cast %223 : vector<1x1x4x18xf32> to vector<4x18xf32>
    %225 = vector.extract_strided_slice %224 {offsets = [0, 0], sizes = [4, 16], strides = [1, 1]} : vector<4x18xf32> to vector<4x16xf32>
    %226 = vector.extract_strided_slice %224 {offsets = [0, 1], sizes = [4, 16], strides = [1, 1]} : vector<4x18xf32> to vector<4x16xf32>
    %227 = vector.extract_strided_slice %224 {offsets = [0, 2], sizes = [4, 16], strides = [1, 1]} : vector<4x18xf32> to vector<4x16xf32>
    %228 = tpu.concatenate %215, %216, %217, %220, %221, %222, %225, %226, %227 in 0 : vector<4x16xf32>, vector<4x16xf32>, vector<4x16xf32>, vector<4x16xf32>, vector<4x16xf32>, vector<4x16xf32>, vector<4x16xf32>, vector<4x16xf32>, vector<4x16xf32> -> vector<36x16xf32>
    %c0_154 = arith.constant 0 : index
    %c14_155 = arith.constant 14 : index
    %c0_156 = arith.constant 0 : index
    %c0_157 = arith.constant 0 : index
    %229 = vector.load %arg3[%c0_154, %c14_155, %c0_156, %c0_157] : memref<1x18x4x18xf32, #tpu.memory_space<vmem>>, vector<1x1x4x18xf32>
    %230 = vector.shape_cast %229 : vector<1x1x4x18xf32> to vector<4x18xf32>
    %231 = vector.extract_strided_slice %230 {offsets = [0, 0], sizes = [4, 16], strides = [1, 1]} : vector<4x18xf32> to vector<4x16xf32>
    %232 = vector.extract_strided_slice %230 {offsets = [0, 1], sizes = [4, 16], strides = [1, 1]} : vector<4x18xf32> to vector<4x16xf32>
    %233 = vector.extract_strided_slice %230 {offsets = [0, 2], sizes = [4, 16], strides = [1, 1]} : vector<4x18xf32> to vector<4x16xf32>
    %c0_158 = arith.constant 0 : index
    %c15_159 = arith.constant 15 : index
    %c0_160 = arith.constant 0 : index
    %c0_161 = arith.constant 0 : index
    %234 = vector.load %arg3[%c0_158, %c15_159, %c0_160, %c0_161] : memref<1x18x4x18xf32, #tpu.memory_space<vmem>>, vector<1x1x4x18xf32>
    %235 = vector.shape_cast %234 : vector<1x1x4x18xf32> to vector<4x18xf32>
    %236 = vector.extract_strided_slice %235 {offsets = [0, 0], sizes = [4, 16], strides = [1, 1]} : vector<4x18xf32> to vector<4x16xf32>
    %237 = vector.extract_strided_slice %235 {offsets = [0, 1], sizes = [4, 16], strides = [1, 1]} : vector<4x18xf32> to vector<4x16xf32>
    %238 = vector.extract_strided_slice %235 {offsets = [0, 2], sizes = [4, 16], strides = [1, 1]} : vector<4x18xf32> to vector<4x16xf32>
    %c0_162 = arith.constant 0 : index
    %c16 = arith.constant 16 : index
    %c0_163 = arith.constant 0 : index
    %c0_164 = arith.constant 0 : index
    %239 = vector.load %arg3[%c0_162, %c16, %c0_163, %c0_164] : memref<1x18x4x18xf32, #tpu.memory_space<vmem>>, vector<1x1x4x18xf32>
    %240 = vector.shape_cast %239 : vector<1x1x4x18xf32> to vector<4x18xf32>
    %241 = vector.extract_strided_slice %240 {offsets = [0, 0], sizes = [4, 16], strides = [1, 1]} : vector<4x18xf32> to vector<4x16xf32>
    %242 = vector.extract_strided_slice %240 {offsets = [0, 1], sizes = [4, 16], strides = [1, 1]} : vector<4x18xf32> to vector<4x16xf32>
    %243 = vector.extract_strided_slice %240 {offsets = [0, 2], sizes = [4, 16], strides = [1, 1]} : vector<4x18xf32> to vector<4x16xf32>
    %244 = tpu.concatenate %231, %232, %233, %236, %237, %238, %241, %242, %243 in 0 : vector<4x16xf32>, vector<4x16xf32>, vector<4x16xf32>, vector<4x16xf32>, vector<4x16xf32>, vector<4x16xf32>, vector<4x16xf32>, vector<4x16xf32>, vector<4x16xf32> -> vector<36x16xf32>
    %c0_165 = arith.constant 0 : index
    %c15_166 = arith.constant 15 : index
    %c0_167 = arith.constant 0 : index
    %c0_168 = arith.constant 0 : index
    %245 = vector.load %arg3[%c0_165, %c15_166, %c0_167, %c0_168] : memref<1x18x4x18xf32, #tpu.memory_space<vmem>>, vector<1x1x4x18xf32>
    %246 = vector.shape_cast %245 : vector<1x1x4x18xf32> to vector<4x18xf32>
    %247 = vector.extract_strided_slice %246 {offsets = [0, 0], sizes = [4, 16], strides = [1, 1]} : vector<4x18xf32> to vector<4x16xf32>
    %248 = vector.extract_strided_slice %246 {offsets = [0, 1], sizes = [4, 16], strides = [1, 1]} : vector<4x18xf32> to vector<4x16xf32>
    %249 = vector.extract_strided_slice %246 {offsets = [0, 2], sizes = [4, 16], strides = [1, 1]} : vector<4x18xf32> to vector<4x16xf32>
    %c0_169 = arith.constant 0 : index
    %c16_170 = arith.constant 16 : index
    %c0_171 = arith.constant 0 : index
    %c0_172 = arith.constant 0 : index
    %250 = vector.load %arg3[%c0_169, %c16_170, %c0_171, %c0_172] : memref<1x18x4x18xf32, #tpu.memory_space<vmem>>, vector<1x1x4x18xf32>
    %251 = vector.shape_cast %250 : vector<1x1x4x18xf32> to vector<4x18xf32>
    %252 = vector.extract_strided_slice %251 {offsets = [0, 0], sizes = [4, 16], strides = [1, 1]} : vector<4x18xf32> to vector<4x16xf32>
    %253 = vector.extract_strided_slice %251 {offsets = [0, 1], sizes = [4, 16], strides = [1, 1]} : vector<4x18xf32> to vector<4x16xf32>
    %254 = vector.extract_strided_slice %251 {offsets = [0, 2], sizes = [4, 16], strides = [1, 1]} : vector<4x18xf32> to vector<4x16xf32>
    %c0_173 = arith.constant 0 : index
    %c17 = arith.constant 17 : index
    %c0_174 = arith.constant 0 : index
    %c0_175 = arith.constant 0 : index
    %255 = vector.load %arg3[%c0_173, %c17, %c0_174, %c0_175] : memref<1x18x4x18xf32, #tpu.memory_space<vmem>>, vector<1x1x4x18xf32>
    %256 = vector.shape_cast %255 : vector<1x1x4x18xf32> to vector<4x18xf32>
    %257 = vector.extract_strided_slice %256 {offsets = [0, 0], sizes = [4, 16], strides = [1, 1]} : vector<4x18xf32> to vector<4x16xf32>
    %258 = vector.extract_strided_slice %256 {offsets = [0, 1], sizes = [4, 16], strides = [1, 1]} : vector<4x18xf32> to vector<4x16xf32>
    %259 = vector.extract_strided_slice %256 {offsets = [0, 2], sizes = [4, 16], strides = [1, 1]} : vector<4x18xf32> to vector<4x16xf32>
    %260 = tpu.concatenate %247, %248, %249, %252, %253, %254, %257, %258, %259 in 0 : vector<4x16xf32>, vector<4x16xf32>, vector<4x16xf32>, vector<4x16xf32>, vector<4x16xf32>, vector<4x16xf32>, vector<4x16xf32>, vector<4x16xf32>, vector<4x16xf32> -> vector<36x16xf32>
    %261 = tpu.concatenate %20, %36, %52, %68, %84, %100, %116, %132, %148, %164, %180, %196, %212, %228, %244, %260 in 1 : vector<36x16xf32>, vector<36x16xf32>, vector<36x16xf32>, vector<36x16xf32>, vector<36x16xf32>, vector<36x16xf32>, vector<36x16xf32>, vector<36x16xf32>, vector<36x16xf32>, vector<36x16xf32>, vector<36x16xf32>, vector<36x16xf32>, vector<36x16xf32>, vector<36x16xf32>, vector<36x16xf32>, vector<36x16xf32> -> vector<36x256xf32>
    %c0_176 = arith.constant 0 : index
    %c0_177 = arith.constant 0 : index
    %262 = vector.load %arg4[%c0_176, %c0_177] : memref<8x36xf32, #tpu.memory_space<vmem>>, vector<8x36xf32>
    %cst = arith.constant dense<0.000000e+00> : vector<8x256xf32>
    %263 = tpu.matmul %262, %261, %cst {dimension_numbers = #tpu.dot_dimension_numbers<[1], [0], [0], [1], [0, 0, 1, 1], [], []>} : vector<8x36xf32>, vector<36x256xf32>, vector<8x256xf32> -> vector<8x256xf32>
    %cst_178 = arith.constant dense<0.000000e+00> : vector<8xf32>
    %264 = vector.multi_reduction <add>, %263, %cst_178 [1] : vector<8x256xf32> to vector<8xf32>
    %265 = vector.shape_cast %264 : vector<8xf32> to vector<8x1xf32>
    %266 = arith.mulf %263, %263 : vector<8x256xf32>
    %cst_179 = arith.constant dense<0.000000e+00> : vector<8xf32>
    %267 = vector.multi_reduction <add>, %266, %cst_179 [1] : vector<8x256xf32> to vector<8xf32>
    %268 = vector.shape_cast %267 : vector<8xf32> to vector<8x1xf32>
    %c0_180 = arith.constant 0 : index
    %c0_181 = arith.constant 0 : index
    %c0_182 = arith.constant 0 : index
    %269 = vector.load %arg5[%c0_180, %c0_181, %c0_182] : memref<1x8x2xf32, #tpu.memory_space<vmem>>, vector<1x8x2xf32>
    %270 = vector.shape_cast %269 : vector<1x8x2xf32> to vector<8x2xf32>
    %271 = tpu.concatenate %265, %268 in 1 : vector<8x1xf32>, vector<8x1xf32> -> vector<8x2xf32>
    %272 = arith.addf %270, %271 : vector<8x2xf32>
    %c0_183 = arith.constant 0 : index
    %c0_184 = arith.constant 0 : index
    %c0_185 = arith.constant 0 : index
    %273 = vector.load %arg5[%c0_183, %c0_184, %c0_185] : memref<1x8x2xf32, #tpu.memory_space<vmem>>, vector<1x8x2xf32>
    %274 = vector.shape_cast %273 : vector<1x8x2xf32> to vector<8x2xf32>
    %275 = vector.shape_cast %272 : vector<8x2xf32> to vector<1x8x2xf32>
    tpu.vector_store %arg5[%c0_183, %c0_184, %c0_185], %275 {strides = array<i32>} : memref<1x8x2xf32, #tpu.memory_space<vmem>>, vector<1x8x2xf32>,
    return
  }
  func.func @transform_0(%arg0: i32, %arg1: i32, %arg2: i32) -> (i32, i32, i32, i32) {
    %c1_i32 = arith.constant 1 : i32
    %0 = arith.muli %arg0, %c1_i32 : i32
    %1 = arith.addi %0, %arg1 : i32
    %c0_i32 = arith.constant 0 : i32
    %c0_i32_0 = arith.constant 0 : i32
    %c0_i32_1 = arith.constant 0 : i32
    %c0_i32_2 = arith.constant 0 : i32
    return %1, %c0_i32, %c0_i32_0, %c0_i32_1 : i32, i32, i32, i32
  }
  func.func @transform_1(%arg0: i32, %arg1: i32, %arg2: i32) -> (i32, i32) {
    %c0_i32 = arith.constant 0 : i32
    %c0_i32_0 = arith.constant 0 : i32
    %c0_i32_1 = arith.constant 0 : i32
    return %c0_i32, %c0_i32_0 : i32, i32
  }
  func.func @transform_2(%arg0: i32, %arg1: i32, %arg2: i32) -> (i32, i32, i32) {
    %c0_i32 = arith.constant 0 : i32
    %c0_i32_0 = arith.constant 0 : i32
    %c0_i32_1 = arith.constant 0 : i32
    return %arg0, %c0_i32, %c0_i32_0 : i32, i32, i32
  }
}

module attributes {stable_mosaic.version = 11 : i64} {
  func.func @_norm_kernel(%arg0: i32, %arg1: i32, %arg2: memref<1x18x4x18xf32, #tpu.memory_space<vmem>>, %arg3: memref<8x36xf32, #tpu.memory_space<vmem>>, %arg4: memref<8x1xf32, #tpu.memory_space<vmem>>, %arg5: memref<1x8x256xf32, #tpu.memory_space<vmem>>) attributes {dimension_semantics = [#tpu.dimension_semantics<parallel>, #tpu.dimension_semantics<arbitrary>], iteration_bounds = array<i64: 2, 1>, scalar_prefetch = 0 : i64, scratch_operands = 0 : i64, tpu.core_type = #tpu.core_type<tc>, window_params = [{transform_indices = @transform_0, window_bounds = array<i64: 1, 18, 4, 18>}, {pipeline_mode = #tpu.pipeline_mode<synchronous>, transform_indices = @transform_1, window_bounds = array<i64: 8, 36>}, {pipeline_mode = #tpu.pipeline_mode<synchronous>, transform_indices = @transform_2, window_bounds = array<i64: 8, 1>}, {transform_indices = @transform_3, window_bounds = array<i64: 1, 8, 256>}]} {
    %c0 = arith.constant 0 : index
    %c0_0 = arith.constant 0 : index
    %c0_1 = arith.constant 0 : index
    %c0_2 = arith.constant 0 : index
    %0 = vector.load %arg2[%c0, %c0_0, %c0_1, %c0_2] : memref<1x18x4x18xf32, #tpu.memory_space<vmem>>, vector<1x1x4x18xf32>
    %1 = vector.shape_cast %0 : vector<1x1x4x18xf32> to vector<4x18xf32>
    %2 = vector.extract_strided_slice %1 {offsets = [0, 0], sizes = [4, 16], strides = [1, 1]} : vector<4x18xf32> to vector<4x16xf32>
    %3 = vector.extract_strided_slice %1 {offsets = [0, 1], sizes = [4, 16], strides = [1, 1]} : vector<4x18xf32> to vector<4x16xf32>
    %4 = vector.extract_strided_slice %1 {offsets = [0, 2], sizes = [4, 16], strides = [1, 1]} : vector<4x18xf32> to vector<4x16xf32>
    %c0_3 = arith.constant 0 : index
    %c1 = arith.constant 1 : index
    %c0_4 = arith.constant 0 : index
    %c0_5 = arith.constant 0 : index
    %5 = vector.load %arg2[%c0_3, %c1, %c0_4, %c0_5] : memref<1x18x4x18xf32, #tpu.memory_space<vmem>>, vector<1x1x4x18xf32>
    %6 = vector.shape_cast %5 : vector<1x1x4x18xf32> to vector<4x18xf32>
    %7 = vector.extract_strided_slice %6 {offsets = [0, 0], sizes = [4, 16], strides = [1, 1]} : vector<4x18xf32> to vector<4x16xf32>
    %8 = vector.extract_strided_slice %6 {offsets = [0, 1], sizes = [4, 16], strides = [1, 1]} : vector<4x18xf32> to vector<4x16xf32>
    %9 = vector.extract_strided_slice %6 {offsets = [0, 2], sizes = [4, 16], strides = [1, 1]} : vector<4x18xf32> to vector<4x16xf32>
    %c0_6 = arith.constant 0 : index
    %c2 = arith.constant 2 : index
    %c0_7 = arith.constant 0 : index
    %c0_8 = arith.constant 0 : index
    %10 = vector.load %arg2[%c0_6, %c2, %c0_7, %c0_8] : memref<1x18x4x18xf32, #tpu.memory_space<vmem>>, vector<1x1x4x18xf32>
    %11 = vector.shape_cast %10 : vector<1x1x4x18xf32> to vector<4x18xf32>
    %12 = vector.extract_strided_slice %11 {offsets = [0, 0], sizes = [4, 16], strides = [1, 1]} : vector<4x18xf32> to vector<4x16xf32>
    %13 = vector.extract_strided_slice %11 {offsets = [0, 1], sizes = [4, 16], strides = [1, 1]} : vector<4x18xf32> to vector<4x16xf32>
    %14 = vector.extract_strided_slice %11 {offsets = [0, 2], sizes = [4, 16], strides = [1, 1]} : vector<4x18xf32> to vector<4x16xf32>
    %15 = tpu.concatenate %2, %3, %4, %7, %8, %9, %12, %13, %14 in 0 : vector<4x16xf32>, vector<4x16xf32>, vector<4x16xf32>, vector<4x16xf32>, vector<4x16xf32>, vector<4x16xf32>, vector<4x16xf32>, vector<4x16xf32>, vector<4x16xf32> -> vector<36x16xf32>
    %c0_9 = arith.constant 0 : index
    %c1_10 = arith.constant 1 : index
    %c0_11 = arith.constant 0 : index
    %c0_12 = arith.constant 0 : index
    %16 = vector.load %arg2[%c0_9, %c1_10, %c0_11, %c0_12] : memref<1x18x4x18xf32, #tpu.memory_space<vmem>>, vector<1x1x4x18xf32>
    %17 = vector.shape_cast %16 : vector<1x1x4x18xf32> to vector<4x18xf32>
    %18 = vector.extract_strided_slice %17 {offsets = [0, 0], sizes = [4, 16], strides = [1, 1]} : vector<4x18xf32> to vector<4x16xf32>
    %19 = vector.extract_strided_slice %17 {offsets = [0, 1], sizes = [4, 16], strides = [1, 1]} : vector<4x18xf32> to vector<4x16xf32>
    %20 = vector.extract_strided_slice %17 {offsets = [0, 2], sizes = [4, 16], strides = [1, 1]} : vector<4x18xf32> to vector<4x16xf32>
    %c0_13 = arith.constant 0 : index
    %c2_14 = arith.constant 2 : index
    %c0_15 = arith.constant 0 : index
    %c0_16 = arith.constant 0 : index
    %21 = vector.load %arg2[%c0_13, %c2_14, %c0_15, %c0_16] : memref<1x18x4x18xf32, #tpu.memory_space<vmem>>, vector<1x1x4x18xf32>
    %22 = vector.shape_cast %21 : vector<1x1x4x18xf32> to vector<4x18xf32>
    %23 = vector.extract_strided_slice %22 {offsets = [0, 0], sizes = [4, 16], strides = [1, 1]} : vector<4x18xf32> to vector<4x16xf32>
    %24 = vector.extract_strided_slice %22 {offsets = [0, 1], sizes = [4, 16], strides = [1, 1]} : vector<4x18xf32> to vector<4x16xf32>
    %25 = vector.extract_strided_slice %22 {offsets = [0, 2], sizes = [4, 16], strides = [1, 1]} : vector<4x18xf32> to vector<4x16xf32>
    %c0_17 = arith.constant 0 : index
    %c3 = arith.constant 3 : index
    %c0_18 = arith.constant 0 : index
    %c0_19 = arith.constant 0 : index
    %26 = vector.load %arg2[%c0_17, %c3, %c0_18, %c0_19] : memref<1x18x4x18xf32, #tpu.memory_space<vmem>>, vector<1x1x4x18xf32>
    %27 = vector.shape_cast %26 : vector<1x1x4x18xf32> to vector<4x18xf32>
    %28 = vector.extract_strided_slice %27 {offsets = [0, 0], sizes = [4, 16], strides = [1, 1]} : vector<4x18xf32> to vector<4x16xf32>
    %29 = vector.extract_strided_slice %27 {offsets = [0, 1], sizes = [4, 16], strides = [1, 1]} : vector<4x18xf32> to vector<4x16xf32>
    %30 = vector.extract_strided_slice %27 {offsets = [0, 2], sizes = [4, 16], strides = [1, 1]} : vector<4x18xf32> to vector<4x16xf32>
    %31 = tpu.concatenate %18, %19, %20, %23, %24, %25, %28, %29, %30 in 0 : vector<4x16xf32>, vector<4x16xf32>, vector<4x16xf32>, vector<4x16xf32>, vector<4x16xf32>, vector<4x16xf32>, vector<4x16xf32>, vector<4x16xf32>, vector<4x16xf32> -> vector<36x16xf32>
    %c0_20 = arith.constant 0 : index
    %c2_21 = arith.constant 2 : index
    %c0_22 = arith.constant 0 : index
    %c0_23 = arith.constant 0 : index
    %32 = vector.load %arg2[%c0_20, %c2_21, %c0_22, %c0_23] : memref<1x18x4x18xf32, #tpu.memory_space<vmem>>, vector<1x1x4x18xf32>
    %33 = vector.shape_cast %32 : vector<1x1x4x18xf32> to vector<4x18xf32>
    %34 = vector.extract_strided_slice %33 {offsets = [0, 0], sizes = [4, 16], strides = [1, 1]} : vector<4x18xf32> to vector<4x16xf32>
    %35 = vector.extract_strided_slice %33 {offsets = [0, 1], sizes = [4, 16], strides = [1, 1]} : vector<4x18xf32> to vector<4x16xf32>
    %36 = vector.extract_strided_slice %33 {offsets = [0, 2], sizes = [4, 16], strides = [1, 1]} : vector<4x18xf32> to vector<4x16xf32>
    %c0_24 = arith.constant 0 : index
    %c3_25 = arith.constant 3 : index
    %c0_26 = arith.constant 0 : index
    %c0_27 = arith.constant 0 : index
    %37 = vector.load %arg2[%c0_24, %c3_25, %c0_26, %c0_27] : memref<1x18x4x18xf32, #tpu.memory_space<vmem>>, vector<1x1x4x18xf32>
    %38 = vector.shape_cast %37 : vector<1x1x4x18xf32> to vector<4x18xf32>
    %39 = vector.extract_strided_slice %38 {offsets = [0, 0], sizes = [4, 16], strides = [1, 1]} : vector<4x18xf32> to vector<4x16xf32>
    %40 = vector.extract_strided_slice %38 {offsets = [0, 1], sizes = [4, 16], strides = [1, 1]} : vector<4x18xf32> to vector<4x16xf32>
    %41 = vector.extract_strided_slice %38 {offsets = [0, 2], sizes = [4, 16], strides = [1, 1]} : vector<4x18xf32> to vector<4x16xf32>
    %c0_28 = arith.constant 0 : index
    %c4 = arith.constant 4 : index
    %c0_29 = arith.constant 0 : index
    %c0_30 = arith.constant 0 : index
    %42 = vector.load %arg2[%c0_28, %c4, %c0_29, %c0_30] : memref<1x18x4x18xf32, #tpu.memory_space<vmem>>, vector<1x1x4x18xf32>
    %43 = vector.shape_cast %42 : vector<1x1x4x18xf32> to vector<4x18xf32>
    %44 = vector.extract_strided_slice %43 {offsets = [0, 0], sizes = [4, 16], strides = [1, 1]} : vector<4x18xf32> to vector<4x16xf32>
    %45 = vector.extract_strided_slice %43 {offsets = [0, 1], sizes = [4, 16], strides = [1, 1]} : vector<4x18xf32> to vector<4x16xf32>
    %46 = vector.extract_strided_slice %43 {offsets = [0, 2], sizes = [4, 16], strides = [1, 1]} : vector<4x18xf32> to vector<4x16xf32>
    %47 = tpu.concatenate %34, %35, %36, %39, %40, %41, %44, %45, %46 in 0 : vector<4x16xf32>, vector<4x16xf32>, vector<4x16xf32>, vector<4x16xf32>, vector<4x16xf32>, vector<4x16xf32>, vector<4x16xf32>, vector<4x16xf32>, vector<4x16xf32> -> vector<36x16xf32>
    %c0_31 = arith.constant 0 : index
    %c3_32 = arith.constant 3 : index
    %c0_33 = arith.constant 0 : index
    %c0_34 = arith.constant 0 : index
    %48 = vector.load %arg2[%c0_31, %c3_32, %c0_33, %c0_34] : memref<1x18x4x18xf32, #tpu.memory_space<vmem>>, vector<1x1x4x18xf32>
    %49 = vector.shape_cast %48 : vector<1x1x4x18xf32> to vector<4x18xf32>
    %50 = vector.extract_strided_slice %49 {offsets = [0, 0], sizes = [4, 16], strides = [1, 1]} : vector<4x18xf32> to vector<4x16xf32>
    %51 = vector.extract_strided_slice %49 {offsets = [0, 1], sizes = [4, 16], strides = [1, 1]} : vector<4x18xf32> to vector<4x16xf32>
    %52 = vector.extract_strided_slice %49 {offsets = [0, 2], sizes = [4, 16], strides = [1, 1]} : vector<4x18xf32> to vector<4x16xf32>
    %c0_35 = arith.constant 0 : index
    %c4_36 = arith.constant 4 : index
    %c0_37 = arith.constant 0 : index
    %c0_38 = arith.constant 0 : index
    %53 = vector.load %arg2[%c0_35, %c4_36, %c0_37, %c0_38] : memref<1x18x4x18xf32, #tpu.memory_space<vmem>>, vector<1x1x4x18xf32>
    %54 = vector.shape_cast %53 : vector<1x1x4x18xf32> to vector<4x18xf32>
    %55 = vector.extract_strided_slice %54 {offsets = [0, 0], sizes = [4, 16], strides = [1, 1]} : vector<4x18xf32> to vector<4x16xf32>
    %56 = vector.extract_strided_slice %54 {offsets = [0, 1], sizes = [4, 16], strides = [1, 1]} : vector<4x18xf32> to vector<4x16xf32>
    %57 = vector.extract_strided_slice %54 {offsets = [0, 2], sizes = [4, 16], strides = [1, 1]} : vector<4x18xf32> to vector<4x16xf32>
    %c0_39 = arith.constant 0 : index
    %c5 = arith.constant 5 : index
    %c0_40 = arith.constant 0 : index
    %c0_41 = arith.constant 0 : index
    %58 = vector.load %arg2[%c0_39, %c5, %c0_40, %c0_41] : memref<1x18x4x18xf32, #tpu.memory_space<vmem>>, vector<1x1x4x18xf32>
    %59 = vector.shape_cast %58 : vector<1x1x4x18xf32> to vector<4x18xf32>
    %60 = vector.extract_strided_slice %59 {offsets = [0, 0], sizes = [4, 16], strides = [1, 1]} : vector<4x18xf32> to vector<4x16xf32>
    %61 = vector.extract_strided_slice %59 {offsets = [0, 1], sizes = [4, 16], strides = [1, 1]} : vector<4x18xf32> to vector<4x16xf32>
    %62 = vector.extract_strided_slice %59 {offsets = [0, 2], sizes = [4, 16], strides = [1, 1]} : vector<4x18xf32> to vector<4x16xf32>
    %63 = tpu.concatenate %50, %51, %52, %55, %56, %57, %60, %61, %62 in 0 : vector<4x16xf32>, vector<4x16xf32>, vector<4x16xf32>, vector<4x16xf32>, vector<4x16xf32>, vector<4x16xf32>, vector<4x16xf32>, vector<4x16xf32>, vector<4x16xf32> -> vector<36x16xf32>
    %c0_42 = arith.constant 0 : index
    %c4_43 = arith.constant 4 : index
    %c0_44 = arith.constant 0 : index
    %c0_45 = arith.constant 0 : index
    %64 = vector.load %arg2[%c0_42, %c4_43, %c0_44, %c0_45] : memref<1x18x4x18xf32, #tpu.memory_space<vmem>>, vector<1x1x4x18xf32>
    %65 = vector.shape_cast %64 : vector<1x1x4x18xf32> to vector<4x18xf32>
    %66 = vector.extract_strided_slice %65 {offsets = [0, 0], sizes = [4, 16], strides = [1, 1]} : vector<4x18xf32> to vector<4x16xf32>
    %67 = vector.extract_strided_slice %65 {offsets = [0, 1], sizes = [4, 16], strides = [1, 1]} : vector<4x18xf32> to vector<4x16xf32>
    %68 = vector.extract_strided_slice %65 {offsets = [0, 2], sizes = [4, 16], strides = [1, 1]} : vector<4x18xf32> to vector<4x16xf32>
    %c0_46 = arith.constant 0 : index
    %c5_47 = arith.constant 5 : index
    %c0_48 = arith.constant 0 : index
    %c0_49 = arith.constant 0 : index
    %69 = vector.load %arg2[%c0_46, %c5_47, %c0_48, %c0_49] : memref<1x18x4x18xf32, #tpu.memory_space<vmem>>, vector<1x1x4x18xf32>
    %70 = vector.shape_cast %69 : vector<1x1x4x18xf32> to vector<4x18xf32>
    %71 = vector.extract_strided_slice %70 {offsets = [0, 0], sizes = [4, 16], strides = [1, 1]} : vector<4x18xf32> to vector<4x16xf32>
    %72 = vector.extract_strided_slice %70 {offsets = [0, 1], sizes = [4, 16], strides = [1, 1]} : vector<4x18xf32> to vector<4x16xf32>
    %73 = vector.extract_strided_slice %70 {offsets = [0, 2], sizes = [4, 16], strides = [1, 1]} : vector<4x18xf32> to vector<4x16xf32>
    %c0_50 = arith.constant 0 : index
    %c6 = arith.constant 6 : index
    %c0_51 = arith.constant 0 : index
    %c0_52 = arith.constant 0 : index
    %74 = vector.load %arg2[%c0_50, %c6, %c0_51, %c0_52] : memref<1x18x4x18xf32, #tpu.memory_space<vmem>>, vector<1x1x4x18xf32>
    %75 = vector.shape_cast %74 : vector<1x1x4x18xf32> to vector<4x18xf32>
    %76 = vector.extract_strided_slice %75 {offsets = [0, 0], sizes = [4, 16], strides = [1, 1]} : vector<4x18xf32> to vector<4x16xf32>
    %77 = vector.extract_strided_slice %75 {offsets = [0, 1], sizes = [4, 16], strides = [1, 1]} : vector<4x18xf32> to vector<4x16xf32>
    %78 = vector.extract_strided_slice %75 {offsets = [0, 2], sizes = [4, 16], strides = [1, 1]} : vector<4x18xf32> to vector<4x16xf32>
    %79 = tpu.concatenate %66, %67, %68, %71, %72, %73, %76, %77, %78 in 0 : vector<4x16xf32>, vector<4x16xf32>, vector<4x16xf32>, vector<4x16xf32>, vector<4x16xf32>, vector<4x16xf32>, vector<4x16xf32>, vector<4x16xf32>, vector<4x16xf32> -> vector<36x16xf32>
    %c0_53 = arith.constant 0 : index
    %c5_54 = arith.constant 5 : index
    %c0_55 = arith.constant 0 : index
    %c0_56 = arith.constant 0 : index
    %80 = vector.load %arg2[%c0_53, %c5_54, %c0_55, %c0_56] : memref<1x18x4x18xf32, #tpu.memory_space<vmem>>, vector<1x1x4x18xf32>
    %81 = vector.shape_cast %80 : vector<1x1x4x18xf32> to vector<4x18xf32>
    %82 = vector.extract_strided_slice %81 {offsets = [0, 0], sizes = [4, 16], strides = [1, 1]} : vector<4x18xf32> to vector<4x16xf32>
    %83 = vector.extract_strided_slice %81 {offsets = [0, 1], sizes = [4, 16], strides = [1, 1]} : vector<4x18xf32> to vector<4x16xf32>
    %84 = vector.extract_strided_slice %81 {offsets = [0, 2], sizes = [4, 16], strides = [1, 1]} : vector<4x18xf32> to vector<4x16xf32>
    %c0_57 = arith.constant 0 : index
    %c6_58 = arith.constant 6 : index
    %c0_59 = arith.constant 0 : index
    %c0_60 = arith.constant 0 : index
    %85 = vector.load %arg2[%c0_57, %c6_58, %c0_59, %c0_60] : memref<1x18x4x18xf32, #tpu.memory_space<vmem>>, vector<1x1x4x18xf32>
    %86 = vector.shape_cast %85 : vector<1x1x4x18xf32> to vector<4x18xf32>
    %87 = vector.extract_strided_slice %86 {offsets = [0, 0], sizes = [4, 16], strides = [1, 1]} : vector<4x18xf32> to vector<4x16xf32>
    %88 = vector.extract_strided_slice %86 {offsets = [0, 1], sizes = [4, 16], strides = [1, 1]} : vector<4x18xf32> to vector<4x16xf32>
    %89 = vector.extract_strided_slice %86 {offsets = [0, 2], sizes = [4, 16], strides = [1, 1]} : vector<4x18xf32> to vector<4x16xf32>
    %c0_61 = arith.constant 0 : index
    %c7 = arith.constant 7 : index
    %c0_62 = arith.constant 0 : index
    %c0_63 = arith.constant 0 : index
    %90 = vector.load %arg2[%c0_61, %c7, %c0_62, %c0_63] : memref<1x18x4x18xf32, #tpu.memory_space<vmem>>, vector<1x1x4x18xf32>
    %91 = vector.shape_cast %90 : vector<1x1x4x18xf32> to vector<4x18xf32>
    %92 = vector.extract_strided_slice %91 {offsets = [0, 0], sizes = [4, 16], strides = [1, 1]} : vector<4x18xf32> to vector<4x16xf32>
    %93 = vector.extract_strided_slice %91 {offsets = [0, 1], sizes = [4, 16], strides = [1, 1]} : vector<4x18xf32> to vector<4x16xf32>
    %94 = vector.extract_strided_slice %91 {offsets = [0, 2], sizes = [4, 16], strides = [1, 1]} : vector<4x18xf32> to vector<4x16xf32>
    %95 = tpu.concatenate %82, %83, %84, %87, %88, %89, %92, %93, %94 in 0 : vector<4x16xf32>, vector<4x16xf32>, vector<4x16xf32>, vector<4x16xf32>, vector<4x16xf32>, vector<4x16xf32>, vector<4x16xf32>, vector<4x16xf32>, vector<4x16xf32> -> vector<36x16xf32>
    %c0_64 = arith.constant 0 : index
    %c6_65 = arith.constant 6 : index
    %c0_66 = arith.constant 0 : index
    %c0_67 = arith.constant 0 : index
    %96 = vector.load %arg2[%c0_64, %c6_65, %c0_66, %c0_67] : memref<1x18x4x18xf32, #tpu.memory_space<vmem>>, vector<1x1x4x18xf32>
    %97 = vector.shape_cast %96 : vector<1x1x4x18xf32> to vector<4x18xf32>
    %98 = vector.extract_strided_slice %97 {offsets = [0, 0], sizes = [4, 16], strides = [1, 1]} : vector<4x18xf32> to vector<4x16xf32>
    %99 = vector.extract_strided_slice %97 {offsets = [0, 1], sizes = [4, 16], strides = [1, 1]} : vector<4x18xf32> to vector<4x16xf32>
    %100 = vector.extract_strided_slice %97 {offsets = [0, 2], sizes = [4, 16], strides = [1, 1]} : vector<4x18xf32> to vector<4x16xf32>
    %c0_68 = arith.constant 0 : index
    %c7_69 = arith.constant 7 : index
    %c0_70 = arith.constant 0 : index
    %c0_71 = arith.constant 0 : index
    %101 = vector.load %arg2[%c0_68, %c7_69, %c0_70, %c0_71] : memref<1x18x4x18xf32, #tpu.memory_space<vmem>>, vector<1x1x4x18xf32>
    %102 = vector.shape_cast %101 : vector<1x1x4x18xf32> to vector<4x18xf32>
    %103 = vector.extract_strided_slice %102 {offsets = [0, 0], sizes = [4, 16], strides = [1, 1]} : vector<4x18xf32> to vector<4x16xf32>
    %104 = vector.extract_strided_slice %102 {offsets = [0, 1], sizes = [4, 16], strides = [1, 1]} : vector<4x18xf32> to vector<4x16xf32>
    %105 = vector.extract_strided_slice %102 {offsets = [0, 2], sizes = [4, 16], strides = [1, 1]} : vector<4x18xf32> to vector<4x16xf32>
    %c0_72 = arith.constant 0 : index
    %c8 = arith.constant 8 : index
    %c0_73 = arith.constant 0 : index
    %c0_74 = arith.constant 0 : index
    %106 = vector.load %arg2[%c0_72, %c8, %c0_73, %c0_74] : memref<1x18x4x18xf32, #tpu.memory_space<vmem>>, vector<1x1x4x18xf32>
    %107 = vector.shape_cast %106 : vector<1x1x4x18xf32> to vector<4x18xf32>
    %108 = vector.extract_strided_slice %107 {offsets = [0, 0], sizes = [4, 16], strides = [1, 1]} : vector<4x18xf32> to vector<4x16xf32>
    %109 = vector.extract_strided_slice %107 {offsets = [0, 1], sizes = [4, 16], strides = [1, 1]} : vector<4x18xf32> to vector<4x16xf32>
    %110 = vector.extract_strided_slice %107 {offsets = [0, 2], sizes = [4, 16], strides = [1, 1]} : vector<4x18xf32> to vector<4x16xf32>
    %111 = tpu.concatenate %98, %99, %100, %103, %104, %105, %108, %109, %110 in 0 : vector<4x16xf32>, vector<4x16xf32>, vector<4x16xf32>, vector<4x16xf32>, vector<4x16xf32>, vector<4x16xf32>, vector<4x16xf32>, vector<4x16xf32>, vector<4x16xf32> -> vector<36x16xf32>
    %c0_75 = arith.constant 0 : index
    %c7_76 = arith.constant 7 : index
    %c0_77 = arith.constant 0 : index
    %c0_78 = arith.constant 0 : index
    %112 = vector.load %arg2[%c0_75, %c7_76, %c0_77, %c0_78] : memref<1x18x4x18xf32, #tpu.memory_space<vmem>>, vector<1x1x4x18xf32>
    %113 = vector.shape_cast %112 : vector<1x1x4x18xf32> to vector<4x18xf32>
    %114 = vector.extract_strided_slice %113 {offsets = [0, 0], sizes = [4, 16], strides = [1, 1]} : vector<4x18xf32> to vector<4x16xf32>
    %115 = vector.extract_strided_slice %113 {offsets = [0, 1], sizes = [4, 16], strides = [1, 1]} : vector<4x18xf32> to vector<4x16xf32>
    %116 = vector.extract_strided_slice %113 {offsets = [0, 2], sizes = [4, 16], strides = [1, 1]} : vector<4x18xf32> to vector<4x16xf32>
    %c0_79 = arith.constant 0 : index
    %c8_80 = arith.constant 8 : index
    %c0_81 = arith.constant 0 : index
    %c0_82 = arith.constant 0 : index
    %117 = vector.load %arg2[%c0_79, %c8_80, %c0_81, %c0_82] : memref<1x18x4x18xf32, #tpu.memory_space<vmem>>, vector<1x1x4x18xf32>
    %118 = vector.shape_cast %117 : vector<1x1x4x18xf32> to vector<4x18xf32>
    %119 = vector.extract_strided_slice %118 {offsets = [0, 0], sizes = [4, 16], strides = [1, 1]} : vector<4x18xf32> to vector<4x16xf32>
    %120 = vector.extract_strided_slice %118 {offsets = [0, 1], sizes = [4, 16], strides = [1, 1]} : vector<4x18xf32> to vector<4x16xf32>
    %121 = vector.extract_strided_slice %118 {offsets = [0, 2], sizes = [4, 16], strides = [1, 1]} : vector<4x18xf32> to vector<4x16xf32>
    %c0_83 = arith.constant 0 : index
    %c9 = arith.constant 9 : index
    %c0_84 = arith.constant 0 : index
    %c0_85 = arith.constant 0 : index
    %122 = vector.load %arg2[%c0_83, %c9, %c0_84, %c0_85] : memref<1x18x4x18xf32, #tpu.memory_space<vmem>>, vector<1x1x4x18xf32>
    %123 = vector.shape_cast %122 : vector<1x1x4x18xf32> to vector<4x18xf32>
    %124 = vector.extract_strided_slice %123 {offsets = [0, 0], sizes = [4, 16], strides = [1, 1]} : vector<4x18xf32> to vector<4x16xf32>
    %125 = vector.extract_strided_slice %123 {offsets = [0, 1], sizes = [4, 16], strides = [1, 1]} : vector<4x18xf32> to vector<4x16xf32>
    %126 = vector.extract_strided_slice %123 {offsets = [0, 2], sizes = [4, 16], strides = [1, 1]} : vector<4x18xf32> to vector<4x16xf32>
    %127 = tpu.concatenate %114, %115, %116, %119, %120, %121, %124, %125, %126 in 0 : vector<4x16xf32>, vector<4x16xf32>, vector<4x16xf32>, vector<4x16xf32>, vector<4x16xf32>, vector<4x16xf32>, vector<4x16xf32>, vector<4x16xf32>, vector<4x16xf32> -> vector<36x16xf32>
    %c0_86 = arith.constant 0 : index
    %c8_87 = arith.constant 8 : index
    %c0_88 = arith.constant 0 : index
    %c0_89 = arith.constant 0 : index
    %128 = vector.load %arg2[%c0_86, %c8_87, %c0_88, %c0_89] : memref<1x18x4x18xf32, #tpu.memory_space<vmem>>, vector<1x1x4x18xf32>
    %129 = vector.shape_cast %128 : vector<1x1x4x18xf32> to vector<4x18xf32>
    %130 = vector.extract_strided_slice %129 {offsets = [0, 0], sizes = [4, 16], strides = [1, 1]} : vector<4x18xf32> to vector<4x16xf32>
    %131 = vector.extract_strided_slice %129 {offsets = [0, 1], sizes = [4, 16], strides = [1, 1]} : vector<4x18xf32> to vector<4x16xf32>
    %132 = vector.extract_strided_slice %129 {offsets = [0, 2], sizes = [4, 16], strides = [1, 1]} : vector<4x18xf32> to vector<4x16xf32>
    %c0_90 = arith.constant 0 : index
    %c9_91 = arith.constant 9 : index
    %c0_92 = arith.constant 0 : index
    %c0_93 = arith.constant 0 : index
    %133 = vector.load %arg2[%c0_90, %c9_91, %c0_92, %c0_93] : memref<1x18x4x18xf32, #tpu.memory_space<vmem>>, vector<1x1x4x18xf32>
    %134 = vector.shape_cast %133 : vector<1x1x4x18xf32> to vector<4x18xf32>
    %135 = vector.extract_strided_slice %134 {offsets = [0, 0], sizes = [4, 16], strides = [1, 1]} : vector<4x18xf32> to vector<4x16xf32>
    %136 = vector.extract_strided_slice %134 {offsets = [0, 1], sizes = [4, 16], strides = [1, 1]} : vector<4x18xf32> to vector<4x16xf32>
    %137 = vector.extract_strided_slice %134 {offsets = [0, 2], sizes = [4, 16], strides = [1, 1]} : vector<4x18xf32> to vector<4x16xf32>
    %c0_94 = arith.constant 0 : index
    %c10 = arith.constant 10 : index
    %c0_95 = arith.constant 0 : index
    %c0_96 = arith.constant 0 : index
    %138 = vector.load %arg2[%c0_94, %c10, %c0_95, %c0_96] : memref<1x18x4x18xf32, #tpu.memory_space<vmem>>, vector<1x1x4x18xf32>
    %139 = vector.shape_cast %138 : vector<1x1x4x18xf32> to vector<4x18xf32>
    %140 = vector.extract_strided_slice %139 {offsets = [0, 0], sizes = [4, 16], strides = [1, 1]} : vector<4x18xf32> to vector<4x16xf32>
    %141 = vector.extract_strided_slice %139 {offsets = [0, 1], sizes = [4, 16], strides = [1, 1]} : vector<4x18xf32> to vector<4x16xf32>
    %142 = vector.extract_strided_slice %139 {offsets = [0, 2], sizes = [4, 16], strides = [1, 1]} : vector<4x18xf32> to vector<4x16xf32>
    %143 = tpu.concatenate %130, %131, %132, %135, %136, %137, %140, %141, %142 in 0 : vector<4x16xf32>, vector<4x16xf32>, vector<4x16xf32>, vector<4x16xf32>, vector<4x16xf32>, vector<4x16xf32>, vector<4x16xf32>, vector<4x16xf32>, vector<4x16xf32> -> vector<36x16xf32>
    %c0_97 = arith.constant 0 : index
    %c9_98 = arith.constant 9 : index
    %c0_99 = arith.constant 0 : index
    %c0_100 = arith.constant 0 : index
    %144 = vector.load %arg2[%c0_97, %c9_98, %c0_99, %c0_100] : memref<1x18x4x18xf32, #tpu.memory_space<vmem>>, vector<1x1x4x18xf32>
    %145 = vector.shape_cast %144 : vector<1x1x4x18xf32> to vector<4x18xf32>
    %146 = vector.extract_strided_slice %145 {offsets = [0, 0], sizes = [4, 16], strides = [1, 1]} : vector<4x18xf32> to vector<4x16xf32>
    %147 = vector.extract_strided_slice %145 {offsets = [0, 1], sizes = [4, 16], strides = [1, 1]} : vector<4x18xf32> to vector<4x16xf32>
    %148 = vector.extract_strided_slice %145 {offsets = [0, 2], sizes = [4, 16], strides = [1, 1]} : vector<4x18xf32> to vector<4x16xf32>
    %c0_101 = arith.constant 0 : index
    %c10_102 = arith.constant 10 : index
    %c0_103 = arith.constant 0 : index
    %c0_104 = arith.constant 0 : index
    %149 = vector.load %arg2[%c0_101, %c10_102, %c0_103, %c0_104] : memref<1x18x4x18xf32, #tpu.memory_space<vmem>>, vector<1x1x4x18xf32>
    %150 = vector.shape_cast %149 : vector<1x1x4x18xf32> to vector<4x18xf32>
    %151 = vector.extract_strided_slice %150 {offsets = [0, 0], sizes = [4, 16], strides = [1, 1]} : vector<4x18xf32> to vector<4x16xf32>
    %152 = vector.extract_strided_slice %150 {offsets = [0, 1], sizes = [4, 16], strides = [1, 1]} : vector<4x18xf32> to vector<4x16xf32>
    %153 = vector.extract_strided_slice %150 {offsets = [0, 2], sizes = [4, 16], strides = [1, 1]} : vector<4x18xf32> to vector<4x16xf32>
    %c0_105 = arith.constant 0 : index
    %c11 = arith.constant 11 : index
    %c0_106 = arith.constant 0 : index
    %c0_107 = arith.constant 0 : index
    %154 = vector.load %arg2[%c0_105, %c11, %c0_106, %c0_107] : memref<1x18x4x18xf32, #tpu.memory_space<vmem>>, vector<1x1x4x18xf32>
    %155 = vector.shape_cast %154 : vector<1x1x4x18xf32> to vector<4x18xf32>
    %156 = vector.extract_strided_slice %155 {offsets = [0, 0], sizes = [4, 16], strides = [1, 1]} : vector<4x18xf32> to vector<4x16xf32>
    %157 = vector.extract_strided_slice %155 {offsets = [0, 1], sizes = [4, 16], strides = [1, 1]} : vector<4x18xf32> to vector<4x16xf32>
    %158 = vector.extract_strided_slice %155 {offsets = [0, 2], sizes = [4, 16], strides = [1, 1]} : vector<4x18xf32> to vector<4x16xf32>
    %159 = tpu.concatenate %146, %147, %148, %151, %152, %153, %156, %157, %158 in 0 : vector<4x16xf32>, vector<4x16xf32>, vector<4x16xf32>, vector<4x16xf32>, vector<4x16xf32>, vector<4x16xf32>, vector<4x16xf32>, vector<4x16xf32>, vector<4x16xf32> -> vector<36x16xf32>
    %c0_108 = arith.constant 0 : index
    %c10_109 = arith.constant 10 : index
    %c0_110 = arith.constant 0 : index
    %c0_111 = arith.constant 0 : index
    %160 = vector.load %arg2[%c0_108, %c10_109, %c0_110, %c0_111] : memref<1x18x4x18xf32, #tpu.memory_space<vmem>>, vector<1x1x4x18xf32>
    %161 = vector.shape_cast %160 : vector<1x1x4x18xf32> to vector<4x18xf32>
    %162 = vector.extract_strided_slice %161 {offsets = [0, 0], sizes = [4, 16], strides = [1, 1]} : vector<4x18xf32> to vector<4x16xf32>
    %163 = vector.extract_strided_slice %161 {offsets = [0, 1], sizes = [4, 16], strides = [1, 1]} : vector<4x18xf32> to vector<4x16xf32>
    %164 = vector.extract_strided_slice %161 {offsets = [0, 2], sizes = [4, 16], strides = [1, 1]} : vector<4x18xf32> to vector<4x16xf32>
    %c0_112 = arith.constant 0 : index
    %c11_113 = arith.constant 11 : index
    %c0_114 = arith.constant 0 : index
    %c0_115 = arith.constant 0 : index
    %165 = vector.load %arg2[%c0_112, %c11_113, %c0_114, %c0_115] : memref<1x18x4x18xf32, #tpu.memory_space<vmem>>, vector<1x1x4x18xf32>
    %166 = vector.shape_cast %165 : vector<1x1x4x18xf32> to vector<4x18xf32>
    %167 = vector.extract_strided_slice %166 {offsets = [0, 0], sizes = [4, 16], strides = [1, 1]} : vector<4x18xf32> to vector<4x16xf32>
    %168 = vector.extract_strided_slice %166 {offsets = [0, 1], sizes = [4, 16], strides = [1, 1]} : vector<4x18xf32> to vector<4x16xf32>
    %169 = vector.extract_strided_slice %166 {offsets = [0, 2], sizes = [4, 16], strides = [1, 1]} : vector<4x18xf32> to vector<4x16xf32>
    %c0_116 = arith.constant 0 : index
    %c12 = arith.constant 12 : index
    %c0_117 = arith.constant 0 : index
    %c0_118 = arith.constant 0 : index
    %170 = vector.load %arg2[%c0_116, %c12, %c0_117, %c0_118] : memref<1x18x4x18xf32, #tpu.memory_space<vmem>>, vector<1x1x4x18xf32>
    %171 = vector.shape_cast %170 : vector<1x1x4x18xf32> to vector<4x18xf32>
    %172 = vector.extract_strided_slice %171 {offsets = [0, 0], sizes = [4, 16], strides = [1, 1]} : vector<4x18xf32> to vector<4x16xf32>
    %173 = vector.extract_strided_slice %171 {offsets = [0, 1], sizes = [4, 16], strides = [1, 1]} : vector<4x18xf32> to vector<4x16xf32>
    %174 = vector.extract_strided_slice %171 {offsets = [0, 2], sizes = [4, 16], strides = [1, 1]} : vector<4x18xf32> to vector<4x16xf32>
    %175 = tpu.concatenate %162, %163, %164, %167, %168, %169, %172, %173, %174 in 0 : vector<4x16xf32>, vector<4x16xf32>, vector<4x16xf32>, vector<4x16xf32>, vector<4x16xf32>, vector<4x16xf32>, vector<4x16xf32>, vector<4x16xf32>, vector<4x16xf32> -> vector<36x16xf32>
    %c0_119 = arith.constant 0 : index
    %c11_120 = arith.constant 11 : index
    %c0_121 = arith.constant 0 : index
    %c0_122 = arith.constant 0 : index
    %176 = vector.load %arg2[%c0_119, %c11_120, %c0_121, %c0_122] : memref<1x18x4x18xf32, #tpu.memory_space<vmem>>, vector<1x1x4x18xf32>
    %177 = vector.shape_cast %176 : vector<1x1x4x18xf32> to vector<4x18xf32>
    %178 = vector.extract_strided_slice %177 {offsets = [0, 0], sizes = [4, 16], strides = [1, 1]} : vector<4x18xf32> to vector<4x16xf32>
    %179 = vector.extract_strided_slice %177 {offsets = [0, 1], sizes = [4, 16], strides = [1, 1]} : vector<4x18xf32> to vector<4x16xf32>
    %180 = vector.extract_strided_slice %177 {offsets = [0, 2], sizes = [4, 16], strides = [1, 1]} : vector<4x18xf32> to vector<4x16xf32>
    %c0_123 = arith.constant 0 : index
    %c12_124 = arith.constant 12 : index
    %c0_125 = arith.constant 0 : index
    %c0_126 = arith.constant 0 : index
    %181 = vector.load %arg2[%c0_123, %c12_124, %c0_125, %c0_126] : memref<1x18x4x18xf32, #tpu.memory_space<vmem>>, vector<1x1x4x18xf32>
    %182 = vector.shape_cast %181 : vector<1x1x4x18xf32> to vector<4x18xf32>
    %183 = vector.extract_strided_slice %182 {offsets = [0, 0], sizes = [4, 16], strides = [1, 1]} : vector<4x18xf32> to vector<4x16xf32>
    %184 = vector.extract_strided_slice %182 {offsets = [0, 1], sizes = [4, 16], strides = [1, 1]} : vector<4x18xf32> to vector<4x16xf32>
    %185 = vector.extract_strided_slice %182 {offsets = [0, 2], sizes = [4, 16], strides = [1, 1]} : vector<4x18xf32> to vector<4x16xf32>
    %c0_127 = arith.constant 0 : index
    %c13 = arith.constant 13 : index
    %c0_128 = arith.constant 0 : index
    %c0_129 = arith.constant 0 : index
    %186 = vector.load %arg2[%c0_127, %c13, %c0_128, %c0_129] : memref<1x18x4x18xf32, #tpu.memory_space<vmem>>, vector<1x1x4x18xf32>
    %187 = vector.shape_cast %186 : vector<1x1x4x18xf32> to vector<4x18xf32>
    %188 = vector.extract_strided_slice %187 {offsets = [0, 0], sizes = [4, 16], strides = [1, 1]} : vector<4x18xf32> to vector<4x16xf32>
    %189 = vector.extract_strided_slice %187 {offsets = [0, 1], sizes = [4, 16], strides = [1, 1]} : vector<4x18xf32> to vector<4x16xf32>
    %190 = vector.extract_strided_slice %187 {offsets = [0, 2], sizes = [4, 16], strides = [1, 1]} : vector<4x18xf32> to vector<4x16xf32>
    %191 = tpu.concatenate %178, %179, %180, %183, %184, %185, %188, %189, %190 in 0 : vector<4x16xf32>, vector<4x16xf32>, vector<4x16xf32>, vector<4x16xf32>, vector<4x16xf32>, vector<4x16xf32>, vector<4x16xf32>, vector<4x16xf32>, vector<4x16xf32> -> vector<36x16xf32>
    %c0_130 = arith.constant 0 : index
    %c12_131 = arith.constant 12 : index
    %c0_132 = arith.constant 0 : index
    %c0_133 = arith.constant 0 : index
    %192 = vector.load %arg2[%c0_130, %c12_131, %c0_132, %c0_133] : memref<1x18x4x18xf32, #tpu.memory_space<vmem>>, vector<1x1x4x18xf32>
    %193 = vector.shape_cast %192 : vector<1x1x4x18xf32> to vector<4x18xf32>
    %194 = vector.extract_strided_slice %193 {offsets = [0, 0], sizes = [4, 16], strides = [1, 1]} : vector<4x18xf32> to vector<4x16xf32>
    %195 = vector.extract_strided_slice %193 {offsets = [0, 1], sizes = [4, 16], strides = [1, 1]} : vector<4x18xf32> to vector<4x16xf32>
    %196 = vector.extract_strided_slice %193 {offsets = [0, 2], sizes = [4, 16], strides = [1, 1]} : vector<4x18xf32> to vector<4x16xf32>
    %c0_134 = arith.constant 0 : index
    %c13_135 = arith.constant 13 : index
    %c0_136 = arith.constant 0 : index
    %c0_137 = arith.constant 0 : index
    %197 = vector.load %arg2[%c0_134, %c13_135, %c0_136, %c0_137] : memref<1x18x4x18xf32, #tpu.memory_space<vmem>>, vector<1x1x4x18xf32>
    %198 = vector.shape_cast %197 : vector<1x1x4x18xf32> to vector<4x18xf32>
    %199 = vector.extract_strided_slice %198 {offsets = [0, 0], sizes = [4, 16], strides = [1, 1]} : vector<4x18xf32> to vector<4x16xf32>
    %200 = vector.extract_strided_slice %198 {offsets = [0, 1], sizes = [4, 16], strides = [1, 1]} : vector<4x18xf32> to vector<4x16xf32>
    %201 = vector.extract_strided_slice %198 {offsets = [0, 2], sizes = [4, 16], strides = [1, 1]} : vector<4x18xf32> to vector<4x16xf32>
    %c0_138 = arith.constant 0 : index
    %c14 = arith.constant 14 : index
    %c0_139 = arith.constant 0 : index
    %c0_140 = arith.constant 0 : index
    %202 = vector.load %arg2[%c0_138, %c14, %c0_139, %c0_140] : memref<1x18x4x18xf32, #tpu.memory_space<vmem>>, vector<1x1x4x18xf32>
    %203 = vector.shape_cast %202 : vector<1x1x4x18xf32> to vector<4x18xf32>
    %204 = vector.extract_strided_slice %203 {offsets = [0, 0], sizes = [4, 16], strides = [1, 1]} : vector<4x18xf32> to vector<4x16xf32>
    %205 = vector.extract_strided_slice %203 {offsets = [0, 1], sizes = [4, 16], strides = [1, 1]} : vector<4x18xf32> to vector<4x16xf32>
    %206 = vector.extract_strided_slice %203 {offsets = [0, 2], sizes = [4, 16], strides = [1, 1]} : vector<4x18xf32> to vector<4x16xf32>
    %207 = tpu.concatenate %194, %195, %196, %199, %200, %201, %204, %205, %206 in 0 : vector<4x16xf32>, vector<4x16xf32>, vector<4x16xf32>, vector<4x16xf32>, vector<4x16xf32>, vector<4x16xf32>, vector<4x16xf32>, vector<4x16xf32>, vector<4x16xf32> -> vector<36x16xf32>
    %c0_141 = arith.constant 0 : index
    %c13_142 = arith.constant 13 : index
    %c0_143 = arith.constant 0 : index
    %c0_144 = arith.constant 0 : index
    %208 = vector.load %arg2[%c0_141, %c13_142, %c0_143, %c0_144] : memref<1x18x4x18xf32, #tpu.memory_space<vmem>>, vector<1x1x4x18xf32>
    %209 = vector.shape_cast %208 : vector<1x1x4x18xf32> to vector<4x18xf32>
    %210 = vector.extract_strided_slice %209 {offsets = [0, 0], sizes = [4, 16], strides = [1, 1]} : vector<4x18xf32> to vector<4x16xf32>
    %211 = vector.extract_strided_slice %209 {offsets = [0, 1], sizes = [4, 16], strides = [1, 1]} : vector<4x18xf32> to vector<4x16xf32>
    %212 = vector.extract_strided_slice %209 {offsets = [0, 2], sizes = [4, 16], strides = [1, 1]} : vector<4x18xf32> to vector<4x16xf32>
    %c0_145 = arith.constant 0 : index
    %c14_146 = arith.constant 14 : index
    %c0_147 = arith.constant 0 : index
    %c0_148 = arith.constant 0 : index
    %213 = vector.load %arg2[%c0_145, %c14_146, %c0_147, %c0_148] : memref<1x18x4x18xf32, #tpu.memory_space<vmem>>, vector<1x1x4x18xf32>
    %214 = vector.shape_cast %213 : vector<1x1x4x18xf32> to vector<4x18xf32>
    %215 = vector.extract_strided_slice %214 {offsets = [0, 0], sizes = [4, 16], strides = [1, 1]} : vector<4x18xf32> to vector<4x16xf32>
    %216 = vector.extract_strided_slice %214 {offsets = [0, 1], sizes = [4, 16], strides = [1, 1]} : vector<4x18xf32> to vector<4x16xf32>
    %217 = vector.extract_strided_slice %214 {offsets = [0, 2], sizes = [4, 16], strides = [1, 1]} : vector<4x18xf32> to vector<4x16xf32>
    %c0_149 = arith.constant 0 : index
    %c15 = arith.constant 15 : index
    %c0_150 = arith.constant 0 : index
    %c0_151 = arith.constant 0 : index
    %218 = vector.load %arg2[%c0_149, %c15, %c0_150, %c0_151] : memref<1x18x4x18xf32, #tpu.memory_space<vmem>>, vector<1x1x4x18xf32>
    %219 = vector.shape_cast %218 : vector<1x1x4x18xf32> to vector<4x18xf32>
    %220 = vector.extract_strided_slice %219 {offsets = [0, 0], sizes = [4, 16], strides = [1, 1]} : vector<4x18xf32> to vector<4x16xf32>
    %221 = vector.extract_strided_slice %219 {offsets = [0, 1], sizes = [4, 16], strides = [1, 1]} : vector<4x18xf32> to vector<4x16xf32>
    %222 = vector.extract_strided_slice %219 {offsets = [0, 2], sizes = [4, 16], strides = [1, 1]} : vector<4x18xf32> to vector<4x16xf32>
    %223 = tpu.concatenate %210, %211, %212, %215, %216, %217, %220, %221, %222 in 0 : vector<4x16xf32>, vector<4x16xf32>, vector<4x16xf32>, vector<4x16xf32>, vector<4x16xf32>, vector<4x16xf32>, vector<4x16xf32>, vector<4x16xf32>, vector<4x16xf32> -> vector<36x16xf32>
    %c0_152 = arith.constant 0 : index
    %c14_153 = arith.constant 14 : index
    %c0_154 = arith.constant 0 : index
    %c0_155 = arith.constant 0 : index
    %224 = vector.load %arg2[%c0_152, %c14_153, %c0_154, %c0_155] : memref<1x18x4x18xf32, #tpu.memory_space<vmem>>, vector<1x1x4x18xf32>
    %225 = vector.shape_cast %224 : vector<1x1x4x18xf32> to vector<4x18xf32>
    %226 = vector.extract_strided_slice %225 {offsets = [0, 0], sizes = [4, 16], strides = [1, 1]} : vector<4x18xf32> to vector<4x16xf32>
    %227 = vector.extract_strided_slice %225 {offsets = [0, 1], sizes = [4, 16], strides = [1, 1]} : vector<4x18xf32> to vector<4x16xf32>
    %228 = vector.extract_strided_slice %225 {offsets = [0, 2], sizes = [4, 16], strides = [1, 1]} : vector<4x18xf32> to vector<4x16xf32>
    %c0_156 = arith.constant 0 : index
    %c15_157 = arith.constant 15 : index
    %c0_158 = arith.constant 0 : index
    %c0_159 = arith.constant 0 : index
    %229 = vector.load %arg2[%c0_156, %c15_157, %c0_158, %c0_159] : memref<1x18x4x18xf32, #tpu.memory_space<vmem>>, vector<1x1x4x18xf32>
    %230 = vector.shape_cast %229 : vector<1x1x4x18xf32> to vector<4x18xf32>
    %231 = vector.extract_strided_slice %230 {offsets = [0, 0], sizes = [4, 16], strides = [1, 1]} : vector<4x18xf32> to vector<4x16xf32>
    %232 = vector.extract_strided_slice %230 {offsets = [0, 1], sizes = [4, 16], strides = [1, 1]} : vector<4x18xf32> to vector<4x16xf32>
    %233 = vector.extract_strided_slice %230 {offsets = [0, 2], sizes = [4, 16], strides = [1, 1]} : vector<4x18xf32> to vector<4x16xf32>
    %c0_160 = arith.constant 0 : index
    %c16 = arith.constant 16 : index
    %c0_161 = arith.constant 0 : index
    %c0_162 = arith.constant 0 : index
    %234 = vector.load %arg2[%c0_160, %c16, %c0_161, %c0_162] : memref<1x18x4x18xf32, #tpu.memory_space<vmem>>, vector<1x1x4x18xf32>
    %235 = vector.shape_cast %234 : vector<1x1x4x18xf32> to vector<4x18xf32>
    %236 = vector.extract_strided_slice %235 {offsets = [0, 0], sizes = [4, 16], strides = [1, 1]} : vector<4x18xf32> to vector<4x16xf32>
    %237 = vector.extract_strided_slice %235 {offsets = [0, 1], sizes = [4, 16], strides = [1, 1]} : vector<4x18xf32> to vector<4x16xf32>
    %238 = vector.extract_strided_slice %235 {offsets = [0, 2], sizes = [4, 16], strides = [1, 1]} : vector<4x18xf32> to vector<4x16xf32>
    %239 = tpu.concatenate %226, %227, %228, %231, %232, %233, %236, %237, %238 in 0 : vector<4x16xf32>, vector<4x16xf32>, vector<4x16xf32>, vector<4x16xf32>, vector<4x16xf32>, vector<4x16xf32>, vector<4x16xf32>, vector<4x16xf32>, vector<4x16xf32> -> vector<36x16xf32>
    %c0_163 = arith.constant 0 : index
    %c15_164 = arith.constant 15 : index
    %c0_165 = arith.constant 0 : index
    %c0_166 = arith.constant 0 : index
    %240 = vector.load %arg2[%c0_163, %c15_164, %c0_165, %c0_166] : memref<1x18x4x18xf32, #tpu.memory_space<vmem>>, vector<1x1x4x18xf32>
    %241 = vector.shape_cast %240 : vector<1x1x4x18xf32> to vector<4x18xf32>
    %242 = vector.extract_strided_slice %241 {offsets = [0, 0], sizes = [4, 16], strides = [1, 1]} : vector<4x18xf32> to vector<4x16xf32>
    %243 = vector.extract_strided_slice %241 {offsets = [0, 1], sizes = [4, 16], strides = [1, 1]} : vector<4x18xf32> to vector<4x16xf32>
    %244 = vector.extract_strided_slice %241 {offsets = [0, 2], sizes = [4, 16], strides = [1, 1]} : vector<4x18xf32> to vector<4x16xf32>
    %c0_167 = arith.constant 0 : index
    %c16_168 = arith.constant 16 : index
    %c0_169 = arith.constant 0 : index
    %c0_170 = arith.constant 0 : index
    %245 = vector.load %arg2[%c0_167, %c16_168, %c0_169, %c0_170] : memref<1x18x4x18xf32, #tpu.memory_space<vmem>>, vector<1x1x4x18xf32>
    %246 = vector.shape_cast %245 : vector<1x1x4x18xf32> to vector<4x18xf32>
    %247 = vector.extract_strided_slice %246 {offsets = [0, 0], sizes = [4, 16], strides = [1, 1]} : vector<4x18xf32> to vector<4x16xf32>
    %248 = vector.extract_strided_slice %246 {offsets = [0, 1], sizes = [4, 16], strides = [1, 1]} : vector<4x18xf32> to vector<4x16xf32>
    %249 = vector.extract_strided_slice %246 {offsets = [0, 2], sizes = [4, 16], strides = [1, 1]} : vector<4x18xf32> to vector<4x16xf32>
    %c0_171 = arith.constant 0 : index
    %c17 = arith.constant 17 : index
    %c0_172 = arith.constant 0 : index
    %c0_173 = arith.constant 0 : index
    %250 = vector.load %arg2[%c0_171, %c17, %c0_172, %c0_173] : memref<1x18x4x18xf32, #tpu.memory_space<vmem>>, vector<1x1x4x18xf32>
    %251 = vector.shape_cast %250 : vector<1x1x4x18xf32> to vector<4x18xf32>
    %252 = vector.extract_strided_slice %251 {offsets = [0, 0], sizes = [4, 16], strides = [1, 1]} : vector<4x18xf32> to vector<4x16xf32>
    %253 = vector.extract_strided_slice %251 {offsets = [0, 1], sizes = [4, 16], strides = [1, 1]} : vector<4x18xf32> to vector<4x16xf32>
    %254 = vector.extract_strided_slice %251 {offsets = [0, 2], sizes = [4, 16], strides = [1, 1]} : vector<4x18xf32> to vector<4x16xf32>
    %255 = tpu.concatenate %242, %243, %244, %247, %248, %249, %252, %253, %254 in 0 : vector<4x16xf32>, vector<4x16xf32>, vector<4x16xf32>, vector<4x16xf32>, vector<4x16xf32>, vector<4x16xf32>, vector<4x16xf32>, vector<4x16xf32>, vector<4x16xf32> -> vector<36x16xf32>
    %256 = tpu.concatenate %15, %31, %47, %63, %79, %95, %111, %127, %143, %159, %175, %191, %207, %223, %239, %255 in 1 : vector<36x16xf32>, vector<36x16xf32>, vector<36x16xf32>, vector<36x16xf32>, vector<36x16xf32>, vector<36x16xf32>, vector<36x16xf32>, vector<36x16xf32>, vector<36x16xf32>, vector<36x16xf32>, vector<36x16xf32>, vector<36x16xf32>, vector<36x16xf32>, vector<36x16xf32>, vector<36x16xf32>, vector<36x16xf32> -> vector<36x256xf32>
    %c0_174 = arith.constant 0 : index
    %c0_175 = arith.constant 0 : index
    %257 = vector.load %arg3[%c0_174, %c0_175] : memref<8x36xf32, #tpu.memory_space<vmem>>, vector<8x36xf32>
    %cst = arith.constant dense<0.000000e+00> : vector<8x256xf32>
    %258 = tpu.matmul %257, %256, %cst {dimension_numbers = #tpu.dot_dimension_numbers<[1], [0], [0], [1], [0, 0, 1, 1], [], []>} : vector<8x36xf32>, vector<36x256xf32>, vector<8x256xf32> -> vector<8x256xf32>
    %c0_176 = arith.constant 0 : index
    %c0_177 = arith.constant 0 : index
    %259 = vector.load %arg4[%c0_176, %c0_177] : memref<8x1xf32, #tpu.memory_space<vmem>>, vector<8x1xf32>
    %260 = vector.broadcast %259 : vector<8x1xf32> to vector<8x256xf32>
    %261 = arith.addf %258, %260 : vector<8x256xf32>
    %cst_178 = arith.constant 0.000000e+00 : f32
    %262 = vector.broadcast %cst_178 : f32 to vector<8x256xf32>
    %263 = arith.maximumf %261, %262 : vector<8x256xf32>
    %c0_179 = arith.constant 0 : index
    %c0_180 = arith.constant 0 : index
    %c0_181 = arith.constant 0 : index
    %264 = vector.load %arg5[%c0_179, %c0_180, %c0_181] : memref<1x8x256xf32, #tpu.memory_space<vmem>>, vector<1x8x256xf32>
    %265 = vector.shape_cast %264 : vector<1x8x256xf32> to vector<8x256xf32>
    %266 = vector.shape_cast %263 : vector<8x256xf32> to vector<1x8x256xf32>
    tpu.vector_store %arg5[%c0_179, %c0_180, %c0_181], %266 {strides = array<i32>} : memref<1x8x256xf32, #tpu.memory_space<vmem>>, vector<1x8x256xf32>,
    return
  }
  func.func @transform_0(%arg0: i32, %arg1: i32) -> (i32, i32, i32, i32) {
    %c0_i32 = arith.constant 0 : i32
    %c0_i32_0 = arith.constant 0 : i32
    %c0_i32_1 = arith.constant 0 : i32
    %c0_i32_2 = arith.constant 0 : i32
    return %arg0, %c0_i32, %c0_i32_0, %c0_i32_1 : i32, i32, i32, i32
  }
  func.func @transform_1(%arg0: i32, %arg1: i32) -> (i32, i32) {
    %c0_i32 = arith.constant 0 : i32
    %c0_i32_0 = arith.constant 0 : i32
    %c0_i32_1 = arith.constant 0 : i32
    return %c0_i32, %c0_i32_0 : i32, i32
  }
  func.func @transform_2(%arg0: i32, %arg1: i32) -> (i32, i32) {
    %c0_i32 = arith.constant 0 : i32
    %c0_i32_0 = arith.constant 0 : i32
    %c0_i32_1 = arith.constant 0 : i32
    return %c0_i32, %c0_i32_0 : i32, i32
  }
  func.func @transform_3(%arg0: i32, %arg1: i32) -> (i32, i32, i32) {
    %c0_i32 = arith.constant 0 : i32
    %c0_i32_0 = arith.constant 0 : i32
    return %arg0, %c0_i32, %arg1 : i32, i32, i32
  }
}

</mosaic_0001>

<bundles_post_ra>
// kernel: conv_bn_relu.2
= control target key start
LH: loop header
LB: loop body
LE: loop exit
PB: predicated region body
PF: predicated region fallthrough
CT: control target
= control target key end

     0   :  { %s1361_s9 = smov 0   ;;  %s1363_s10 = smov 0   ;;  %s2033_s0 = inlined_call_operand.vmem [shape: f32[2,18,4,18], index: 0, kind: input, shape index: {}]   ;;  %s2034_s1 = inlined_call_operand.vmem [shape: f32[8,36], index: 1, kind: input, shape index: {}]   ;;  %s2035_s2 = inlined_call_operand.vmem [shape: f32[2,8,2], index: 2, kind: output, shape index: {}]  }
   0x1   :  { %s1365_s11 = smov 0  }
   0x2 LB: > { %s31_s12 = sadd.s32 1, %s1330_s10  ;;  %p981_p0 = scmp.ge.s32.totalorder %s1334_s11, 1  ;;  %s1334_s11 = sphi %s1365_s11, %s12_s11   ;;  %s1330_s10 = sphi %s1363_s10, %s2064_s10   ;;  %s1326_s9 = sphi %s1361_s9, %s2063_s9  }
   0x3   : > { %p33_p1 = scmp.ge.s32.totalorder %s31_s12, 2  ;;  %p135_p2 = scmp.lt.s32.totalorder %s1334_s11, 3 }
   0x5   : > { %s2066_s12 = smov (%p33_p1, %s31_s12), 0  ;;  %p136_p3 = pnand %p981_p0, %p135_p2 }
   0x7   : > { %139 = sbr.rel (%p136_p3) target bundleno = 673 (0x2a1), region = 28 }
   0xc   : > { %p158_p4 = scmp.lt.s32.totalorder %s1326_s9, 1  ;;  %s1336_s17 = smov 126   ;;  %vm206_vm0 = vcmask 1043456   ;;  %vm771_vm1 = vcmask 130048   ;;  %vm777_vm2 = vcmask 261120   ;;  %vm783_vm3 = vcmask 392192  }
   0xd   : > { %s1337_s18 = smov 127   ;;  %s1338_s19 = smov 16   ;;  %vm789_vm4 = vcmask 523264   ;;  %vm795_vm5 = vcmask 654336   ;;  %vm801_vm6 = vcmask 785408   ;;  %vm807_vm7 = vcmask 916480  }
   0xe   : > { %s2068_s9 = smov (!%p158_p4, %s1326_s9), 1  ;;  %s1339_s20 = smov 32   ;;  %vm849_vm8 = vcmask 293888   ;;  %vm174_vm9 = vcmask 15360   ;;  %vm908_vm10 = vcmask 7168  }
   0xf   : > { %s1007_s13 = smul.u32 72, %s2068_s9  ;;  %s1340_s21 = smov 48  }
  0x10   : > { %s1341_s22 = smov 64   ;;  %s1342_s23 = smov 80  }
  0x11   : > { %s1385_s16 = scalar_lea.vmem %s2033_s0, %s1007_s13  ;;  %s1343_s24 = smov 96  }
  0x12   : > { %v1388_v0 = vld [vmem:[%s1385_s16 + $0x8] sm:$0xf]  ;;  %v1391_v1 = vld [vmem:[%s1385_s16 + $0x4] sm:$0xf]  ;;  %v1394_v2 = vld [vmem:[%s1385_s16] sm:$0xf] }
  0x13   : > { %2043 = vst [vmem:[#allocation2_spill] sm:$0xff] %v1394_v2  ;;  %203 = vrot.lane.b32.xlu1 %v1388_v0, %s1336_s17  ;;  %v1399_v3 = vrot.slane %v1388_v0, 4  ;;  %v182_v4 = vrot.slane %v1394_v2, 4  ;;  %v1403_v5 = vrot.slane %v1391_v1, 4  ;;  %v1406_v6 = vld [vmem:[%s1385_s16 + $0xc] sm:$0xf] }
  0x14   : > { %v1416_v10 = vrot.slane %v1406_v6, 4  ;;  %v1419_v11 = vld [vmem:[%s1385_s16 + $0x10] sm:$0xf]  ;;  %v1434_v16 = vld [vmem:[%s1385_s16 + $0x14] sm:$0xf]  ;;  %s1344_s25 = smov 112  }
  0x15   : > { %2044 = vst [vmem:[#allocation3_spill] sm:$0xff] %v1403_v5  ;;  %v1057_v7 = vpack.i.bf16 %v1399_v3, %v1391_v1  ;;  %v1042_v8 = vpack.i.bf16 %v1391_v1, %v182_v4  ;;  %v1052_v9 = vpack.i.bf16 %v1403_v5, %v1399_v3  ;;  %v1047_v13 = vpack.i.bf16 %v1403_v5, %v1394_v2  ;;  %v1448_v20 = vld [vmem:[%s1385_s16 + $0x18] sm:$0xf]  ;;  %v1464_v24 = vld [vmem:[%s1385_s16 + $0x1c] sm:$0xf]  ;;  %s983_s28 = sshll.u32 %s2068_s9, 3 }
  0x16   : > { %v1062_v12 = vpack.i.bf16 %v1416_v10, %v1388_v0  ;;  %v1427_v14 = vrot.slane %v1419_v11, 4  ;;  %v1440_v18 = vrot.slane %v1434_v16, 4  ;;  %v1452_v21 = vrot.slane %v1448_v20, 4  ;;  %v1467_v25 = vld [vmem:[%s1385_s16 + $0x20] sm:$0xf]  ;;  %s167_s3 = scalar_lea.vmem %s2035_s2, %s983_s28 }
  0x17   : > { %1058 = vrot.lane.b32.xlu2 %v1057_v7, %s1336_s17  ;;  %1043 = vrot.lane.b32.xlu0 %v1042_v8, %s1337_s18  ;;  %v1473_v26 = vrot.slane %v1464_v24, 4  ;;  %v1476_v27 = vrot.slane %v1467_v25, 4  ;;  %v1485_v30 = vld [vmem:[%s1385_s16 + $0x24] sm:$0xf]  ;;  %v1493_v32 = vld [vmem:[%s1385_s16 + $0x28] sm:$0xf] }
  0x18   : > { %v1067_v15 = vpack.i.bf16 %v1427_v14, %v1406_v6  ;;  %v1072_v17 = vpack.i.bf16 %v1427_v14, %v1416_v10  ;;  %v1077_v19 = vpack.i.bf16 %v1440_v18, %v1419_v11  ;;  %v1087_v22 = vpack.i.bf16 %v1452_v21, %v1440_v18  ;;  %v1509_v37 = vld [vmem:[%s1385_s16 + $0x2c] sm:$0xf]  ;;  %v1523_v41 = vld [vmem:[%s1385_s16 + $0x30] sm:$0xf]  ;;  %v1539_v45 = vld [vmem:[%s1385_s16 + $0x34] sm:$0xf] }
  0x19   : > { %v1082_v23 = vpack.i.bf16 %v1452_v21, %v1434_v16  ;;  %v1097_v28 = vpack.i.bf16 %v1476_v27, %v1464_v24  ;;  %v1092_v29 = vpack.i.bf16 %v1473_v26, %v1448_v20  ;;  %v1490_v31 = vrot.slane %v1485_v30, 4  ;;  %v1542_v46 = vld [vmem:[%s1385_s16 + $0x38] sm:$0xf]  ;;  %v1566_v52 = vld [vmem:[%s1385_s16 + $0x3c] sm:$0xf] }
  0x1a   : > { %v1102_v34 = vpack.i.bf16 %v1476_v27, %v1473_v26  ;;  %v1502_v35 = vrot.slane %v1493_v32, 4  ;;  %v1515_v39 = vrot.slane %v1509_v37, 4  ;;  %v1527_v42 = vrot.slane %v1523_v41, 4  ;;  %v1569_v53 = vld [vmem:[%s1385_s16 + $0x40] sm:$0xf] }
  0x1b   : > { %1053 = vrot.lane.b32.xlu1 %v1052_v9, %s1337_s18  ;;  %2045 = vst [vmem:[#allocation4_spill] sm:$0xff] %v1490_v31  ;;  %v1107_v33 = vpack.i.bf16 %v1490_v31, %v1467_v25  ;;  %v1548_v47 = vrot.slane %v1539_v45, 4  ;;  %v1551_v48 = vrot.slane %v1542_v46, 4  ;;  %v2036_v54 = vrot.slane %v1566_v52, 4  ;;  %v1585_v58 = vld [vmem:[%s1385_s16 + $0x44] sm:$0xf] }
  0x1c   : > { %v1112_v36 = vpack.i.bf16 %v1502_v35, %v1485_v30  ;;  %v1117_v38 = vpack.i.bf16 %v1502_v35, %v1490_v31  ;;  %v1122_v40 = vpack.i.bf16 %v1515_v39, %v1493_v32  ;;  %v1132_v43 = vpack.i.bf16 %v1527_v42, %v1515_v39 }
  0x1d   : > { %v1127_v44 = vpack.i.bf16 %v1527_v42, %v1509_v37  ;;  %v1142_v49 = vpack.i.bf16 %v1551_v48, %v1539_v45  ;;  %v1137_v50 = vpack.i.bf16 %v1548_v47, %v1523_v41  ;;  %v1147_v51 = vpack.i.bf16 %v1551_v48, %v1548_v47 }
  0x1e   : > { %v2037_v55 = vrot.slane %v1569_v53, 4  ;;  %v1162_v59 = vpack.i.bf16 %v1569_v53, %v1566_v52  ;;  %v507_v60 = vrot.slane %v1585_v58, 4 }
  0x1f   : > { %1063 = vrot.lane.b32.xlu2 %v1062_v12, %s1337_s18  ;;  %1048 = vrot.lane.b32.xlu0 %v1047_v13, %s1336_s17 }
  0x20   : > { %v1152_v57 = vpack.i.bf16 %v2037_v55, %v2036_v54  ;;  %v1157_v4 = vpack.i.bf16 %v507_v60, %v1542_v46 }
  0x23   : > { %1068 = vrot.lane.b32.xlu1 %v1067_v15, %s1337_s18 }
  0x27   : > { %1073 = vrot.lane.b32.xlu2 %v1072_v17, %s1336_s17  ;;  %231 = vrot.lane.b32.xlu0 %v1406_v6, %s1336_s17 }
  0x2b   : > { %1078 = vrot.lane.b32.xlu1 %v1077_v19, %s1337_s18 }
  0x2f   : > { %271 = vrot.lane.b32.xlu2 %v1434_v16, %s1336_s17  ;;  %251 = vrot.lane.b32.xlu0 %v1419_v11, %s1336_s17 }
  0x33   : > { %1088 = vrot.lane.b32.xlu1 %v1087_v22, %s1336_s17 }
  0x37   : > { %291 = vrot.lane.b32.xlu2 %v1448_v20, %s1336_s17  ;;  %1083 = vrot.lane.b32.xlu0 %v1082_v23, %s1337_s18 }
  0x3b   : > { %311 = vrot.lane.b32.xlu1 %v1464_v24, %s1336_s17 }
  0x3f   : > { %1098 = vrot.lane.b32.xlu2 %v1097_v28, %s1337_s18  ;;  %1093 = vrot.lane.b32.xlu0 %v1092_v29, %s1337_s18 }
  0x43   : > { %331 = vrot.lane.b32.xlu1 %v1467_v25, %s1336_s17 }
  0x47   : > { %1108 = vrot.lane.b32.xlu2 %v1107_v33, %s1337_s18  ;;  %1103 = vrot.lane.b32.xlu0 %v1102_v34, %s1336_s17 }
  0x4b   : > { %1113 = vrot.lane.b32.xlu1 %v1112_v36, %s1337_s18 }
  0x4f   : > { %1118 = vrot.lane.b32.xlu2 %v1117_v38, %s1336_s17  ;;  %351 = vrot.lane.b32.xlu0 %v1485_v30, %s1336_s17 }
  0x53   : > { %1123 = vrot.lane.b32.xlu1 %v1122_v40, %s1337_s18 }
  0x57   : > { %392 = vrot.lane.b32.xlu2 %v1509_v37, %s1336_s17  ;;  %371 = vrot.lane.b32.xlu0 %v1493_v32, %s1336_s17 }
  0x5b   : > { %1133 = vrot.lane.b32.xlu1 %v1132_v43, %s1336_s17 }
  0x5f   : > { %411 = vrot.lane.b32.xlu2 %v1523_v41, %s1336_s17  ;;  %1128 = vrot.lane.b32.xlu0 %v1127_v44, %s1337_s18 }
  0x63   : > { %431 = vrot.lane.b32.xlu1 %v1539_v45, %s1336_s17 }
  0x67   : > { %1143 = vrot.lane.b32.xlu2 %v1142_v49, %s1337_s18  ;;  %1138 = vrot.lane.b32.xlu0 %v1137_v50, %s1337_s18 }
  0x6b   : > { %451 = vrot.lane.b32.xlu1 %v1542_v46, %s1336_s17 }
  0x6f   : > { %471 = vrot.lane.b32.xlu2 %v1566_v52, %s1336_s17  ;;  %1148 = vrot.lane.b32.xlu0 %v1147_v51, %s1336_s17 }
  0x71   : > { %v1576_v56 = vpop.permute.xlu2 %1058 }
  0x72   : > { %v1061_v61 = vunpack.i.h.bf16 %v1576_v56 }
  0x73   : > { %491 = vrot.lane.b32.xlu1 %v1569_v53, %s1336_s17 }
  0x77   : > { %1153 = vrot.lane.b32.xlu0 %v1152_v57, %s1337_s18  ;;  %511 = vrot.lane.b32.xlu2 %v1585_v58, %s1336_s17 }
  0x79   : > { %v1594_v62 = vpop.permute.xlu2 %1063 }
  0x7a   : > { %v1065_v63 = vunpack.i.l.bf16 %v1594_v62 }
  0x7b   : > { %1163 = vrot.lane.b32.xlu1 %v1162_v59, %s1337_s18 }
  0x7c   : > { %v1600_v7 = vsel %vm206_vm0, %v1065_v63, %v1061_v61 }
  0x7f   : > { %1158 = vrot.lane.b32.xlu0 %v1157_v4, %s1337_s18  ;;  %1168 = vrot.lane.b32.xlu2 %v1152_v57, %s1336_s17 }
  0x81   : > { %v1074_v8 = vpop.permute.xlu2 %1073 }
  0x82   : > { %v1075_v28 = vunpack.i.l.bf16 %v1074_v8  ;;  %v1076_v44 = vunpack.i.h.bf16 %v1074_v8 }
  0x85   : > { %v1604_v9 = vpop.permute.xlu1 %203 }
  0x89   : > { %v1606_v12 = vpop.permute.xlu2 %271  ;;  %v1608_v13 = vpop.permute.xlu0 %1043 }
  0x8a   : > { %2046 = vst [vmem:[#allocation5_spill] sm:$0xff] %v1608_v13  ;;  %v1046_v22 = vunpack.i.h.bf16 %v1608_v13 }
  0x8d   : > { %v1610_v15 = vpop.permute.xlu1 %1053 }
  0x8e   : > { %v1056_v50 = vunpack.i.h.bf16 %v1610_v15 }
  0x90   : > { %v1640_v61 = vsel %vm206_vm0, %v1391_v1, %v1056_v50 }
  0x91   : > { %v1612_v17 = vpop.permute.xlu2 %291  ;;  %v1614_v19 = vpop.permute.xlu0 %1048 }
  0x92   : > { %2047 = vst [vmem:[#allocation6_spill] sm:$0xff] %v1614_v19  ;;  %v1051_v23 = vunpack.i.h.bf16 %v1614_v19 }
  0x94   : > { %v1619_v29 = vsel %vm206_vm0, %v1046_v22, %v1051_v23 }
  0x95   : > { %2048 = vst [vmem:[#allocation7_spill] sm:$0xff] %v1619_v29  ;;  %v1621_v33 = vpop.permute.xlu1 %1068 }
  0x96   : > { %v1070_v34 = vunpack.i.l.bf16 %v1621_v33 }
  0x98   : > { %v1625_v36 = vsel %vm206_vm0, %v1070_v34, %v1075_v28 }
  0x99   : > { %v1627_v38 = vpop.permute.xlu2 %1098  ;;  %v232_v40 = vpop.permute.xlu0 %231 }
  0x9a   : > { %528 = vrot.lane.b32.xlu0 %v232_v40, %s1338_s19  ;;  %v1661_v50 = vsel %vm206_vm0, %v232_v40, %v1427_v14  ;;  %v1100_v40 = vunpack.i.l.bf16 %v1627_v38 }
  0x9d   : > { %v1630_v43 = vpop.permute.xlu1 %1078 }
  0x9e   : > { %v1080_v49 = vunpack.i.l.bf16 %v1630_v43 }
  0xa0   : > { %v1635_v51 = vsel %vm206_vm0, %v1080_v49, %v1076_v44 }
  0xa1   : > { %v1109_v57 = vpop.permute.xlu2 %1108  ;;  %v252_v59 = vpop.permute.xlu0 %251 }
  0xa2   : > { %v1111_v60 = vunpack.i.h.bf16 %v1109_v57  ;;  %547 = vrot.lane.b32.xlu2 %v252_v59, %s1339_s20 }
  0xa4   : > { %v1644_v63 = vsel %vm206_vm0, %v1485_v30, %v1111_v60 }
  0xa5   : > { %v1089_v4 = vpop.permute.xlu1 %1088 }
  0xa6   : > { %v1090_v28 = vunpack.i.l.bf16 %v1089_v4  ;;  %v1091_v60 = vunpack.i.h.bf16 %v1089_v4 }
  0xa9   : > { %v1648_v22 = vpop.permute.xlu2 %1118  ;;  %v1084_v23 = vpop.permute.xlu0 %1083 }
  0xaa   : > { %v1085_v34 = vunpack.i.l.bf16 %v1084_v23  ;;  %565 = vrot.lane.b32.xlu2 %v1606_v12, %s1340_s21 }
  0xac   : > { %v1653_v1 = vsel %vm206_vm0, %v1085_v34, %v1090_v28 }
  0xad   : > { %v1655_v44 = vpop.permute.xlu1 %311 }
  0xb1   : > { %v393_v30 = vpop.permute.xlu2 %392  ;;  %v1657_v49 = vpop.permute.xlu0 %1093 }
  0xb2   : > { %v1665_v8 = vsel %vm206_vm0, %v393_v30, %v1527_v42  ;;  %v1095_v54 = vunpack.i.l.bf16 %v1657_v49  ;;  %655 = vrot.lane.b32.xlu1 %v393_v30, %s1338_s19  ;;  %583 = vrot.lane.b32.xlu2 %v1612_v17, %s1341_s22  ;;  %v1110_v42 = vunpack.i.l.bf16 %v1109_v57  ;;  %v1681_v30 = vsel %vm206_vm0, %v252_v59, %v1440_v18 }
  0xb3   : > { %v1086_v59 = vunpack.i.h.bf16 %v1084_v23 }
  0xb4   : > { %v1674_v34 = vsel %vm206_vm0, %v1095_v54, %v1091_v60  ;;  %v1120_v60 = vunpack.i.l.bf16 %v1648_v22 }
  0xb5   : > { %v1676_v14 = vpop.permute.xlu1 %331 }
  0xb9   : > { %v412_v4 = vpop.permute.xlu2 %411  ;;  %v1104_v55 = vpop.permute.xlu0 %1103 }
  0xba   : > { %v1685_v2 = vsel %vm206_vm0, %v412_v4, %v1548_v47  ;;  %v1106_v31 = vunpack.i.h.bf16 %v1104_v55  ;;  %v1105_v28 = vunpack.i.l.bf16 %v1104_v55  ;;  %674 = vrot.lane.b32.xlu0 %v412_v4, %s1339_s20 }
  0xbc   : > { %v1692_v57 = vsel %vm206_vm0, %v1100_v40, %v1105_v28  ;;  %v1695_v5 = vsel %vm206_vm0, %v1110_v42, %v1106_v31  ;;  %v1066_v28 = vunpack.i.h.bf16 %v1594_v62  ;;  %v295_v31 = vsel %vm206_vm0, %v1448_v20, %v1086_v59 }
  0xbd   : > { %v1697_v18 = vpop.permute.xlu1 %1113  ;;  %v1726_v20 = vsel %vm206_vm0, %v1655_v44, %v1476_v27  ;;  %v1071_v59 = vunpack.i.h.bf16 %v1621_v33 }
  0xbe   : > { %v1115_v47 = vunpack.i.l.bf16 %v1697_v18 }
  0xbf   : > { %v255_v27 = vsel %vm206_vm0, %v1419_v11, %v1071_v59  ;;  %v1121_v59 = vunpack.i.h.bf16 %v1648_v22 }
  0xc0   : > { %v1701_v55 = vsel %vm206_vm0, %v1115_v47, %v1120_v60  ;;  %v236_v60 = vsel %vm206_vm0, %v1406_v6, %v1066_v28  ;;  %v2051_v6 = vrot.slane %v1566_v52, 4 }
  0xc1   : > { %2049 = vst [vmem:[#allocation8_spill] sm:$0xff] %v1701_v55  ;;  %v1703_v4 = vpop.permute.xlu2 %1143  ;;  %v1705_v13 = vpop.permute.xlu0 %351 }
  0xc2   : > { %v1146_v54 = vunpack.i.h.bf16 %v1703_v4 }
  0xc4   : > { %v455_v40 = vsel %vm206_vm0, %v1542_v46, %v1146_v54  ;;  %v2050_v46 = vrot.slane %v1569_v53, 4 }
  0xc5   : > { %v1124_v42 = vpop.permute.xlu1 %1123  ;;  %v1713_v19 = vpack.i.bf16 %v455_v40, %v295_v31 }
  0xc6   : > { %v1126_v23 = vunpack.i.h.bf16 %v1124_v42 }
  0xc8   : > { %v396_v47 = vsel %vm206_vm0, %v1509_v37, %v1126_v23 }
  0xc9   : > { %v472_v29 = vpop.permute.xlu2 %471  ;;  %v1719_v55 = vpop.permute.xlu0 %371  ;;  %v1721_v62 = vpack.i.bf16 %v396_v47, %v236_v60  ;;  %v1747_v47 = vsel %vm206_vm0, %v1606_v12, %v1452_v21 }
  0xca   : > { %v1731_v54 = vsel %vm206_vm0, %v472_v29, %v2050_v46  ;;  %v1125_v46 = vunpack.i.l.bf16 %v1124_v42 }
  0xcb   : > { %1173 = vrot.lane.b32.xlu1 %v1721_v62, %s1338_s19 }
  0xcc   : > { %v395_v12 = vsel %vm206_vm0, %v1125_v46, %v1121_v59 }
  0xcd   : > { %v1134_v37 = vpop.permute.xlu1 %1133 }
  0xd1   : > { %v1129_v28 = vpop.permute.xlu0 %1128 }
  0xd2   : > { %v1131_v31 = vunpack.i.h.bf16 %v1129_v28  ;;  %v1130_v22 = vunpack.i.l.bf16 %v1129_v28 }
  0xd4   : > { %v415_v40 = vsel %vm206_vm0, %v1523_v41, %v1131_v31  ;;  %v1081_v41 = vunpack.i.h.bf16 %v1630_v43  ;;  %v1771_v43 = vsel %vm206_vm0, %v1612_v17, %v1473_v26 }
  0xd5   : > { %v432_v23 = vpop.permute.xlu1 %431  ;;  %v1742_v60 = vpack.i.bf16 %v415_v40, %v255_v27 }
  0xd6   : > { %v1751_v33 = vsel %vm206_vm0, %v432_v23, %v1551_v48  ;;  %692 = vrot.lane.b32.xlu0 %v432_v23, %s1340_s21  ;;  %v275_v48 = vsel %vm206_vm0, %v1434_v16, %v1081_v41  ;;  %v1182_v23 = vpack.i.bf16 %v395_v12, %v1600_v7 }
  0xd7   : > { %v1272_v11 = vpack.i.bf16 %v1751_v33, %v1747_v47  ;;  %1178 = vrot.lane.b32.xlu1 %v1742_v60, %s1339_s20 }
  0xd9   : > { %v1139_v31 = vpop.permute.xlu0 %1138 }
  0xda   : > { %v1141_v21 = vunpack.i.h.bf16 %v1139_v31  ;;  %v1140_v28 = vunpack.i.l.bf16 %v1139_v31 }
  0xdc   : > { %v435_v42 = vsel %vm206_vm0, %v1539_v45, %v1141_v21  ;;  %v1135_v45 = vunpack.i.l.bf16 %v1134_v37  ;;  %v1060_v21 = vunpack.i.l.bf16 %v1576_v56 }
  0xdd   : > { %v452_v27 = vpop.permute.xlu1 %451  ;;  %v1765_v40 = vpack.i.bf16 %v435_v42, %v275_v48 }
  0xde   : > { %v1776_v46 = vsel %vm206_vm0, %v452_v27, %v2051_v6  ;;  %710 = vrot.lane.b32.xlu0 %v452_v27, %s1341_s22  ;;  %v414_v26 = vsel %vm206_vm0, %v1130_v22, %v1135_v45  ;;  %v234_v56 = vsel %vm206_vm0, %v1060_v21, %v1399_v3  ;;  %v253_v3 = vsel %vm206_vm0, %v1604_v9, %v1416_v10 }
  0xdf   : > { %v1287_v16 = vpack.i.bf16 %v1776_v46, %v1771_v43  ;;  %1188 = vrot.lane.b32.xlu2 %v1765_v40, %s1340_s21  ;;  %1183 = vrot.lane.b32.xlu1 %v1182_v23, %s1338_s19  ;;  %v1192_v17 = vpack.i.bf16 %v414_v26, %v1625_v36  ;;  %v1096_v36 = vunpack.i.h.bf16 %v1657_v49 }
  0xe1   : > { %v1149_v7 = vpop.permute.xlu0 %1148  ;;  %v315_v42 = vsel %vm206_vm0, %v1464_v24, %v1096_v36  ;;  %v512_v24 = vpop.permute.xlu2 %511 }
  0xe5   : > { %v492_v41 = vpop.permute.xlu1 %491 }
  0xe6   : > { %601 = vrot.lane.b32.xlu0 %v1655_v44, %s1342_s23  ;;  %v394_v44 = vsel %vm206_vm0, %v1705_v13, %v1502_v35  ;;  %v413_v35 = vsel %vm206_vm0, %v1719_v55, %v1515_v39  ;;  %v1101_v39 = vunpack.i.h.bf16 %v1627_v38 }
  0xe7   : > { %728 = vrot.lane.b32.xlu1 %v472_v29, %s1342_s23  ;;  %1193 = vrot.lane.b32.xlu2 %v1192_v17, %s1339_s20  ;;  %v1136_v29 = vunpack.i.h.bf16 %v1134_v37  ;;  %v1202_v48 = vpack.i.bf16 %v394_v44, %v234_v56  ;;  %v1150_v37 = vunpack.i.l.bf16 %v1149_v7  ;;  %v1055_v44 = vunpack.i.l.bf16 %v1610_v15 }
  0xe8   : > { %v1829_v17 = vsel %vm206_vm0, %v1467_v25, %v1101_v39 }
  0xe9   : > { %v1154_v6 = vpop.permute.xlu0 %1153  ;;  %v434_v31 = vsel %vm206_vm0, %v1140_v28, %v1136_v29 }
  0xea   : > { %v1155_v59 = vunpack.i.l.bf16 %v1154_v6  ;;  %v1207_v27 = vpack.i.bf16 %v434_v31, %v1635_v51  ;;  %v1156_v23 = vunpack.i.h.bf16 %v1154_v6  ;;  %v1145_v51 = vunpack.i.l.bf16 %v1703_v4 }
  0xeb   : > { %v1151_v4 = vunpack.i.h.bf16 %v1149_v7  ;;  %v1116_v7 = vunpack.i.h.bf16 %v1697_v18 }
  0xec   : > { %v475_v12 = vsel %vm206_vm0, %v1566_v52, %v1155_v59  ;;  %v1217_v52 = vpack.i.bf16 %v413_v35, %v253_v3  ;;  %v454_v22 = vsel %vm206_vm0, %v1145_v51, %v1150_v37  ;;  %v495_v10 = vsel %vm206_vm0, %v1569_v53, %v1156_v23 }
  0xed   : > { %v1212_v49 = vpack.i.bf16 %v475_v12, %v315_v42  ;;  %v1222_v26 = vpack.i.bf16 %v454_v22, %v1653_v1  ;;  %v2052_v53 = vpack.i.bf16 %v1644_v63, %v1640_v61  ;;  %v1169_v1 = vpop.permute.xlu2 %1168  ;;  %v2053_v61 = vpack.i.bf16 %v1665_v8, %v1661_v50 }
  0xee   : > { %1198 = vrot.lane.b32.xlu0 %v1713_v19, %s1341_s22  ;;  %v1170_v36 = vunpack.i.l.bf16 %v1169_v1  ;;  %v1171_v15 = vunpack.i.h.bf16 %v1169_v1 }
  0xef   : > { %619 = vrot.lane.b32.xlu1 %v1676_v14, %s1343_s24  ;;  %746 = vrot.lane.b32.xlu2 %v492_v41, %s1343_s24  ;;  %v1164_v41 = vpop.permute.xlu1 %1163 }
  0xf0   : > { %v1165_v29 = vunpack.i.l.bf16 %v1164_v41  ;;  %v1166_v18 = vunpack.i.h.bf16 %v1164_v41 }
  0xf1   : > { %v1159_v45 = vpop.permute.xlu0 %1158 }
  0xf2   : > { %v1161_v6 = vunpack.i.h.bf16 %v1159_v45  ;;  %v1160_v28 = vunpack.i.l.bf16 %v1159_v45  ;;  %v514_v31 = vsel %vm206_vm0, %v1166_v18, %v1171_v15 }
  0xf3   : > { %v1277_v12 = vpack.i.bf16 %v514_v31, %v1695_v5  ;;  %v2055_v5 = vpack.i.bf16 %v1731_v54, %v1726_v20 }
  0xf4   : > { %v515_v38 = vsel %vm206_vm0, %v1585_v58, %v1161_v6  ;;  %v474_v25 = vsel %vm206_vm0, %v1160_v28, %v1151_v4  ;;  %v1853_v58 = vsel %vm206_vm0, %v1493_v32, %v1116_v7  ;;  %v2054_v32 = vpack.i.bf16 %v1685_v2, %v1681_v30 }
  0xf5   : > { %v1247_v59 = vpack.i.bf16 %v515_v38, %v1644_v63  ;;  %v1242_v21 = vpack.i.bf16 %v474_v25, %v1674_v34  ;;  %v494_v63 = vsel %vm206_vm0, %v1165_v29, %v1170_v36  ;;  %v1858_v34 = vsel %vm206_vm0, %v1388_v0, %v1055_v44 }
  0xf6   : > { %1203 = vrot.lane.b32.xlu0 %v1202_v48, %s1338_s19  ;;  %v1252_v8 = vpack.i.bf16 %v1853_v58, %v1858_v34  ;;  %v1262_v50 = vpack.i.bf16 %v494_v63, %v1692_v57 }
  0xf7   : > { %1208 = vrot.lane.b32.xlu1 %v1207_v27, %s1340_s21  ;;  %1213 = vrot.lane.b32.xlu2 %v1212_v49, %s1342_s23 }
  0xfc   : > { %v548_v0 = vpop.permute.xlu2 %547 }
  0xfe   : > { %637 = vrot.lane.b32.xlu0 %v1705_v13, %s1344_s25  ;;  %v1227_v13 = vpack.i.bf16 %v495_v10, %v1829_v17 }
  0xff   : > { %764 = vrot.lane.b32.xlu1 %v512_v24, %s1344_s25  ;;  %1218 = vrot.lane.b32.xlu2 %v1217_v52, %s1339_s20 }
 0x104   : > { %v566_v2 = vpop.permute.xlu2 %565 }
 0x106   : > { %1223 = vrot.lane.b32.xlu0 %v1222_v26, %s1341_s22 }
 0x107   : > { %1228 = vrot.lane.b32.xlu1 %v1227_v13, %s1343_s24  ;;  %1233 = vrot.lane.b32.xlu2 %v2052_v53, %s1338_s19 }
 0x10c   : > { %v584_v30 = vpop.permute.xlu2 %583  ;;  %v529_v57 = vpop.permute.xlu0 %528 }
 0x10d   : > { %v776_v35 = vsel %vm771_vm1, %v1604_v9, %v529_v57 }
 0x10e   : > { %1238 = vrot.lane.b32.xlu0 %v2053_v61, %s1340_s21  ;;  %v782_v3 = vsel %vm777_vm2, %v776_v35, %v548_v0 }
 0x10f   : > { %1248 = vrot.lane.b32.xlu2 %v1247_v59, %s1344_s25  ;;  %1243 = vrot.lane.b32.xlu1 %v1242_v21, %s1342_s23  ;;  %v788_v51 = vsel %vm783_vm3, %v782_v3, %v566_v2 }
 0x110   : > { %v794_v10 = vsel %vm789_vm4, %v788_v51, %v584_v30 }
 0x116   : > { %1253 = vrot.lane.b32.xlu0 %v1252_v8, %s1339_s20 }
 0x117   : > { %1263 = vrot.lane.b32.xlu2 %v1262_v50, %s1343_s24  ;;  %1258 = vrot.lane.b32.xlu1 %v2054_v32, %s1341_s22 }
 0x11e   : > { %1268 = vrot.lane.b32.xlu0 %v1721_v62, %s1340_s21 }
 0x11f   : > { %1278 = vrot.lane.b32.xlu2 %v1277_v12, %s1344_s25  ;;  %1273 = vrot.lane.b32.xlu1 %v1272_v11, %s1342_s23 }
 0x124   : > { %v656_v62 = vpop.permute.xlu1 %655 }
 0x125   : > { %v817_v24 = vsel %vm771_vm1, %v1719_v55, %v656_v62 }
 0x126   : > { %1283 = vrot.lane.b32.xlu0 %v1742_v60, %s1341_s22 }
 0x127   : > { %1293 = vrot.lane.b32.xlu2 %v1765_v40, %s1342_s23  ;;  %1288 = vrot.lane.b32.xlu1 %v1287_v16, %s1343_s24 }
 0x12c   : > { %v675_v47 = vpop.permute.xlu0 %674 }
 0x12d   : > { %v822_v23 = vsel %vm777_vm2, %v817_v24, %v675_v47 }
 0x12e   : > { %1298 = vrot.lane.b32.xlu0 %v2055_v5, %s1344_s25 }
 0x12f   : > { %1308 = vrot.lane.b32.xlu2 %v1212_v49, %s1344_s25  ;;  %1303 = vrot.lane.b32.xlu1 %v1713_v19, %s1343_s24 }
 0x139   : > { %v1189_v60 = vpop.permute.xlu2 %1188 }
 0x13a   : > { %v1191_v44 = vunpack.i.h.bf16 %v1189_v60  ;;  %v1190_v63 = vunpack.i.l.bf16 %v1189_v60 }
 0x13d   : > { %v1174_v33 = vpop.permute.xlu1 %1173 }
 0x13e   : > { %v1176_v26 = vunpack.i.h.bf16 %v1174_v33  ;;  %v1175_v13 = vunpack.i.l.bf16 %v1174_v33 }
 0x140   : > { %v775_v7 = vsel %vm771_vm1, %v1858_v34, %v1175_v13  ;;  %v816_v59 = vsel %vm771_vm1, %v1853_v58, %v1176_v26 }
 0x141   : > { %v1893_v11 = vpop.permute.xlu2 %1193 }
 0x142   : > { %v1195_v35 = vunpack.i.l.bf16 %v1893_v11 }
 0x148   : > { %v693_v40 = vpop.permute.xlu0 %692 }
 0x149   : > { %v1179_v43 = vpop.permute.xlu1 %1178  ;;  %v747_v46 = vpop.permute.xlu2 %746  ;;  %v827_v39 = vsel %vm783_vm3, %v822_v23, %v693_v40 }
 0x14a   : > { %v1181_v4 = vunpack.i.h.bf16 %v1179_v43  ;;  %v1180_v6 = vunpack.i.l.bf16 %v1179_v43 }
 0x14c   : > { %v821_v21 = vsel %vm777_vm2, %v816_v59, %v1181_v4  ;;  %v781_v36 = vsel %vm777_vm2, %v775_v7, %v1180_v6 }
 0x14d   : > { %v787_v8 = vsel %vm783_vm3, %v781_v36, %v1190_v63  ;;  %v826_v50 = vsel %vm783_vm3, %v821_v21, %v1191_v44 }
 0x150   : > { %v711_v16 = vpop.permute.xlu0 %710 }
 0x151   : > { %v1895_v56 = vpop.permute.xlu1 %1183  ;;  %v1897_v20 = vpop.permute.xlu2 %1213  ;;  %v832_v9 = vsel %vm789_vm4, %v827_v39, %v711_v16  ;;  %v2056_v16 = vld [vmem:[#allocation8_spill] sm:$0xff] }
 0x152   : > { %v1216_v32 = vunpack.i.h.bf16 %v1897_v20  ;;  %v1215_v31 = vunpack.i.l.bf16 %v1897_v20  ;;  %v1186_v12 = vunpack.i.h.bf16 %v1895_v56  ;;  %v1185_v2 = vunpack.i.l.bf16 %v1895_v56  ;;  %v2057_v56 = vld [vmem:[#allocation7_spill] sm:$0xff] }
 0x154   : > { %v815_v20 = vsel %vm771_vm1, %v2056_v16, %v1186_v12 }
 0x158   : > { %v602_v54 = vpop.permute.xlu0 %601 }
 0x159   : > { %v729_v48 = vpop.permute.xlu1 %728  ;;  %v1899_v42 = vpop.permute.xlu2 %1218  ;;  %v800_v55 = vsel %vm795_vm5, %v794_v10, %v602_v54  ;;  %v774_v54 = vsel %vm771_vm1, %v2057_v56, %v1185_v2 }
 0x15a   : > { %v837_v45 = vsel %vm795_vm5, %v832_v9, %v729_v48  ;;  %v780_v51 = vsel %vm777_vm2, %v774_v54, %v1195_v35 }
 0x15b   : > { %v842_v1 = vsel %vm801_vm6, %v837_v45, %v747_v46 }
 0x160   : > { %v1199_v19 = vpop.permute.xlu0 %1198 }
 0x161   : > { %v620_v27 = vpop.permute.xlu1 %619  ;;  %v1901_v49 = vpop.permute.xlu2 %1233  ;;  %v1201_v29 = vunpack.i.h.bf16 %v1199_v19  ;;  %v1200_v61 = vunpack.i.l.bf16 %v1199_v19 }
 0x162   : > { %v806_v28 = vsel %vm801_vm6, %v800_v55, %v620_v27  ;;  %v1196_v27 = vunpack.i.h.bf16 %v1893_v11 }
 0x163   : > { %v831_v34 = vsel %vm789_vm4, %v826_v50, %v1201_v29  ;;  %v793_v18 = vsel %vm789_vm4, %v787_v8, %v1200_v61  ;;  %v2058_v61 = vld [vmem:[#allocation6_spill] sm:$0xff] }
 0x164   : > { %v799_v60 = vsel %vm795_vm5, %v793_v18, %v1215_v31  ;;  %v836_v47 = vsel %vm795_vm5, %v831_v34, %v1216_v32  ;;  %v820_v39 = vsel %vm777_vm2, %v815_v20, %v1196_v27  ;;  %v1050_v44 = vunpack.i.l.bf16 %v2058_v61  ;;  %v2060_v32 = vld [vmem:[#allocation3_spill] sm:$0xff] }
 0x165   : > { %v1236_v18 = vunpack.i.h.bf16 %v1901_v49 }
 0x166   : > { %v208_v31 = vsel %vm206_vm0, %v1050_v44, %v2060_v32 }
 0x168   : > { %v1906_v52 = vpop.permute.xlu0 %1203 }
 0x169   : > { %v1908_v37 = vpop.permute.xlu1 %1208  ;;  %v1249_v22 = vpop.permute.xlu2 %1248  ;;  %v1206_v8 = vunpack.i.h.bf16 %v1906_v52  ;;  %v1205_v50 = vunpack.i.l.bf16 %v1906_v52 }
 0x16a   : > { %v1251_v57 = vunpack.i.h.bf16 %v1249_v22  ;;  %v1250_v62 = vunpack.i.l.bf16 %v1249_v22  ;;  %v1211_v48 = vunpack.i.h.bf16 %v1908_v37  ;;  %v1210_v19 = vunpack.i.l.bf16 %v1908_v37 }
 0x16c   : > { %v786_v10 = vsel %vm783_vm3, %v780_v51, %v1210_v19  ;;  %v825_v37 = vsel %vm783_vm3, %v820_v39, %v1211_v48 }
 0x170   : > { %v638_v53 = vpop.permute.xlu0 %637 }
 0x171   : > { %v765_v38 = vpop.permute.xlu1 %764  ;;  %v812_v25 = vsel %vm807_vm7, %v806_v28, %v638_v53  ;;  %v1264_v15 = vpop.permute.xlu2 %1263 }
 0x172   : > { %1001 = vmatpush.msk.msra.mxu0 %vm206_vm0, %v812_v25  ;;  %v847_v41 = vsel %vm807_vm7, %v842_v1, %v765_v38  ;;  %v1266_v13 = vunpack.i.h.bf16 %v1264_v15  ;;  %v1265_v55 = vunpack.i.l.bf16 %v1264_v15  ;;  %v2059_v15 = vld [vmem:[#allocation5_spill] sm:$0xff] }
 0x173   : > { %1003 = vmatpush.msk.msra.mxu1 %vm206_vm0, %v847_v41  ;;  %v1045_v34 = vunpack.i.l.bf16 %v2059_v15 }
 0x178   : > { %v1224_v58 = vpop.permute.xlu0 %1223 }
 0x179   : > { %v1229_v0 = vpop.permute.xlu1 %1228  ;;  %v1226_v3 = vunpack.i.h.bf16 %v1224_v58  ;;  %v1225_v24 = vunpack.i.l.bf16 %v1224_v58  ;;  %v1279_v9 = vpop.permute.xlu2 %1278  ;;  %v1235_v58 = vunpack.i.l.bf16 %v1901_v49  ;;  %v813_v49 = vsel %vm771_vm1, %v1829_v17, %v1236_v18 }
 0x17a   : > { %v1231_v5 = vunpack.i.h.bf16 %v1229_v0  ;;  %v1230_v30 = vunpack.i.l.bf16 %v1229_v0  ;;  %v1281_v6 = vunpack.i.h.bf16 %v1279_v9  ;;  %v1280_v28 = vunpack.i.l.bf16 %v1279_v9  ;;  %v2061_v0 = vld [vmem:[#allocation4_spill] sm:$0xff] }
 0x17b   : > { %v830_v11 = vsel %vm789_vm4, %v825_v37, %v1226_v3  ;;  %v792_v4 = vsel %vm789_vm4, %v786_v10, %v1225_v24  ;;  %v374_v12 = vsel %vm206_vm0, %v1676_v14, %v2061_v0 }
 0x17c   : > { %v805_v33 = vsel %vm801_vm6, %v799_v60, %v1230_v30  ;;  %v841_v40 = vsel %vm801_vm6, %v836_v47, %v1231_v5  ;;  %v814_v2 = vsel %vm771_vm1, %v374_v12, %v1206_v8  ;;  %v773_v5 = vsel %vm771_vm1, %v208_v31, %v1205_v50  ;;  %v2062_v30 = vld [vmem:[#allocation2_spill] sm:$0xff] }
 0x17d   : > { %v811_v43 = vsel %vm807_vm7, %v805_v33, %v1250_v62  ;;  %v846_v46 = vsel %vm807_vm7, %v841_v40, %v1251_v57  ;;  %v207_v52 = vsel %vm206_vm0, %v2062_v30, %v1045_v34  ;;  %v1221_v57 = vunpack.i.h.bf16 %v1899_v42  ;;  %v848_v34 = vld [vmem:[%s2034_s1] sm:$0xff] }
 0x17e   : > { %871 = vmatpush.msra.mxu0 %v811_v43  ;;  %891 = vmatpush.msra.mxu1 %v846_v46  ;;  %v1220_v62 = vunpack.i.l.bf16 %v1899_v42  ;;  %v772_v47 = vsel %vm771_vm1, %v207_v52, %v1235_v58  ;;  %v1345_v30 = vmov 0.0  }
 0x17f   : > { %v819_v43 = vsel %vm777_vm2, %v814_v2, %v1221_v57  ;;  %175 = vst.msk [vmem:[%s167_s3] sm:$0xff] %vm174_vm9, %v1345_v30 }
 0x180   : > { %v1953_v23 = vpop.permute.xlu0 %1238  ;;  %v779_v46 = vsel %vm777_vm2, %v773_v5, %v1220_v62 }
 0x181   : > { %v1244_v22 = vpop.permute.xlu1 %1243  ;;  %v1968_v63 = vpop.permute.xlu2 %1293  ;;  %v1241_v33 = vunpack.i.h.bf16 %v1953_v23  ;;  %v1240_v14 = vunpack.i.l.bf16 %v1953_v23 }
 0x182   : > { %v1246_v45 = vunpack.i.h.bf16 %v1244_v22  ;;  %v1245_v26 = vunpack.i.l.bf16 %v1244_v22  ;;  %v1296_v56 = vunpack.i.h.bf16 %v1968_v63  ;;  %v1295_v42 = vunpack.i.l.bf16 %v1968_v63 }
 0x183   : > { %v824_v24 = vsel %vm783_vm3, %v819_v43, %v1241_v33  ;;  %v785_v23 = vsel %vm783_vm3, %v779_v46, %v1240_v14 }
 0x184   : > { %v798_v53 = vsel %vm795_vm5, %v792_v4, %v1245_v26  ;;  %v835_v38 = vsel %vm795_vm5, %v830_v11, %v1246_v45 }
 0x185   : > { %v804_v25 = vsel %vm801_vm6, %v798_v53, %v1265_v55  ;;  %v840_v1 = vsel %vm801_vm6, %v835_v38, %v1266_v13 }
 0x186   : > { %v810_v41 = vsel %vm807_vm7, %v804_v25, %v1280_v28  ;;  %v845_v7 = vsel %vm807_vm7, %v840_v1, %v1281_v6  ;;  %v907_v52 = vld [vmem:[%s167_s3] sm:$0xff] }
 0x187   : > { %872 = vmatpush.msra.mxu0 %v810_v41  ;;  %892 = vmatpush.msra.mxu1 %v845_v7 }
 0x188   : > { %v1254_v59 = vpop.permute.xlu0 %1253 }
 0x189   : > { %v1259_v21 = vpop.permute.xlu1 %1258  ;;  %v1256_v16 = vunpack.i.h.bf16 %v1254_v59  ;;  %v1255_v20 = vunpack.i.l.bf16 %v1254_v59  ;;  %v1309_v17 = vpop.permute.xlu2 %1308 }
 0x18a   : > { %v1261_v19 = vunpack.i.h.bf16 %v1259_v21  ;;  %v1260_v27 = vunpack.i.l.bf16 %v1259_v21  ;;  %v1311_v45 = vunpack.i.h.bf16 %v1309_v17  ;;  %v1310_v26 = vunpack.i.l.bf16 %v1309_v17 }
 0x18b   : > { %v818_v9 = vsel %vm777_vm2, %v813_v49, %v1256_v16  ;;  %v778_v22 = vsel %vm777_vm2, %v772_v47, %v1255_v20 }
 0x18c   : > { %v791_v11 = vsel %vm789_vm4, %v785_v23, %v1260_v27  ;;  %v829_v4 = vsel %vm789_vm4, %v824_v24, %v1261_v19 }
 0x190   : > { %v1269_v36 = vpop.permute.xlu0 %1268 }
 0x191   : > { %v1274_v29 = vpop.permute.xlu1 %1273  ;;  %v1271_v54 = vunpack.i.h.bf16 %v1269_v36  ;;  %v1270_v48 = vunpack.i.l.bf16 %v1269_v36 }
 0x192   : > { %v1276_v51 = vunpack.i.h.bf16 %v1274_v29  ;;  %v1275_v39 = vunpack.i.l.bf16 %v1274_v29 }
 0x193   : > { %v784_v13 = vsel %vm783_vm3, %v778_v22, %v1270_v48  ;;  %v823_v55 = vsel %vm783_vm3, %v818_v9, %v1271_v54 }
 0x194   : > { %v797_v41 = vsel %vm795_vm5, %v791_v11, %v1275_v39  ;;  %v834_v7 = vsel %vm795_vm5, %v829_v4, %v1276_v51 }
 0x198   : > { %v1284_v60 = vpop.permute.xlu0 %1283 }
 0x199   : > { %v1289_v40 = vpop.permute.xlu1 %1288  ;;  %v1286_v35 = vunpack.i.h.bf16 %v1284_v60  ;;  %v1285_v3 = vunpack.i.l.bf16 %v1284_v60 }
 0x19a   : > { %v1291_v10 = vunpack.i.h.bf16 %v1289_v40  ;;  %v1290_v37 = vunpack.i.l.bf16 %v1289_v40 }
 0x19b   : > { %v790_v6 = vsel %vm789_vm4, %v784_v13, %v1285_v3  ;;  %v828_v28 = vsel %vm789_vm4, %v823_v55, %v1286_v35 }
 0x19c   : > { %v803_v36 = vsel %vm801_vm6, %v797_v41, %v1290_v37  ;;  %v839_v29 = vsel %vm801_vm6, %v834_v7, %v1291_v10  ;;  %v796_v63 = vsel %vm795_vm5, %v790_v6, %v1295_v42  ;;  %v833_v8 = vsel %vm795_vm5, %v828_v28, %v1296_v56 }
 0x1a0   : > { %v1299_v53 = vpop.permute.xlu0 %1298 }
 0x1a1   : > { %v1301_v38 = vunpack.i.h.bf16 %v1299_v53  ;;  %v1300_v25 = vunpack.i.l.bf16 %v1299_v53  ;;  %v1304_v1 = vpop.permute.xlu1 %1303 }
 0x1a2   : > { %v1306_v59 = vunpack.i.h.bf16 %v1304_v1  ;;  %v1305_v21 = vunpack.i.l.bf16 %v1304_v1 }
 0x1a3   : > { %v809_v61 = vsel %vm807_vm7, %v803_v36, %v1300_v25  ;;  %v844_v44 = vsel %vm807_vm7, %v839_v29, %v1301_v38 }
 0x1a4   : > { %873 = vmatpush.msra.mxu0 %v809_v61  ;;  %893 = vmatpush.msra.mxu1 %v844_v44  ;;  %v802_v50 = vsel %vm801_vm6, %v796_v63, %v1305_v21  ;;  %v838_v15 = vsel %vm801_vm6, %v833_v8, %v1306_v59 }
 0x1a5   : > { %v808_v18 = vsel %vm807_vm7, %v802_v50, %v1310_v26  ;;  %v843_v58 = vsel %vm807_vm7, %v838_v15, %v1311_v45 }
 0x1a6   : > { %874 = vmatpush.msra.mxu0 %v808_v18  ;;  %894 = vmatpush.msra.mxu1 %v843_v58 }
 0x1a7   : > { %1002 = vmatmul.msk.f32.vlgmr.msra.gmra.mxu0 %vm849_vm8, %v848_v34  ;;  %1004 = vmatmul.msk.f32.vlgmr.msra.gmra.mxu1 %vm849_vm8, %v848_v34 }
 0x224   : > { %v876_v32 = vpop.f32.mrf.mxu0  ;;  %v896_v31 = vpop.f32.mrf.mxu1 }
 0x225   : > { %v902_v0 = vmul.f32 %v876_v32, %v876_v32  ;;  %v899_v12 = vadd.f32 %v896_v31, %v876_v32  ;;  %v903_v2 = vmul.f32 %v896_v31, %v896_v31 }
 0x227   : > { %900 = vadd.xlane.f32.xlu0 %v899_v12  ;;  %v904_v5 = vadd.f32 %v903_v2, %v902_v0 }
 0x229   : > { %905 = vadd.xlane.f32.xlu1 %v904_v5 }
 0x29a   : > { %v901_v57 = vpop.xlane.xlu0 %900 }
 0x29c   : > { %v906_v62 = vpop.xlane.xlu1 %905 }
 0x29d   : > { %v909_v60 = vsel %vm908_vm10, %v901_v57, %v906_v62 }
 0x29e   : > { %v910_v49 = vadd.f32 %v909_v60, %v907_v52 }
 0x2a0   : > { %912 = vst.msk [vmem:[%s167_s3] sm:$0xff] %vm174_vm9, %v910_v49 }
 0x2a1 PF: > { %s12_s11 = sadd.s32 1, %s1334_s11   ;;  %s2063_s9 = smov %s1330_s10 }
 0x2a2   : > { %p9_p5 = scmp.ge.s32.totalorder %s12_s11, 4   ;;  %s2064_s10 = smov %s2066_s12 }
 0x2a4   :  { %11 = sbr.rel (!%p9_p5) target bundleno = 2 (0x2), region = 79 }

// kernel: conv_bn_relu.3
= control target key start
LH: loop header
LB: loop body
LE: loop exit
PB: predicated region body
PF: predicated region fallthrough
CT: control target
= control target key end

     0   :  { %s1400_s12 = smov 0   ;;  %s1402_s13 = smov 0   ;;  %s2059_s0 = inlined_call_operand.vmem [shape: f32[2,18,4,18], index: 0, kind: input, shape index: {}]   ;;  %s2060_s1 = inlined_call_operand.vmem [shape: f32[8,36], index: 1, kind: input, shape index: {}]   ;;  %s2061_s2 = inlined_call_operand.vmem [shape: f32[8,1], index: 2, kind: input, shape index: {}]   ;;  %s2062_s3 = inlined_call_operand.vmem [shape: f32[2,8,256], index: 3, kind: output, shape index: {}]  }
   0x1   :  { %s1404_s14 = smov 0  }
   0x2 LB: > { %s25_s15 = sadd.s32 1, %s1364_s13  ;;  %p1012_p0 = scmp.ge.s32.totalorder %s1368_s14, 1  ;;  %s1368_s14 = sphi %s1404_s14, %s13_s14   ;;  %s1364_s13 = sphi %s1402_s13, %s2070_s13   ;;  %s1360_s12 = sphi %s1400_s12, %s2069_s12  }
   0x3   : > { %p27_p1 = scmp.ge.s32.totalorder %s25_s15, 2  ;;  %p151_p2 = scmp.lt.s32.totalorder %s1368_s14, 3 }
   0x5   : > { %s2072_s15 = smov (%p27_p1, %s25_s15), 0  ;;  %p152_p3 = pnand %p1012_p0, %p151_p2 }
   0x7   : > { %155 = sbr.rel (%p152_p3) target bundleno = 539 (0x21b), region = 32 }
   0xc   : > { %p179_p4 = scmp.lt.s32.totalorder %s1360_s12, 1  ;;  %s1370_s20 = smov 126   ;;  %vm224_vm0 = vcmask 1043456   ;;  %vm789_vm1 = vcmask 130048   ;;  %vm795_vm2 = vcmask 261120   ;;  %vm801_vm3 = vcmask 392192  }
   0xd   : > { %s1371_s21 = smov 127   ;;  %s1372_s22 = smov 16   ;;  %vm807_vm4 = vcmask 523264   ;;  %vm813_vm5 = vcmask 654336   ;;  %vm825_vm6 = vcmask 916480   ;;  %vm819_vm7 = vcmask 785408  }
   0xe   : > { %s2074_s12 = smov (!%p179_p4, %s1360_s12), 1  ;;  %s1373_s23 = smov 32   ;;  %vm873_vm8 = vcmask 293888  }
   0xf   : > { %s1040_s16 = smul.u32 72, %s2074_s12  ;;  %s1374_s24 = smov 48  }
  0x10   : > { %s1375_s25 = smov 64   ;;  %s1376_s26 = smov 80  }
  0x11   : > { %s1424_s19 = scalar_lea.vmem %s2059_s0, %s1040_s16  ;;  %s1377_s27 = smov 96  }
  0x12   : > { %v1427_v0 = vld [vmem:[%s1424_s19 + $0x8] sm:$0xf]  ;;  %v1430_v1 = vld [vmem:[%s1424_s19 + $0x4] sm:$0xf]  ;;  %v1433_v2 = vld [vmem:[%s1424_s19] sm:$0xf] }
  0x13   : > { %221 = vrot.lane.b32.xlu1 %v1427_v0, %s1370_s20  ;;  %v1438_v3 = vrot.slane %v1427_v0, 4  ;;  %v200_v4 = vrot.slane %v1433_v2, 4  ;;  %v1442_v5 = vrot.slane %v1430_v1, 4  ;;  %v1445_v6 = vld [vmem:[%s1424_s19 + $0xc] sm:$0xf]  ;;  %s1378_s28 = smov 112  }
  0x14   : > { %v1455_v10 = vrot.slane %v1445_v6, 4  ;;  %v1458_v11 = vld [vmem:[%s1424_s19 + $0x10] sm:$0xf]  ;;  %v1473_v16 = vld [vmem:[%s1424_s19 + $0x14] sm:$0xf]  ;;  %s1039_s6 = sshll.u32 %s2074_s12, 4 }
  0x15   : > { %v1090_v7 = vpack.i.bf16 %v1438_v3, %v1430_v1  ;;  %v1075_v8 = vpack.i.bf16 %v1430_v1, %v200_v4  ;;  %v1085_v9 = vpack.i.bf16 %v1442_v5, %v1438_v3  ;;  %v1080_v13 = vpack.i.bf16 %v1442_v5, %v1433_v2  ;;  %v1487_v20 = vld [vmem:[%s1424_s19 + $0x18] sm:$0xf]  ;;  %v1503_v24 = vld [vmem:[%s1424_s19 + $0x1c] sm:$0xf]  ;;  %v1506_v25 = vld [vmem:[%s1424_s19 + $0x20] sm:$0xf]  ;;  %s192_s9 = scalar_lea.vmem %s2062_s3, %s1039_s6 }
  0x16   : > { %v1095_v12 = vpack.i.bf16 %v1455_v10, %v1427_v0  ;;  %v1466_v14 = vrot.slane %v1458_v11, 4  ;;  %v1479_v18 = vrot.slane %v1473_v16, 4  ;;  %v1491_v21 = vrot.slane %v1487_v20, 4  ;;  %v1524_v30 = vld [vmem:[%s1424_s19 + $0x24] sm:$0xf] }
  0x17   : > { %1091 = vrot.lane.b32.xlu2 %v1090_v7, %s1370_s20  ;;  %1076 = vrot.lane.b32.xlu0 %v1075_v8, %s1371_s21  ;;  %v1512_v26 = vrot.slane %v1503_v24, 4  ;;  %v1515_v27 = vrot.slane %v1506_v25, 4  ;;  %v1529_v31 = vrot.slane %v1524_v30, 4  ;;  %v1532_v32 = vld [vmem:[%s1424_s19 + $0x28] sm:$0xf] }
  0x18   : > { %v1100_v15 = vpack.i.bf16 %v1466_v14, %v1445_v6  ;;  %v1105_v17 = vpack.i.bf16 %v1466_v14, %v1455_v10  ;;  %v1110_v19 = vpack.i.bf16 %v1479_v18, %v1458_v11  ;;  %v1120_v22 = vpack.i.bf16 %v1491_v21, %v1479_v18  ;;  %v1548_v37 = vld [vmem:[%s1424_s19 + $0x2c] sm:$0xf]  ;;  %v1562_v41 = vld [vmem:[%s1424_s19 + $0x30] sm:$0xf]  ;;  %v1578_v45 = vld [vmem:[%s1424_s19 + $0x34] sm:$0xf] }
  0x19   : > { %v1115_v23 = vpack.i.bf16 %v1491_v21, %v1473_v16  ;;  %v1130_v28 = vpack.i.bf16 %v1515_v27, %v1503_v24  ;;  %v1125_v29 = vpack.i.bf16 %v1512_v26, %v1487_v20  ;;  %2064 = vst [vmem:[#allocation2_spill] sm:$0xff] %v1529_v31  ;;  %v1140_v33 = vpack.i.bf16 %v1529_v31, %v1506_v25  ;;  %v1581_v46 = vld [vmem:[%s1424_s19 + $0x38] sm:$0xf]  ;;  %v1599_v51 = vld [vmem:[%s1424_s19 + $0x3c] sm:$0xf] }
  0x1a   : > { %v1135_v34 = vpack.i.bf16 %v1515_v27, %v1512_v26  ;;  %v1541_v35 = vrot.slane %v1532_v32, 4  ;;  %v1554_v39 = vrot.slane %v1548_v37, 4  ;;  %v1566_v42 = vrot.slane %v1562_v41, 4  ;;  %v1607_v53 = vld [vmem:[%s1424_s19 + $0x40] sm:$0xf] }
  0x1b   : > { %1086 = vrot.lane.b32.xlu1 %v1085_v9, %s1371_s21  ;;  %v1587_v47 = vrot.slane %v1578_v45, 4  ;;  %v1590_v48 = vrot.slane %v1581_v46, 4  ;;  %v1604_v52 = vrot.slane %v1599_v51, 4  ;;  %v1616_v56 = vrot.slane %v1607_v53, 4  ;;  %v1623_v58 = vld [vmem:[%s1424_s19 + $0x44] sm:$0xf] }
  0x1c   : > { %v1145_v36 = vpack.i.bf16 %v1541_v35, %v1524_v30  ;;  %v1150_v38 = vpack.i.bf16 %v1541_v35, %v1529_v31  ;;  %v1155_v40 = vpack.i.bf16 %v1554_v39, %v1532_v32  ;;  %v1165_v43 = vpack.i.bf16 %v1566_v42, %v1554_v39 }
  0x1d   : > { %v1160_v44 = vpack.i.bf16 %v1566_v42, %v1548_v37  ;;  %v1175_v49 = vpack.i.bf16 %v1590_v48, %v1578_v45  ;;  %v1170_v50 = vpack.i.bf16 %v1587_v47, %v1562_v41  ;;  %v1185_v54 = vpack.i.bf16 %v1604_v52, %v1581_v46 }
  0x1e   : > { %v1180_v55 = vpack.i.bf16 %v1590_v48, %v1587_v47  ;;  %v1190_v57 = vpack.i.bf16 %v1616_v56, %v1599_v51  ;;  %v525_v60 = vrot.slane %v1623_v58, 4  ;;  %v1195_v61 = vpack.i.bf16 %v1616_v56, %v1604_v52 }
  0x1f   : > { %1096 = vrot.lane.b32.xlu2 %v1095_v12, %s1371_s21  ;;  %1081 = vrot.lane.b32.xlu0 %v1080_v13, %s1370_s20 }
  0x20   : > { %v1200_v62 = vpack.i.bf16 %v525_v60, %v1607_v53 }
  0x23   : > { %1101 = vrot.lane.b32.xlu1 %v1100_v15, %s1371_s21 }
  0x27   : > { %1106 = vrot.lane.b32.xlu2 %v1105_v17, %s1370_s20  ;;  %249 = vrot.lane.b32.xlu0 %v1445_v6, %s1370_s20 }
  0x2b   : > { %1111 = vrot.lane.b32.xlu1 %v1110_v19, %s1371_s21 }
  0x2f   : > { %289 = vrot.lane.b32.xlu2 %v1473_v16, %s1370_s20  ;;  %269 = vrot.lane.b32.xlu0 %v1458_v11, %s1370_s20 }
  0x33   : > { %1121 = vrot.lane.b32.xlu1 %v1120_v22, %s1370_s20 }
  0x37   : > { %309 = vrot.lane.b32.xlu2 %v1487_v20, %s1370_s20  ;;  %1116 = vrot.lane.b32.xlu0 %v1115_v23, %s1371_s21 }
  0x3b   : > { %329 = vrot.lane.b32.xlu1 %v1503_v24, %s1370_s20 }
  0x3f   : > { %1131 = vrot.lane.b32.xlu2 %v1130_v28, %s1371_s21  ;;  %1126 = vrot.lane.b32.xlu0 %v1125_v29, %s1371_s21 }
  0x43   : > { %349 = vrot.lane.b32.xlu1 %v1506_v25, %s1370_s20 }
  0x47   : > { %1141 = vrot.lane.b32.xlu2 %v1140_v33, %s1371_s21  ;;  %1136 = vrot.lane.b32.xlu0 %v1135_v34, %s1370_s20 }
  0x4b   : > { %1146 = vrot.lane.b32.xlu1 %v1145_v36, %s1371_s21 }
  0x4f   : > { %1151 = vrot.lane.b32.xlu2 %v1150_v38, %s1370_s20  ;;  %369 = vrot.lane.b32.xlu0 %v1524_v30, %s1370_s20 }
  0x53   : > { %1156 = vrot.lane.b32.xlu1 %v1155_v40, %s1371_s21 }
  0x57   : > { %410 = vrot.lane.b32.xlu2 %v1548_v37, %s1370_s20  ;;  %389 = vrot.lane.b32.xlu0 %v1532_v32, %s1370_s20 }
  0x5b   : > { %1166 = vrot.lane.b32.xlu1 %v1165_v43, %s1370_s20 }
  0x5f   : > { %429 = vrot.lane.b32.xlu2 %v1562_v41, %s1370_s20  ;;  %1161 = vrot.lane.b32.xlu0 %v1160_v44, %s1371_s21 }
  0x63   : > { %449 = vrot.lane.b32.xlu1 %v1578_v45, %s1370_s20 }
  0x67   : > { %1176 = vrot.lane.b32.xlu2 %v1175_v49, %s1371_s21  ;;  %1171 = vrot.lane.b32.xlu0 %v1170_v50, %s1371_s21 }
  0x6b   : > { %469 = vrot.lane.b32.xlu1 %v1581_v46, %s1370_s20 }
  0x6f   : > { %1186 = vrot.lane.b32.xlu2 %v1185_v54, %s1371_s21  ;;  %1181 = vrot.lane.b32.xlu0 %v1180_v55, %s1370_s20 }
  0x71   : > { %v1092_v59 = vpop.permute.xlu2 %1091 }
  0x72   : > { %v1094_v63 = vunpack.i.h.bf16 %v1092_v59  ;;  %v1093_v23 = vunpack.i.l.bf16 %v1092_v59 }
  0x73   : > { %1191 = vrot.lane.b32.xlu1 %v1190_v57, %s1371_s21 }
  0x74   : > { %v252_v33 = vsel %vm224_vm0, %v1093_v23, %v1438_v3 }
  0x77   : > { %489 = vrot.lane.b32.xlu0 %v1599_v51, %s1370_s20  ;;  %1196 = vrot.lane.b32.xlu2 %v1195_v61, %s1370_s20 }
  0x79   : > { %v1097_v4 = vpop.permute.xlu2 %1096 }
  0x7a   : > { %v1099_v7 = vunpack.i.h.bf16 %v1097_v4  ;;  %v1098_v8 = vunpack.i.l.bf16 %v1097_v4 }
  0x7b   : > { %1201 = vrot.lane.b32.xlu1 %v1200_v62, %s1371_s21 }
  0x7c   : > { %v253_v9 = vsel %vm224_vm0, %v1098_v8, %v1094_v63  ;;  %v254_v12 = vsel %vm224_vm0, %v1445_v6, %v1099_v7 }
  0x7d   : > { %v1210_v13 = vpack.i.bf16 %v254_v12, %v253_v9 }
  0x7f   : > { %509 = vrot.lane.b32.xlu0 %v1607_v53, %s1370_s20  ;;  %529 = vrot.lane.b32.xlu2 %v1623_v58, %s1370_s20 }
  0x81   : > { %v1641_v15 = vpop.permute.xlu2 %1106 }
  0x82   : > { %v1108_v49 = vunpack.i.l.bf16 %v1641_v15 }
  0x83   : > { %1211 = vrot.lane.b32.xlu1 %v1210_v13, %s1372_s22 }
  0x85   : > { %v1644_v17 = vpop.permute.xlu1 %221 }
  0x86   : > { %v271_v57 = vsel %vm224_vm0, %v1644_v17, %v1455_v10 }
  0x89   : > { %v1646_v19 = vpop.permute.xlu2 %289  ;;  %v1648_v22 = vpop.permute.xlu0 %1076 }
  0x8a   : > { %v1079_v40 = vunpack.i.h.bf16 %v1648_v22 }
  0x8d   : > { %v1087_v6 = vpop.permute.xlu1 %1086 }
  0x8e   : > { %v1089_v28 = vunpack.i.h.bf16 %v1087_v6  ;;  %v1088_v43 = vunpack.i.l.bf16 %v1087_v6 }
  0x90   : > { %v251_v29 = vsel %vm224_vm0, %v1430_v1, %v1089_v28  ;;  %v1667_v55 = vsel %vm224_vm0, %v1427_v0, %v1088_v43 }
  0x91   : > { %v1654_v34 = vpop.permute.xlu2 %309  ;;  %v1656_v36 = vpop.permute.xlu0 %1081  ;;  %v1205_v38 = vpack.i.bf16 %v252_v33, %v251_v29  ;;  %v1215_v4 = vpack.i.bf16 %v271_v57, %v1667_v55 }
  0x92   : > { %v1084_v44 = vunpack.i.h.bf16 %v1656_v36 }
  0x93   : > { %1206 = vrot.lane.b32.xlu0 %v1205_v38, %s1372_s22 }
  0x94   : > { %v1663_v50 = vsel %vm224_vm0, %v1079_v40, %v1084_v44 }
  0x95   : > { %v1102_v1 = vpop.permute.xlu1 %1101 }
  0x96   : > { %v1104_v54 = vunpack.i.h.bf16 %v1102_v1  ;;  %v1103_v3 = vunpack.i.l.bf16 %v1102_v1 }
  0x98   : > { %v272_v59 = vsel %vm224_vm0, %v1103_v3, %v1108_v49  ;;  %v1675_v60 = vsel %vm224_vm0, %v1458_v11, %v1104_v54 }
  0x99   : > { %v1677_v61 = vpop.permute.xlu2 %1131  ;;  %v1679_v62 = vpop.permute.xlu0 %249  ;;  %v1220_v63 = vpack.i.bf16 %v1675_v60, %v272_v59 }
  0x9a   : > { %546 = vrot.lane.b32.xlu2 %v1679_v62, %s1372_s22 }
  0x9b   : > { %1221 = vrot.lane.b32.xlu1 %v1220_v63, %s1373_s23  ;;  %1216 = vrot.lane.b32.xlu0 %v1215_v4, %s1373_s23 }
  0x9d   : > { %v1687_v0 = vpop.permute.xlu1 %1111 }
  0x9e   : > { %v1114_v10 = vunpack.i.h.bf16 %v1687_v0 }
  0xa0   : > { %v1692_v11 = vsel %vm224_vm0, %v1473_v16, %v1114_v10 }
  0xa1   : > { %v1694_v7 = vpop.permute.xlu2 %1141  ;;  %v270_v8 = vpop.permute.xlu0 %269  ;;  %v1225_v9 = vpack.i.bf16 %v1692_v11, %v254_v12 }
  0xa2   : > { %565 = vrot.lane.b32.xlu2 %v270_v8, %s1373_s23  ;;  %v1143_v3 = vunpack.i.l.bf16 %v1694_v7  ;;  %v1722_v57 = vsel %vm224_vm0, %v270_v8, %v1479_v18 }
  0xa3   : > { %1226 = vrot.lane.b32.xlu0 %v1225_v9, %s1374_s24 }
  0xa5   : > { %v1122_v13 = vpop.permute.xlu1 %1121 }
  0xa6   : > { %v1123_v23 = vunpack.i.l.bf16 %v1122_v13  ;;  %v1124_v40 = vunpack.i.h.bf16 %v1122_v13 }
  0xa9   : > { %v1152_v6 = vpop.permute.xlu2 %1151  ;;  %v1117_v28 = vpop.permute.xlu0 %1116 }
  0xaa   : > { %v1118_v29 = vunpack.i.l.bf16 %v1117_v28  ;;  %v1153_v10 = vunpack.i.l.bf16 %v1152_v6  ;;  %v1119_v8 = vunpack.i.h.bf16 %v1117_v28  ;;  %v1154_v4 = vunpack.i.h.bf16 %v1152_v6 }
  0xab   : > { %583 = vrot.lane.b32.xlu0 %v1646_v19, %s1374_s24 }
  0xac   : > { %v1702_v16 = vsel %vm224_vm0, %v1118_v29, %v1123_v23 }
  0xad   : > { %v1704_v33 = vpop.permute.xlu1 %329 }
  0xb1   : > { %v1706_v38 = vpop.permute.xlu2 %410  ;;  %v1127_v12 = vpop.permute.xlu0 %1126 }
  0xb2   : > { %v1128_v43 = vunpack.i.l.bf16 %v1127_v12  ;;  %673 = vrot.lane.b32.xlu1 %v1706_v38, %s1372_s22 }
  0xb3   : > { %601 = vrot.lane.b32.xlu0 %v1654_v34, %s1375_s25 }
  0xb4   : > { %v1713_v44 = vsel %vm224_vm0, %v1128_v43, %v1124_v40  ;;  %v313_v43 = vsel %vm224_vm0, %v1487_v20, %v1119_v8 }
  0xb5   : > { %v1715_v49 = vpop.permute.xlu1 %349 }
  0xb9   : > { %v430_v1 = vpop.permute.xlu2 %429  ;;  %v1717_v54 = vpop.permute.xlu0 %1136 }
  0xba   : > { %v1726_v59 = vsel %vm224_vm0, %v430_v1, %v1587_v47  ;;  %v1139_v63 = vunpack.i.h.bf16 %v1717_v54  ;;  %692 = vrot.lane.b32.xlu2 %v430_v1, %s1373_s23 }
  0xbb   : > { %619 = vrot.lane.b32.xlu0 %v1704_v33, %s1376_s26 }
  0xbc   : > { %v1735_v9 = vsel %vm224_vm0, %v1143_v3, %v1139_v63 }
  0xbd   : > { %v1737_v18 = vpop.permute.xlu1 %1146 }
  0xbe   : > { %v1148_v47 = vunpack.i.l.bf16 %v1737_v18 }
  0xc0   : > { %v1741_v13 = vsel %vm224_vm0, %v1148_v47, %v1153_v10  ;;  %v1129_v10 = vunpack.i.h.bf16 %v1127_v12 }
  0xc1   : > { %2065 = vst [vmem:[#allocation3_spill] sm:$0xff] %v1741_v13  ;;  %v1743_v23 = vpop.permute.xlu2 %1176  ;;  %v1745_v29 = vpop.permute.xlu0 %369 }
  0xc2   : > { %v1179_v40 = vunpack.i.h.bf16 %v1743_v23 }
  0xc4   : > { %v473_v1 = vsel %vm224_vm0, %v1581_v46, %v1179_v40  ;;  %v333_v40 = vsel %vm224_vm0, %v1503_v24, %v1129_v10  ;;  %v1113_v10 = vunpack.i.l.bf16 %v1687_v0 }
  0xc5   : > { %v1157_v3 = vpop.permute.xlu1 %1156  ;;  %v1752_v63 = vpack.i.bf16 %v473_v1, %v313_v43 }
  0xc6   : > { %v1159_v28 = vunpack.i.h.bf16 %v1157_v3  ;;  %v1158_v31 = vunpack.i.l.bf16 %v1157_v3 }
  0xc7   : > { %1246 = vrot.lane.b32.xlu0 %v1752_v63, %s1375_s25 }
  0xc8   : > { %v413_v47 = vsel %vm224_vm0, %v1158_v31, %v1154_v4  ;;  %v1759_v13 = vsel %vm224_vm0, %v1548_v37, %v1159_v28 }
  0xc9   : > { %v1761_v20 = vpop.permute.xlu2 %1186  ;;  %v1763_v8 = vpop.permute.xlu0 %389  ;;  %v1230_v46 = vpack.i.bf16 %v413_v47, %v1759_v13 }
  0xca   : > { %v1189_v6 = vunpack.i.h.bf16 %v1761_v20 }
  0xcb   : > { %1231 = vrot.lane.b32.xlu1 %v1230_v46, %s1372_s22 }
  0xcc   : > { %v493_v31 = vsel %vm224_vm0, %v1599_v51, %v1189_v6  ;;  %v1109_v6 = vunpack.i.h.bf16 %v1641_v15 }
  0xcd   : > { %v1167_v12 = vpop.permute.xlu1 %1166  ;;  %v1772_v4 = vpack.i.bf16 %v493_v31, %v333_v40 }
  0xce   : > { %v1168_v37 = vunpack.i.l.bf16 %v1167_v12  ;;  %v1169_v40 = vunpack.i.h.bf16 %v1167_v12 }
  0xcf   : > { %1251 = vrot.lane.b32.xlu0 %v1772_v4, %s1376_s26 }
  0xd1   : > { %v1162_v43 = vpop.permute.xlu0 %1161 }
  0xd2   : > { %v1164_v1 = vunpack.i.h.bf16 %v1162_v43  ;;  %v1163_v3 = vunpack.i.l.bf16 %v1162_v43  ;;  %v292_v43 = vsel %vm224_vm0, %v1113_v10, %v1109_v6 }
  0xd4   : > { %v432_v28 = vsel %vm224_vm0, %v1163_v3, %v1168_v37  ;;  %v1779_v47 = vsel %vm224_vm0, %v1562_v41, %v1164_v1  ;;  %v291_v41 = vsel %vm224_vm0, %v1679_v62, %v1466_v14 }
  0xd5   : > { %v1781_v24 = vpop.permute.xlu1 %449  ;;  %v1235_v51 = vpack.i.bf16 %v432_v28, %v1779_v47 }
  0xd6   : > { %710 = vrot.lane.b32.xlu2 %v1781_v24, %s1374_s24 }
  0xd7   : > { %1236 = vrot.lane.b32.xlu1 %v1235_v51, %s1373_s23 }
  0xd9   : > { %v1172_v46 = vpop.permute.xlu0 %1171 }
  0xda   : > { %v1174_v31 = vunpack.i.h.bf16 %v1172_v46  ;;  %v1173_v37 = vunpack.i.l.bf16 %v1172_v46 }
  0xdc   : > { %v1795_v1 = vsel %vm224_vm0, %v1578_v45, %v1174_v31  ;;  %v452_v3 = vsel %vm224_vm0, %v1173_v37, %v1169_v40  ;;  %v1134_v45 = vunpack.i.h.bf16 %v1677_v61  ;;  %v1144_v31 = vunpack.i.h.bf16 %v1694_v7  ;;  %v1820_v37 = vpop.permute.xlu2 %1196 }
  0xdd   : > { %v1798_v28 = vpop.permute.xlu1 %469  ;;  %v1240_v0 = vpack.i.bf16 %v292_v43, %v1795_v1  ;;  %v1260_v15 = vpack.i.bf16 %v291_v41, %v452_v3  ;;  %v1325_v12 = vpack.i.bf16 %v1795_v1, %v1692_v11  ;;  %v1198_v7 = vunpack.i.l.bf16 %v1820_v37 }
  0xde   : > { %728 = vrot.lane.b32.xlu2 %v1798_v28, %s1375_s25  ;;  %v1812_v10 = vsel %vm224_vm0, %v1506_v25, %v1134_v45  ;;  %v373_v25 = vsel %vm224_vm0, %v1524_v30, %v1144_v31  ;;  %v1138_v45 = vunpack.i.l.bf16 %v1717_v54  ;;  %v1133_v30 = vunpack.i.l.bf16 %v1677_v61 }
  0xdf   : > { %1241 = vrot.lane.b32.xlu1 %v1240_v0, %s1374_s24  ;;  %1261 = vrot.lane.b32.xlu0 %v1260_v15, %s1374_s24  ;;  %v431_v61 = vsel %vm224_vm0, %v1763_v8, %v1554_v39  ;;  %v1188_v39 = vunpack.i.l.bf16 %v1761_v20 }
  0xe1   : > { %v1182_v14 = vpop.permute.xlu0 %1181 }
  0xe5   : > { %v1192_v62 = vpop.permute.xlu1 %1191 }
  0xe6   : > { %v1194_v51 = vunpack.i.h.bf16 %v1192_v62  ;;  %v1193_v15 = vunpack.i.l.bf16 %v1192_v62  ;;  %v1149_v62 = vunpack.i.h.bf16 %v1737_v18 }
  0xe7   : > { %637 = vrot.lane.b32.xlu1 %v1715_v49, %s1377_s27 }
  0xe8   : > { %v513_v46 = vsel %vm224_vm0, %v1607_v53, %v1194_v51  ;;  %v412_v51 = vsel %vm224_vm0, %v1745_v29, %v1541_v35  ;;  %v512_v31 = vsel %vm224_vm0, %v1193_v15, %v1198_v7  ;;  %v352_v35 = vsel %vm224_vm0, %v1133_v30, %v1138_v45 }
  0xe9   : > { %v490_v6 = vpop.permute.xlu0 %489  ;;  %v1270_v40 = vpack.i.bf16 %v513_v46, %v1812_v10  ;;  %v1858_v18 = vsel %vm224_vm0, %v1532_v32, %v1149_v62  ;;  %v1184_v7 = vunpack.i.h.bf16 %v1182_v14  ;;  %v451_v15 = vsel %vm224_vm0, %v1706_v38, %v1566_v42 }
  0xea   : > { %746 = vrot.lane.b32.xlu2 %v490_v6, %s1376_s26  ;;  %v1078_v32 = vunpack.i.l.bf16 %v1648_v22  ;;  %v1083_v45 = vunpack.i.l.bf16 %v1656_v36  ;;  %v371_v36 = vsel %vm224_vm0, %v1704_v33, %v1515_v27 }
  0xeb   : > { %1271 = vrot.lane.b32.xlu0 %v1270_v40, %s1377_s27  ;;  %v492_v20 = vsel %vm224_vm0, %v1188_v39, %v1184_v7 }
  0xec   : > { %v225_v42 = vsel %vm224_vm0, %v1433_v2, %v1078_v32  ;;  %v226_v22 = vsel %vm224_vm0, %v1083_v45, %v1442_v5  ;;  %v491_v2 = vsel %vm224_vm0, %v1781_v24, %v1590_v48  ;;  %v331_v5 = vsel %vm224_vm0, %v1646_v19, %v1491_v21 }
  0xed   : > { %v1822_v41 = vpop.permute.xlu1 %1201  ;;  %v1305_v27 = vpack.i.bf16 %v491_v2, %v331_v5  ;;  %v1199_v48 = vunpack.i.h.bf16 %v1820_v37  ;;  %v511_v21 = vsel %vm224_vm0, %v1798_v28, %v1604_v52  ;;  %v2066_v19 = vpack.i.bf16 %v1726_v59, %v1722_v57 }
  0xee   : > { %v1204_v43 = vunpack.i.h.bf16 %v1822_v41  ;;  %v1203_v24 = vunpack.i.l.bf16 %v1822_v41 }
  0xef   : > { %655 = vrot.lane.b32.xlu1 %v1745_v29, %s1378_s28  ;;  %v1183_v29 = vunpack.i.l.bf16 %v1182_v14 }
  0xf0   : > { %v533_v53 = vsel %vm224_vm0, %v1623_v58, %v1204_v43  ;;  %v530_v58 = vpop.permute.xlu2 %529  ;;  %v1255_v43 = vpack.i.bf16 %v373_v25, %v412_v51  ;;  %v532_v37 = vsel %vm224_vm0, %v1203_v24, %v1199_v48 }
  0xf1   : > { %v510_v3 = vpop.permute.xlu0 %509  ;;  %v1285_v0 = vpack.i.bf16 %v533_v53, %v373_v25  ;;  %v1300_v53 = vpack.i.bf16 %v512_v31, %v352_v35  ;;  %v351_v31 = vsel %vm224_vm0, %v1654_v34, %v1512_v26  ;;  %v1310_v28 = vpack.i.bf16 %v532_v37, %v1735_v9 }
  0xf2   : > { %764 = vrot.lane.b32.xlu2 %v510_v3, %s1377_s27  ;;  %v1178_v3 = vunpack.i.l.bf16 %v1743_v23  ;;  %v1315_v23 = vpack.i.bf16 %v1779_v47, %v1675_v60  ;;  %v531_v60 = vsel %vm224_vm0, %v490_v6, %v1616_v56  ;;  %v1280_v56 = vpack.i.bf16 %v492_v20, %v1713_v44 }
  0xf3   : > { %1286 = vrot.lane.b32.xlu0 %v1285_v0, %s1378_s28  ;;  %v1330_v6 = vpack.i.bf16 %v531_v60, %v371_v36  ;;  %v1320_v62 = vpack.i.bf16 %v511_v21, %v351_v31 }
  0xf4   : > { %v472_v25 = vsel %vm224_vm0, %v1178_v3, %v1183_v29 }
  0xf5   : > { %v1838_v46 = vpop.permute.xlu1 %1211  ;;  %v1265_v0 = vpack.i.bf16 %v472_v25, %v1702_v16  ;;  %v1290_v16 = vpack.i.bf16 %v1759_v13, %v451_v15 }
  0xf6   : > { %v1213_v40 = vunpack.i.l.bf16 %v1838_v46  ;;  %v1214_v32 = vunpack.i.h.bf16 %v1838_v46 }
  0xf7   : > { %782 = vrot.lane.b32.xlu1 %v530_v58, %s1378_s28 }
  0xf8   : > { %v1847_v54 = vsel %vm789_vm1, %v1663_v50, %v1213_v40  ;;  %v1275_v50 = vpack.i.bf16 %v1858_v18, %v431_v61  ;;  %v547_v41 = vpop.permute.xlu2 %546 }
  0xfa   : > { %1256 = vrot.lane.b32.xlu2 %v1255_v43, %s1372_s22 }
  0xfb   : > { %1301 = vrot.lane.b32.xlu0 %v1300_v53, %s1377_s27 }
  0xff   : > { %1276 = vrot.lane.b32.xlu1 %v1275_v50, %s1373_s23 }
 0x100   : > { %v566_v26 = vpop.permute.xlu2 %565 }
 0x102   : > { %1266 = vrot.lane.b32.xlu2 %v1265_v0, %s1375_s25 }
 0x103   : > { %1316 = vrot.lane.b32.xlu0 %v1315_v23, %s1375_s25  ;;  %v794_v23 = vsel %vm789_vm1, %v1644_v17, %v547_v41 }
 0x104   : > { %v800_v45 = vsel %vm795_vm2, %v794_v23, %v566_v26 }
 0x105   : > { %v1207_v51 = vpop.permute.xlu0 %1206 }
 0x106   : > { %v1209_v47 = vunpack.i.h.bf16 %v1207_v51  ;;  %v1208_v14 = vunpack.i.l.bf16 %v1207_v51 }
 0x107   : > { %1291 = vrot.lane.b32.xlu1 %v1290_v16, %s1374_s24 }
 0x108   : > { %v790_v38 = vsel %vm789_vm1, %v225_v42, %v1208_v14  ;;  %v791_v13 = vsel %vm789_vm1, %v226_v22, %v1209_v47  ;;  %v793_v22 = vsel %vm789_vm1, %v1667_v55, %v1214_v32 }
 0x10a   : > { %1281 = vrot.lane.b32.xlu2 %v1280_v56, %s1376_s26 }
 0x10b   : > { %1331 = vrot.lane.b32.xlu0 %v1330_v6, %s1378_s28 }
 0x10d   : > { %v1217_v33 = vpop.permute.xlu0 %1216  ;;  %v1929_v59 = vpop.permute.xlu1 %1221 }
 0x10e   : > { %v1219_v30 = vunpack.i.h.bf16 %v1217_v33  ;;  %v1218_v58 = vunpack.i.l.bf16 %v1217_v33  ;;  %v1224_v60 = vunpack.i.h.bf16 %v1929_v59 }
 0x10f   : > { %1306 = vrot.lane.b32.xlu1 %v1305_v27, %s1376_s26 }
 0x110   : > { %v796_v44 = vsel %vm795_vm2, %v790_v38, %v1218_v58  ;;  %v1900_v40 = vsel %vm795_vm2, %v791_v13, %v1219_v30  ;;  %v799_v27 = vsel %vm795_vm2, %v793_v22, %v1224_v60 }
 0x112   : > { %1296 = vrot.lane.b32.xlu2 %v2066_v19, %s1375_s25 }
 0x114   : > { %v693_v57 = vpop.permute.xlu2 %692 }
 0x115   : > { %v1227_v43 = vpop.permute.xlu0 %1226 }
 0x116   : > { %v1228_v35 = vunpack.i.l.bf16 %v1227_v43  ;;  %v1229_v17 = vunpack.i.h.bf16 %v1227_v43 }
 0x117   : > { %1321 = vrot.lane.b32.xlu1 %v1320_v62, %s1377_s27 }
 0x118   : > { %v1917_v52 = vsel %vm801_vm3, %v796_v44, %v1228_v35  ;;  %v805_v55 = vsel %vm801_vm3, %v799_v27, %v1229_v17  ;;  %v867_v27 = vld [vmem:[%s2061_s2] sm:$0xff] }
 0x11a   : > { %1311 = vrot.lane.b32.xlu2 %v1310_v28, %s1378_s28 }
 0x11d   : > { %v584_v34 = vpop.permute.xlu0 %583 }
 0x11e   : > { %v806_v16 = vsel %vm801_vm3, %v800_v45, %v584_v34 }
 0x11f   : > { %1336 = vrot.lane.b32.xlu1 %v1752_v63, %s1377_s27 }
 0x122   : > { %1326 = vrot.lane.b32.xlu2 %v1325_v12, %s1376_s26 }
 0x124   : > { %v674_v53 = vpop.permute.xlu1 %673 }
 0x125   : > { %v602_v29 = vpop.permute.xlu0 %601  ;;  %v835_v56 = vsel %vm789_vm1, %v1763_v8, %v674_v53 }
 0x126   : > { %v812_v47 = vsel %vm807_vm4, %v806_v16, %v602_v29  ;;  %v840_v8 = vsel %vm795_vm2, %v835_v56, %v693_v57  ;;  %v2067_v16 = vld [vmem:[#allocation3_spill] sm:$0xff] }
 0x12a   : > { %1341 = vrot.lane.b32.xlu2 %v1772_v4, %s1378_s28 }
 0x12d   : > { %v620_v61 = vpop.permute.xlu0 %619 }
 0x12e   : > { %v818_v42 = vsel %vm813_vm5, %v812_v47, %v620_v61 }
 0x130   : > { %v711_v9 = vpop.permute.xlu2 %710 }
 0x131   : > { %v845_v21 = vsel %vm801_vm3, %v840_v8, %v711_v9 }
 0x138   : > { %v729_v3 = vpop.permute.xlu2 %728 }
 0x139   : > { %v1247_v63 = vpop.permute.xlu0 %1246  ;;  %v850_v62 = vsel %vm807_vm4, %v845_v21, %v729_v3 }
 0x13a   : > { %v1248_v36 = vunpack.i.l.bf16 %v1247_v63  ;;  %v1249_v48 = vunpack.i.h.bf16 %v1247_v63 }
 0x13d   : > { %v1931_v50 = vpop.permute.xlu1 %1231 }
 0x13e   : > { %v1233_v20 = vunpack.i.l.bf16 %v1931_v50 }
 0x140   : > { %v834_v6 = vsel %vm789_vm1, %v1858_v18, %v1233_v20  ;;  %v811_v18 = vsel %vm807_vm4, %v805_v55, %v1248_v36 }
 0x141   : > { %v1252_v1 = vpop.permute.xlu0 %1251 }
 0x142   : > { %v1253_v2 = vunpack.i.l.bf16 %v1252_v1  ;;  %v1254_v41 = vunpack.i.h.bf16 %v1252_v1  ;;  %v1223_v1 = vunpack.i.l.bf16 %v1929_v59 }
 0x144   : > { %v747_v25 = vpop.permute.xlu2 %746  ;;  %v817_v31 = vsel %vm813_vm5, %v811_v18, %v1253_v2  ;;  %v798_v59 = vsel %vm795_vm2, %v1847_v54, %v1223_v1  ;;  %v2068_v18 = vld [vmem:[#allocation2_spill] sm:$0xff] }
 0x145   : > { %v855_v28 = vsel %vm813_vm5, %v850_v62, %v747_v25  ;;  %v1234_v25 = vunpack.i.h.bf16 %v1931_v50 }
 0x147   : > { %v833_v20 = vsel %vm789_vm1, %v2067_v16, %v1234_v25 }
 0x149   : > { %v1933_v0 = vpop.permute.xlu1 %1236 }
 0x14a   : > { %v1238_v14 = vunpack.i.l.bf16 %v1933_v0 }
 0x14c   : > { %v765_v11 = vpop.permute.xlu2 %764  ;;  %v839_v33 = vsel %vm795_vm2, %v834_v6, %v1238_v14 }
 0x14d   : > { %v860_v57 = vsel %vm819_vm7, %v855_v28, %v765_v11  ;;  %v1239_v11 = vunpack.i.h.bf16 %v1933_v0 }
 0x14f   : > { %v838_v0 = vsel %vm795_vm2, %v833_v20, %v1239_v11 }
 0x151   : > { %v1935_v12 = vpop.permute.xlu1 %1241  ;;  %v1939_v4 = vpop.permute.xlu0 %1261 }
 0x152   : > { %v1243_v46 = vunpack.i.l.bf16 %v1935_v12  ;;  %v1263_v23 = vunpack.i.l.bf16 %v1939_v4  ;;  %v1264_v21 = vunpack.i.h.bf16 %v1939_v4 }
 0x154   : > { %v1937_v39 = vpop.permute.xlu2 %1256  ;;  %v844_v58 = vsel %vm801_vm3, %v839_v33, %v1243_v46 }
 0x155   : > { %v849_v35 = vsel %vm807_vm4, %v844_v58, %v1249_v48  ;;  %v1258_v58 = vunpack.i.l.bf16 %v1937_v39 }
 0x156   : > { %v854_v53 = vsel %vm813_vm5, %v849_v35, %v1254_v41 }
 0x159   : > { %v638_v7 = vpop.permute.xlu1 %637 }
 0x15a   : > { %v824_v38 = vsel %vm819_vm7, %v818_v42, %v638_v7  ;;  %v1244_v7 = vunpack.i.h.bf16 %v1935_v12  ;;  %v843_v42 = vsel %vm801_vm3, %v838_v0, %v1263_v23 }
 0x15c   : > { %v1943_v15 = vpop.permute.xlu2 %1266  ;;  %v804_v17 = vsel %vm801_vm3, %v798_v59, %v1244_v7 }
 0x15d   : > { %v1272_v51 = vpop.permute.xlu0 %1271  ;;  %v1269_v45 = vunpack.i.h.bf16 %v1943_v15 }
 0x15e   : > { %v1273_v30 = vunpack.i.l.bf16 %v1272_v51  ;;  %v1274_v43 = vunpack.i.h.bf16 %v1272_v51  ;;  %v1268_v51 = vunpack.i.l.bf16 %v1943_v15 }
 0x15f   : > { %v848_v46 = vsel %vm807_vm4, %v843_v42, %v1269_v45 }
 0x160   : > { %v823_v37 = vsel %vm819_vm7, %v817_v31, %v1273_v30  ;;  %v859_v61 = vsel %vm819_vm7, %v854_v53, %v1274_v43  ;;  %v810_v15 = vsel %vm807_vm4, %v804_v17, %v1268_v51  ;;  %v1379_v30 = vmov 0  }
 0x161   : > { %v656_v13 = vpop.permute.xlu1 %655  ;;  %1345 = vset.pattern.permute.xlu0 %v1379_v30 }
 0x162   : > { %v830_v5 = vsel %vm825_vm6, %v824_v38, %v656_v13  ;;  %870 = vperm.xlu0 %1345, %v867_v27  }
 0x163   : > { %1033 = vmatpush.msk.msra.mxu0 %vm224_vm0, %v830_v5 }
 0x164   : > { %v1282_v44 = vpop.permute.xlu2 %1281 }
 0x165   : > { %v1287_v24 = vpop.permute.xlu0 %1286  ;;  %v1284_v60 = vunpack.i.h.bf16 %v1282_v44  ;;  %v1283_v47 = vunpack.i.l.bf16 %v1282_v44 }
 0x166   : > { %v1288_v19 = vunpack.i.l.bf16 %v1287_v24  ;;  %v1289_v26 = vunpack.i.h.bf16 %v1287_v24  ;;  %v392_v24 = vsel %vm224_vm0, %v1715_v49, %v2068_v18  ;;  %v803_v49 = vsel %vm801_vm3, %v1900_v40, %v1264_v21 }
 0x167   : > { %v816_v13 = vsel %vm813_vm5, %v810_v15, %v1283_v47  ;;  %v853_v56 = vsel %vm813_vm5, %v848_v46, %v1284_v60  ;;  %v832_v31 = vsel %vm789_vm1, %v392_v24, %v1258_v58 }
 0x168   : > { %v829_v34 = vsel %vm825_vm6, %v823_v37, %v1288_v19  ;;  %v864_v63 = vsel %vm825_vm6, %v859_v61, %v1289_v26  ;;  %v1259_v19 = vunpack.i.h.bf16 %v1937_v39 }
 0x169   : > { %v783_v29 = vpop.permute.xlu1 %782  ;;  %895 = vmatpush.msra.mxu0 %v829_v34 }
 0x16a   : > { %v865_v9 = vsel %vm825_vm6, %v860_v57, %v783_v29  ;;  %v831_v39 = vsel %vm789_vm1, %v1812_v10, %v1259_v19 }
 0x16b   : > { %1035 = vmatpush.msk.msra.mxu1 %vm224_vm0, %v865_v9 }
 0x16c   : > { %v1981_v3 = vpop.permute.xlu2 %1296 }
 0x16d   : > { %915 = vmatpush.msra.mxu1 %v864_v63  ;;  %v1302_v32 = vpop.permute.xlu0 %1301  ;;  %v1298_v62 = vunpack.i.l.bf16 %v1981_v3  ;;  %v1299_v26 = vunpack.i.h.bf16 %v1981_v3 }
 0x16e   : > { %v1304_v14 = vunpack.i.h.bf16 %v1302_v32  ;;  %v1303_v12 = vunpack.i.l.bf16 %v1302_v32 }
 0x16f   : > { %v809_v9 = vsel %vm807_vm4, %v803_v49, %v1298_v62 }
 0x170   : > { %v822_v54 = vsel %vm819_vm7, %v816_v13, %v1303_v12  ;;  %v858_v6 = vsel %vm819_vm7, %v853_v56, %v1304_v14 }
 0x171   : > { %v1277_v50 = vpop.permute.xlu1 %1276 }
 0x172   : > { %v1278_v8 = vunpack.i.l.bf16 %v1277_v50  ;;  %v1279_v34 = vunpack.i.h.bf16 %v1277_v50 }
 0x174   : > { %v1312_v22 = vpop.permute.xlu2 %1311  ;;  %v837_v43 = vsel %vm795_vm2, %v832_v31, %v1278_v8  ;;  %v836_v7 = vsel %vm795_vm2, %v831_v39, %v1279_v34 }
 0x175   : > { %v1314_v36 = vunpack.i.h.bf16 %v1312_v22  ;;  %v1313_v38 = vunpack.i.l.bf16 %v1312_v22  ;;  %v1317_v55 = vpop.permute.xlu0 %1316 }
 0x176   : > { %v1319_v51 = vunpack.i.h.bf16 %v1317_v55  ;;  %v1318_v16 = vunpack.i.l.bf16 %v1317_v55 }
 0x177   : > { %v828_v2 = vsel %vm825_vm6, %v822_v54, %v1313_v38  ;;  %v863_v5 = vsel %vm825_vm6, %v858_v6, %v1314_v36  ;;  %v866_v38 = vld [vmem:[%s2060_s1] sm:$0xff] }
 0x178   : > { %896 = vmatpush.msra.mxu0 %v828_v2  ;;  %916 = vmatpush.msra.mxu1 %v863_v5  ;;  %v808_v0 = vsel %vm807_vm4, %v1917_v52, %v1318_v16 }
 0x179   : > { %v1292_v33 = vpop.permute.xlu1 %1291 }
 0x17a   : > { %v1293_v48 = vunpack.i.l.bf16 %v1292_v33  ;;  %v1294_v4 = vunpack.i.h.bf16 %v1292_v33 }
 0x17c   : > { %v1327_v37 = vpop.permute.xlu2 %1326  ;;  %v842_v35 = vsel %vm801_vm3, %v837_v43, %v1293_v48  ;;  %v841_v23 = vsel %vm801_vm3, %v836_v7, %v1294_v4 }
 0x17d   : > { %v1332_v57 = vpop.permute.xlu0 %1331  ;;  %v847_v63 = vsel %vm807_vm4, %v842_v35, %v1299_v26  ;;  %v1329_v20 = vunpack.i.h.bf16 %v1327_v37  ;;  %v1328_v60 = vunpack.i.l.bf16 %v1327_v37  ;;  %v846_v50 = vsel %vm807_vm4, %v841_v23, %v1319_v51 }
 0x17e   : > { %v1334_v25 = vunpack.i.h.bf16 %v1332_v57  ;;  %v1333_v1 = vunpack.i.l.bf16 %v1332_v57 }
 0x17f   : > { %v814_v46 = vsel %vm813_vm5, %v808_v0, %v1328_v60  ;;  %v851_v15 = vsel %vm813_vm5, %v846_v50, %v1329_v20 }
 0x181   : > { %v1307_v44 = vpop.permute.xlu1 %1306 }
 0x182   : > { %v1309_v41 = vunpack.i.h.bf16 %v1307_v44  ;;  %v1308_v28 = vunpack.i.l.bf16 %v1307_v44 }
 0x184   : > { %v815_v3 = vsel %vm813_vm5, %v809_v9, %v1308_v28  ;;  %v852_v11 = vsel %vm813_vm5, %v847_v63, %v1309_v41  ;;  %v1342_v47 = vpop.permute.xlu2 %1341 }
 0x185   : > { %v1344_v17 = vunpack.i.h.bf16 %v1342_v47  ;;  %v1343_v42 = vunpack.i.l.bf16 %v1342_v47 }
 0x189   : > { %v1322_v29 = vpop.permute.xlu1 %1321 }
 0x18a   : > { %v1324_v53 = vunpack.i.h.bf16 %v1322_v29  ;;  %v1323_v61 = vunpack.i.l.bf16 %v1322_v29 }
 0x18c   : > { %v821_v40 = vsel %vm819_vm7, %v815_v3, %v1323_v61  ;;  %v857_v10 = vsel %vm819_vm7, %v852_v11, %v1324_v53 }
 0x18d   : > { %v827_v32 = vsel %vm825_vm6, %v821_v40, %v1333_v1  ;;  %v862_v45 = vsel %vm825_vm6, %v857_v10, %v1334_v25 }
 0x18e   : > { %897 = vmatpush.msra.mxu0 %v827_v32  ;;  %917 = vmatpush.msra.mxu1 %v862_v45 }
 0x191   : > { %v1337_v59 = vpop.permute.xlu1 %1336 }
 0x192   : > { %v1339_v14 = vunpack.i.h.bf16 %v1337_v59  ;;  %v1338_v12 = vunpack.i.l.bf16 %v1337_v59 }
 0x194   : > { %v820_v22 = vsel %vm819_vm7, %v814_v46, %v1338_v12  ;;  %v856_v36 = vsel %vm819_vm7, %v851_v15, %v1339_v14 }
 0x195   : > { %v826_v52 = vsel %vm825_vm6, %v820_v22, %v1343_v42  ;;  %v861_v13 = vsel %vm825_vm6, %v856_v36, %v1344_v17 }
 0x196   : > { %898 = vmatpush.msra.mxu0 %v826_v52  ;;  %918 = vmatpush.msra.mxu1 %v861_v13 }
 0x197   : > { %1034 = vmatmul.msk.f32.vlgmr.msra.gmra.mxu0 %vm873_vm8, %v866_v38  ;;  %1036 = vmatmul.msk.f32.vlgmr.msra.gmra.mxu1 %vm873_vm8, %v866_v38 }
 0x1d4   : > { %v871_v56 = vpop.permute.xlu0 %870 }
 0x214   : > { %v900_v54 = vpop.f32.mrf.mxu0  ;;  %v920_v6 = vpop.f32.mrf.mxu1 }
 0x215   : > { %v901_v2 = vadd.f32 %v900_v54, %v871_v56  ;;  %v921_v5 = vadd.f32 %v920_v6, %v871_v56 }
 0x217   : > { %v923_v27 = vmax.f32 %v901_v2, 0.0  ;;  %v924_v33 = vmax.f32 %v921_v5, 0.0 }
 0x219   : > { %925 = vst [vmem:[%s192_s9] sm:$0xff] %v923_v27 }
 0x21a   : > { %926 = vst [vmem:[%s192_s9 + $0x8] sm:$0xff] %v924_v33 }
 0x21b PF: > { %s13_s14 = sadd.s32 1, %s1368_s14   ;;  %s2069_s12 = smov %s1364_s13 }
 0x21c   : > { %p10_p5 = scmp.ge.s32.totalorder %s13_s14, 4   ;;  %s2070_s13 = smov %s2072_s15 }
 0x21e   :  { %12 = sbr.rel (!%p10_p5) target bundleno = 2 (0x2), region = 79 }

</bundles_post_ra>
